<compile_context>
chip_gen: v7x
topology: tpu7x:2x2x1
jax: 0.10.0
libtpu: 0.0.40
codegen_flags: <defaults>
</compile_context>

<pallas_src>
import functools
import math

import numpy as np

import jax
import jax.numpy as jnp
from jax.experimental import pallas as pl
from jax.experimental.pallas import tpu as pltpu


def _upsample_pad_matrix(n):
    """(2n+2, n) stencil M s.t. M @ v == ReplicationPad1d(1)(Upsample(x2,
    mode='bilinear', align_corners=False)(v)) along one spatial axis."""
    m = np.zeros((2 * n + 2, n), np.float32)
    for q in range(2 * n + 2):
        j = min(max(q - 1, 0), 2 * n - 1)        # replication pad of the upsampled axis
        src = (j + 0.5) / 2.0 - 0.5              # half-pixel centers
        j0 = int(np.floor(src))
        frac = src - j0
        m[q, min(max(j0, 0), n - 1)] += 1.0 - frac   # clamped taps == torch edge handling
        m[q, min(max(j0 + 1, 0), n - 1)] += frac
    return jnp.asarray(m)


def _fold_bn_into_conv(w_oihw, b, gamma, beta, running_mean, running_var,
                       eps=1e-5):
    """Fold eval-mode BatchNorm2d into the conv: returns (Cout, 9*Cin) weights
    (tap order kh, kw, ci) and (Cout, 1) bias."""
    cout = w_oihw.shape[0]
    scale = gamma / jnp.sqrt(running_var + eps)                   # (Cout,)
    shift = beta - running_mean * scale
    w2d = jnp.transpose(w_oihw, (0, 2, 3, 1)).reshape(cout, -1)   # (Cout, 9*Cin)
    w2d = w2d * scale[:, None]
    b2d = (b * scale + shift)[:, None]                            # (Cout, 1)
    return w2d.astype(jnp.float32), b2d.astype(jnp.float32)


def _decoder_block_kernel(x_ref, ph_ref, pw_ref, w_ref, b_ref, o_ref, *,
                          activation):
    """Fused upsample+pad+conv+BN+activation for one batch element.

    x_ref:  (1, Cin, H, W)      pre-upsample input tile (bf16 or f32)
    ph_ref: (2H+2, H)           H-direction upsample+pad stencil (f32)
    pw_ref: (2W+2, W)           W-direction upsample+pad stencil (f32)
    w_ref:  (Cout, 9*Cin)       BN-folded conv weights (f32)
    b_ref:  (Cout, 1)           BN-folded conv bias (f32)
    o_ref:  (1, Cout, 2H*2W)    lane-dense, NCHW-flattened output
    """
    _, cin, h, w = x_ref.shape
    hp = ph_ref.shape[0]
    wp = pw_ref.shape[0]
    ho, wo = 2 * h, 2 * w

    x = x_ref[0].astype(jnp.float32)                              # (Cin, H, W)

    # Fused bilinear x2 upsample + replication pad, as two batched matmuls.
    pw_b = jnp.broadcast_to(pw_ref[...], (cin, wp, w))
    up_w = jnp.einsum('chw,cqw->chq', x, pw_b,
                      preferred_element_type=jnp.float32)         # (Cin, H, Wp)
    ph_b = jnp.broadcast_to(ph_ref[...], (cin, hp, h))
    padded = jnp.einsum('cph,chq->cpq', ph_b, up_w,
                        preferred_element_type=jnp.float32)       # (Cin, Hp, Wp)

    # im2col once, then a single (Cout, 9*Cin) @ (9*Cin, Ho*Wo) MXU matmul.
    cols = [padded[:, kh:kh + ho, kw:kw + wo].reshape(cin, ho * wo)
            for kh in range(3) for kw in range(3)]
    patches = jnp.concatenate(cols, axis=0)                       # (9*Cin, Ho*Wo)

    y = jnp.dot(w_ref[...], patches,
                preferred_element_type=jnp.float32)               # (Cout, Ho*Wo)
    y = y + b_ref[...]                                            # conv bias + BN (folded)
    if activation == "relu":
        y = jnp.maximum(y, 0.0)
    elif activation == "sigmoid":
        y = jax.nn.sigmoid(y)                                     # f32 before any cast
    o_ref[0] = y.astype(o_ref.dtype)


def decoder_block(x, w2d, b2d, ph, pw, *, activation, out_dtype):
    """One DecoderBlock (upsample='scale'). x: (N, Cin, H, W) -> (N, Cout, 2H, 2W)."""
    n, cin, h, w = x.shape
    cout = w2d.shape[0]
    ho, wo = 2 * h, 2 * w
    hp, wp = ho + 2, wo + 2

    kernel = functools.partial(_decoder_block_kernel, activation=activation)
    out = pl.pallas_call(
        kernel,
        out_shape=jax.ShapeDtypeStruct((n, cout, ho * wo), out_dtype),
        grid=(n,),
        in_specs=[
            pl.BlockSpec((1, cin, h, w), lambda i: (i, 0, 0, 0)),
            pl.BlockSpec((hp, h), lambda i: (0, 0)),
            pl.BlockSpec((wp, w), lambda i: (0, 0)),
            pl.BlockSpec((cout, 9 * cin), lambda i: (0, 0)),
            pl.BlockSpec((cout, 1), lambda i: (0, 0)),
        ],
        out_specs=pl.BlockSpec((1, cout, ho * wo), lambda i: (i, 0, 0)),
        compiler_params=pltpu.CompilerParams(
            dimension_semantics=("parallel",),
            vmem_limit_bytes=32 * 1024 * 1024),
    )(x, ph, pw, w2d, b2d)
    return out.reshape(n, cout, ho, wo)        # metadata-only reshape


def init_decoder_params(key, input_channel, hidden_channel, output_channel,
                        num_layer):
    """Deterministic synthetic parameters in PyTorch layouts."""
    if num_layer == 0:
        chans = [(input_channel, output_channel)]
    else:
        chans = ([(input_channel, hidden_channel)]
                 + [(hidden_channel, hidden_channel)] * (num_layer - 1)
                 + [(hidden_channel, output_channel)])
    params = []
    for cin, cout in chans:
        key, kw, kb = jax.random.split(key, 3)
        bound = 1.0 / math.sqrt(cin * 9)
        w = jax.random.uniform(kw, (cout, cin, 3, 3), jnp.float32, -bound, bound)
        b = jax.random.uniform(kb, (cout,), jnp.float32, -bound, bound)
        gamma = jnp.ones((cout,), jnp.float32)
        beta = jnp.zeros((cout,), jnp.float32)
        rmean = jnp.zeros((cout,), jnp.float32)
        rvar = jnp.ones((cout,), jnp.float32)
        params.append((w, b, gamma, beta, rmean, rvar))
    return params


def decoder_forward(x_nchw, params, *, image_size, video_len,
                    interm_dtype=jnp.bfloat16):
    """Full Decoder.forward. x_nchw: (N, Cin, S/2^(L+1), S/2^(L+1))."""
    x = x_nchw
    n_blocks = len(params)
    for i, p in enumerate(params):
        last = i == n_blocks - 1
        w2d, b2d = _fold_bn_into_conv(*p)
        h, w = x.shape[2], x.shape[3]
        ph = _upsample_pad_matrix(h)
        pw = _upsample_pad_matrix(w)
        # Intermediate blocks: BN + ReLU (bf16 store); last: BN, then the
        # Decoder's sigmoid is fused into the kernel (f32 output).
        x = decoder_block(
            x, w2d, b2d, ph, pw,
            activation="sigmoid" if last else "relu",
            out_dtype=jnp.float32 if last else interm_dtype)
    n = x.shape[0]
    return x.reshape(n // video_len, video_len, 3, image_size, image_size)


if __name__ == "__main__":
    # Small, shape-consistent config: num_layer=1 => input spatial = S / 4.
    image_size = 16
    input_channel = 8
    hidden_channel = 8
    output_channel = 3
    num_layer = 1
    video_len = 2
    batch = 4                                   # must be multiple of video_len

    key = jax.random.PRNGKey(0)
    kx, kp = jax.random.split(key)
    h0 = image_size // (2 ** (num_layer + 1))
    x = jax.random.normal(kx, (batch, input_channel, h0, h0), jnp.float32)

    params = init_decoder_params(kp, input_channel, hidden_channel,
                                 output_channel, num_layer)

    fwd = jax.jit(functools.partial(decoder_forward, image_size=image_size,
                                    video_len=video_len))
    out = jax.block_until_ready(fwd(x, params))

    expected = (batch // video_len, video_len, 3, image_size, image_size)
    assert out.shape == expected, (out.shape, expected)
    assert bool(jnp.all(jnp.isfinite(out)))
    assert bool(jnp.all((out >= 0.0) & (out <= 1.0)))   # sigmoid output
    print("KERNEL_OK")
</pallas_src>

<mosaic_0001>
module attributes {stable_mosaic.version = 11 : i64} {
  func.func @_decoder_block_kernel(%arg0: i32, %arg1: memref<1x8x4x4xf32, #tpu.memory_space<vmem>>, %arg2: memref<10x4xf32, #tpu.memory_space<vmem>>, %arg3: memref<10x4xf32, #tpu.memory_space<vmem>>, %arg4: memref<8x72xf32, #tpu.memory_space<vmem>>, %arg5: memref<8x1xf32, #tpu.memory_space<vmem>>, %arg6: memref<1x8x64xbf16, #tpu.memory_space<vmem>>) attributes {dimension_semantics = [#tpu.dimension_semantics<parallel>], iteration_bounds = array<i64: 4>, scalar_prefetch = 0 : i64, scratch_operands = 0 : i64, tpu.core_type = #tpu.core_type<tc>, window_params = [{transform_indices = @transform_0, window_bounds = array<i64: 1, 8, 4, 4>}, {pipeline_mode = #tpu.pipeline_mode<synchronous>, transform_indices = @transform_1, window_bounds = array<i64: 10, 4>}, {pipeline_mode = #tpu.pipeline_mode<synchronous>, transform_indices = @transform_2, window_bounds = array<i64: 10, 4>}, {pipeline_mode = #tpu.pipeline_mode<synchronous>, transform_indices = @transform_3, window_bounds = array<i64: 8, 72>}, {pipeline_mode = #tpu.pipeline_mode<synchronous>, transform_indices = @transform_4, window_bounds = array<i64: 8, 1>}, {transform_indices = @transform_5, window_bounds = array<i64: 1, 8, 64>}]} {
    %c0 = arith.constant 0 : index
    %c0_0 = arith.constant 0 : index
    %c0_1 = arith.constant 0 : index
    %c0_2 = arith.constant 0 : index
    %0 = vector.load %arg1[%c0, %c0_0, %c0_1, %c0_2] : memref<1x8x4x4xf32, #tpu.memory_space<vmem>>, vector<1x8x4x4xf32>
    %1 = vector.shape_cast %0 : vector<1x8x4x4xf32> to vector<8x4x4xf32>
    %c0_3 = arith.constant 0 : index
    %c0_4 = arith.constant 0 : index
    %2 = vector.load %arg3[%c0_3, %c0_4] : memref<10x4xf32, #tpu.memory_space<vmem>>, vector<10x4xf32>
    %3 = vector.shape_cast %2 : vector<10x4xf32> to vector<1x10x4xf32>
    %4 = vector.broadcast %3 : vector<1x10x4xf32> to vector<8x10x4xf32>
    "tpu.trace_start"() <{level = 10 : i32, message = "chw,cqw->chq"}> : () -> ()
    %cst = arith.constant dense<0.000000e+00> : vector<8x4x10xf32>
    %5 = tpu.matmul %1, %4, %cst {dimension_numbers = #tpu.dot_dimension_numbers<[2], [2], [1], [1], [0, 0, 0, 1, 1, 1], [0], [0]>} : vector<8x4x4xf32>, vector<8x10x4xf32>, vector<8x4x10xf32> -> vector<8x4x10xf32>
    "tpu.trace_stop"() : () -> ()
    %c0_5 = arith.constant 0 : index
    %c0_6 = arith.constant 0 : index
    %6 = vector.load %arg2[%c0_5, %c0_6] : memref<10x4xf32, #tpu.memory_space<vmem>>, vector<10x4xf32>
    %7 = vector.shape_cast %6 : vector<10x4xf32> to vector<1x10x4xf32>
    %8 = vector.broadcast %7 : vector<1x10x4xf32> to vector<8x10x4xf32>
    "tpu.trace_start"() <{level = 10 : i32, message = "cph,chq->cpq"}> : () -> ()
    %cst_7 = arith.constant dense<0.000000e+00> : vector<8x10x10xf32>
    %9 = tpu.matmul %8, %5, %cst_7 {dimension_numbers = #tpu.dot_dimension_numbers<[2], [1], [1], [2], [0, 0, 0, 1, 1, 2], [0], [0]>} : vector<8x10x4xf32>, vector<8x4x10xf32>, vector<8x10x10xf32> -> vector<8x10x10xf32>
    "tpu.trace_stop"() : () -> ()
    %10 = vector.extract_strided_slice %9 {offsets = [0, 0, 0], sizes = [8, 8, 8], strides = [1, 1, 1]} : vector<8x10x10xf32> to vector<8x8x8xf32>
    %11 = vector.shape_cast %10 : vector<8x8x8xf32> to vector<8x64xf32>
    %12 = vector.extract_strided_slice %9 {offsets = [0, 0, 1], sizes = [8, 8, 8], strides = [1, 1, 1]} : vector<8x10x10xf32> to vector<8x8x8xf32>
    %13 = vector.shape_cast %12 : vector<8x8x8xf32> to vector<8x64xf32>
    %14 = vector.extract_strided_slice %9 {offsets = [0, 0, 2], sizes = [8, 8, 8], strides = [1, 1, 1]} : vector<8x10x10xf32> to vector<8x8x8xf32>
    %15 = vector.shape_cast %14 : vector<8x8x8xf32> to vector<8x64xf32>
    %16 = vector.extract_strided_slice %9 {offsets = [0, 1, 0], sizes = [8, 8, 8], strides = [1, 1, 1]} : vector<8x10x10xf32> to vector<8x8x8xf32>
    %17 = vector.shape_cast %16 : vector<8x8x8xf32> to vector<8x64xf32>
    %18 = vector.extract_strided_slice %9 {offsets = [0, 1, 1], sizes = [8, 8, 8], strides = [1, 1, 1]} : vector<8x10x10xf32> to vector<8x8x8xf32>
    %19 = vector.shape_cast %18 : vector<8x8x8xf32> to vector<8x64xf32>
    %20 = vector.extract_strided_slice %9 {offsets = [0, 1, 2], sizes = [8, 8, 8], strides = [1, 1, 1]} : vector<8x10x10xf32> to vector<8x8x8xf32>
    %21 = vector.shape_cast %20 : vector<8x8x8xf32> to vector<8x64xf32>
    %22 = vector.extract_strided_slice %9 {offsets = [0, 2, 0], sizes = [8, 8, 8], strides = [1, 1, 1]} : vector<8x10x10xf32> to vector<8x8x8xf32>
    %23 = vector.shape_cast %22 : vector<8x8x8xf32> to vector<8x64xf32>
    %24 = vector.extract_strided_slice %9 {offsets = [0, 2, 1], sizes = [8, 8, 8], strides = [1, 1, 1]} : vector<8x10x10xf32> to vector<8x8x8xf32>
    %25 = vector.shape_cast %24 : vector<8x8x8xf32> to vector<8x64xf32>
    %26 = vector.extract_strided_slice %9 {offsets = [0, 2, 2], sizes = [8, 8, 8], strides = [1, 1, 1]} : vector<8x10x10xf32> to vector<8x8x8xf32>
    %27 = vector.shape_cast %26 : vector<8x8x8xf32> to vector<8x64xf32>
    %28 = tpu.concatenate %11, %13, %15, %17, %19, %21, %23, %25, %27 in 0 : vector<8x64xf32>, vector<8x64xf32>, vector<8x64xf32>, vector<8x64xf32>, vector<8x64xf32>, vector<8x64xf32>, vector<8x64xf32>, vector<8x64xf32>, vector<8x64xf32> -> vector<72x64xf32>
    %c0_8 = arith.constant 0 : index
    %c0_9 = arith.constant 0 : index
    %29 = vector.load %arg4[%c0_8, %c0_9] : memref<8x72xf32, #tpu.memory_space<vmem>>, vector<8x72xf32>
    %cst_10 = arith.constant dense<0.000000e+00> : vector<8x64xf32>
    %30 = tpu.matmul %29, %28, %cst_10 {dimension_numbers = #tpu.dot_dimension_numbers<[1], [0], [0], [1], [0, 0, 1, 1], [], []>} : vector<8x72xf32>, vector<72x64xf32>, vector<8x64xf32> -> vector<8x64xf32>
    %c0_11 = arith.constant 0 : index
    %c0_12 = arith.constant 0 : index
    %31 = vector.load %arg5[%c0_11, %c0_12] : memref<8x1xf32, #tpu.memory_space<vmem>>, vector<8x1xf32>
    %32 = vector.broadcast %31 : vector<8x1xf32> to vector<8x64xf32>
    %33 = arith.addf %30, %32 : vector<8x64xf32>
    %cst_13 = arith.constant 0.000000e+00 : f32
    %34 = vector.broadcast %cst_13 : f32 to vector<8x64xf32>
    %35 = arith.maximumf %33, %34 : vector<8x64xf32>
    %36 = arith.truncf %35 : vector<8x64xf32> to vector<8x64xbf16>
    %c0_14 = arith.constant 0 : index
    %c0_15 = arith.constant 0 : index
    %c0_16 = arith.constant 0 : index
    %37 = vector.load %arg6[%c0_14, %c0_15, %c0_16] : memref<1x8x64xbf16, #tpu.memory_space<vmem>>, vector<1x8x64xbf16>
    %38 = vector.shape_cast %37 : vector<1x8x64xbf16> to vector<8x64xbf16>
    %39 = vector.shape_cast %36 : vector<8x64xbf16> to vector<1x8x64xbf16>
    tpu.vector_store %arg6[%c0_14, %c0_15, %c0_16], %39 {strides = array<i32>} : memref<1x8x64xbf16, #tpu.memory_space<vmem>>, vector<1x8x64xbf16>,
    return
  }
  func.func @transform_0(%arg0: i32) -> (i32, i32, i32, i32) {
    %c0_i32 = arith.constant 0 : i32
    %c0_i32_0 = arith.constant 0 : i32
    %c0_i32_1 = arith.constant 0 : i32
    %c0_i32_2 = arith.constant 0 : i32
    return %arg0, %c0_i32, %c0_i32_0, %c0_i32_1 : i32, i32, i32, i32
  }
  func.func @transform_1(%arg0: i32) -> (i32, i32) {
    %c0_i32 = arith.constant 0 : i32
    %c0_i32_0 = arith.constant 0 : i32
    %c0_i32_1 = arith.constant 0 : i32
    return %c0_i32, %c0_i32_0 : i32, i32
  }
  func.func @transform_2(%arg0: i32) -> (i32, i32) {
    %c0_i32 = arith.constant 0 : i32
    %c0_i32_0 = arith.constant 0 : i32
    %c0_i32_1 = arith.constant 0 : i32
    return %c0_i32, %c0_i32_0 : i32, i32
  }
  func.func @transform_3(%arg0: i32) -> (i32, i32) {
    %c0_i32 = arith.constant 0 : i32
    %c0_i32_0 = arith.constant 0 : i32
    %c0_i32_1 = arith.constant 0 : i32
    return %c0_i32, %c0_i32_0 : i32, i32
  }
  func.func @transform_4(%arg0: i32) -> (i32, i32) {
    %c0_i32 = arith.constant 0 : i32
    %c0_i32_0 = arith.constant 0 : i32
    %c0_i32_1 = arith.constant 0 : i32
    return %c0_i32, %c0_i32_0 : i32, i32
  }
  func.func @transform_5(%arg0: i32) -> (i32, i32, i32) {
    %c0_i32 = arith.constant 0 : i32
    %c0_i32_0 = arith.constant 0 : i32
    %c0_i32_1 = arith.constant 0 : i32
    return %arg0, %c0_i32, %c0_i32_0 : i32, i32, i32
  }
}

module attributes {stable_mosaic.version = 11 : i64} {
  func.func @_decoder_block_kernel(%arg0: i32, %arg1: memref<1x8x8x8xbf16, #tpu.memory_space<vmem>>, %arg2: memref<18x8xf32, #tpu.memory_space<vmem>>, %arg3: memref<18x8xf32, #tpu.memory_space<vmem>>, %arg4: memref<3x72xf32, #tpu.memory_space<vmem>>, %arg5: memref<3x1xf32, #tpu.memory_space<vmem>>, %arg6: memref<1x3x256xf32, #tpu.memory_space<vmem>>) attributes {dimension_semantics = [#tpu.dimension_semantics<parallel>], iteration_bounds = array<i64: 4>, scalar_prefetch = 0 : i64, scratch_operands = 0 : i64, tpu.core_type = #tpu.core_type<tc>, window_params = [{transform_indices = @transform_0, window_bounds = array<i64: 1, 8, 8, 8>}, {pipeline_mode = #tpu.pipeline_mode<synchronous>, transform_indices = @transform_1, window_bounds = array<i64: 18, 8>}, {pipeline_mode = #tpu.pipeline_mode<synchronous>, transform_indices = @transform_2, window_bounds = array<i64: 18, 8>}, {pipeline_mode = #tpu.pipeline_mode<synchronous>, transform_indices = @transform_3, window_bounds = array<i64: 3, 72>}, {pipeline_mode = #tpu.pipeline_mode<synchronous>, transform_indices = @transform_4, window_bounds = array<i64: 3, 1>}, {transform_indices = @transform_5, window_bounds = array<i64: 1, 3, 256>}]} {
    %c0 = arith.constant 0 : index
    %c0_0 = arith.constant 0 : index
    %c0_1 = arith.constant 0 : index
    %c0_2 = arith.constant 0 : index
    %0 = vector.load %arg1[%c0, %c0_0, %c0_1, %c0_2] : memref<1x8x8x8xbf16, #tpu.memory_space<vmem>>, vector<1x8x8x8xbf16>
    %1 = vector.shape_cast %0 : vector<1x8x8x8xbf16> to vector<8x8x8xbf16>
    %2 = arith.extf %1 : vector<8x8x8xbf16> to vector<8x8x8xf32>
    %c0_3 = arith.constant 0 : index
    %c0_4 = arith.constant 0 : index
    %3 = vector.load %arg3[%c0_3, %c0_4] : memref<18x8xf32, #tpu.memory_space<vmem>>, vector<18x8xf32>
    %4 = vector.shape_cast %3 : vector<18x8xf32> to vector<1x18x8xf32>
    %5 = vector.broadcast %4 : vector<1x18x8xf32> to vector<8x18x8xf32>
    "tpu.trace_start"() <{level = 10 : i32, message = "chw,cqw->chq"}> : () -> ()
    %cst = arith.constant dense<0.000000e+00> : vector<8x8x18xf32>
    %6 = tpu.matmul %2, %5, %cst {dimension_numbers = #tpu.dot_dimension_numbers<[2], [2], [1], [1], [0, 0, 0, 1, 1, 1], [0], [0]>} : vector<8x8x8xf32>, vector<8x18x8xf32>, vector<8x8x18xf32> -> vector<8x8x18xf32>
    "tpu.trace_stop"() : () -> ()
    %c0_5 = arith.constant 0 : index
    %c0_6 = arith.constant 0 : index
    %7 = vector.load %arg2[%c0_5, %c0_6] : memref<18x8xf32, #tpu.memory_space<vmem>>, vector<18x8xf32>
    %8 = vector.shape_cast %7 : vector<18x8xf32> to vector<1x18x8xf32>
    %9 = vector.broadcast %8 : vector<1x18x8xf32> to vector<8x18x8xf32>
    "tpu.trace_start"() <{level = 10 : i32, message = "cph,chq->cpq"}> : () -> ()
    %cst_7 = arith.constant dense<0.000000e+00> : vector<8x18x18xf32>
    %10 = tpu.matmul %9, %6, %cst_7 {dimension_numbers = #tpu.dot_dimension_numbers<[2], [1], [1], [2], [0, 0, 0, 1, 1, 2], [0], [0]>} : vector<8x18x8xf32>, vector<8x8x18xf32>, vector<8x18x18xf32> -> vector<8x18x18xf32>
    "tpu.trace_stop"() : () -> ()
    %11 = vector.extract_strided_slice %10 {offsets = [0, 0, 0], sizes = [8, 16, 16], strides = [1, 1, 1]} : vector<8x18x18xf32> to vector<8x16x16xf32>
    %12 = vector.shape_cast %11 : vector<8x16x16xf32> to vector<8x256xf32>
    %13 = vector.extract_strided_slice %10 {offsets = [0, 0, 1], sizes = [8, 16, 16], strides = [1, 1, 1]} : vector<8x18x18xf32> to vector<8x16x16xf32>
    %14 = vector.shape_cast %13 : vector<8x16x16xf32> to vector<8x256xf32>
    %15 = vector.extract_strided_slice %10 {offsets = [0, 0, 2], sizes = [8, 16, 16], strides = [1, 1, 1]} : vector<8x18x18xf32> to vector<8x16x16xf32>
    %16 = vector.shape_cast %15 : vector<8x16x16xf32> to vector<8x256xf32>
    %17 = vector.extract_strided_slice %10 {offsets = [0, 1, 0], sizes = [8, 16, 16], strides = [1, 1, 1]} : vector<8x18x18xf32> to vector<8x16x16xf32>
    %18 = vector.shape_cast %17 : vector<8x16x16xf32> to vector<8x256xf32>
    %19 = vector.extract_strided_slice %10 {offsets = [0, 1, 1], sizes = [8, 16, 16], strides = [1, 1, 1]} : vector<8x18x18xf32> to vector<8x16x16xf32>
    %20 = vector.shape_cast %19 : vector<8x16x16xf32> to vector<8x256xf32>
    %21 = vector.extract_strided_slice %10 {offsets = [0, 1, 2], sizes = [8, 16, 16], strides = [1, 1, 1]} : vector<8x18x18xf32> to vector<8x16x16xf32>
    %22 = vector.shape_cast %21 : vector<8x16x16xf32> to vector<8x256xf32>
    %23 = vector.extract_strided_slice %10 {offsets = [0, 2, 0], sizes = [8, 16, 16], strides = [1, 1, 1]} : vector<8x18x18xf32> to vector<8x16x16xf32>
    %24 = vector.shape_cast %23 : vector<8x16x16xf32> to vector<8x256xf32>
    %25 = vector.extract_strided_slice %10 {offsets = [0, 2, 1], sizes = [8, 16, 16], strides = [1, 1, 1]} : vector<8x18x18xf32> to vector<8x16x16xf32>
    %26 = vector.shape_cast %25 : vector<8x16x16xf32> to vector<8x256xf32>
    %27 = vector.extract_strided_slice %10 {offsets = [0, 2, 2], sizes = [8, 16, 16], strides = [1, 1, 1]} : vector<8x18x18xf32> to vector<8x16x16xf32>
    %28 = vector.shape_cast %27 : vector<8x16x16xf32> to vector<8x256xf32>
    %29 = tpu.concatenate %12, %14, %16, %18, %20, %22, %24, %26, %28 in 0 : vector<8x256xf32>, vector<8x256xf32>, vector<8x256xf32>, vector<8x256xf32>, vector<8x256xf32>, vector<8x256xf32>, vector<8x256xf32>, vector<8x256xf32>, vector<8x256xf32> -> vector<72x256xf32>
    %c0_8 = arith.constant 0 : index
    %c0_9 = arith.constant 0 : index
    %30 = vector.load %arg4[%c0_8, %c0_9] : memref<3x72xf32, #tpu.memory_space<vmem>>, vector<3x72xf32>
    %cst_10 = arith.constant dense<0.000000e+00> : vector<3x256xf32>
    %31 = tpu.matmul %30, %29, %cst_10 {dimension_numbers = #tpu.dot_dimension_numbers<[1], [0], [0], [1], [0, 0, 1, 1], [], []>} : vector<3x72xf32>, vector<72x256xf32>, vector<3x256xf32> -> vector<3x256xf32>
    %c0_11 = arith.constant 0 : index
    %c0_12 = arith.constant 0 : index
    %32 = vector.load %arg5[%c0_11, %c0_12] : memref<3x1xf32, #tpu.memory_space<vmem>>, vector<3x1xf32>
    %33 = vector.broadcast %32 : vector<3x1xf32> to vector<3x256xf32>
    %34 = arith.addf %31, %33 : vector<3x256xf32>
    %35 = arith.negf %34 : vector<3x256xf32>
    %36 = math.exp %35 : vector<3x256xf32>
    %cst_13 = arith.constant 1.000000e+00 : f32
    %37 = vector.broadcast %cst_13 : f32 to vector<3x256xf32>
    %38 = arith.addf %37, %36 : vector<3x256xf32>
    %39 = arith.divf %37, %38 : vector<3x256xf32>
    %c0_14 = arith.constant 0 : index
    %c0_15 = arith.constant 0 : index
    %c0_16 = arith.constant 0 : index
    %40 = vector.load %arg6[%c0_14, %c0_15, %c0_16] : memref<1x3x256xf32, #tpu.memory_space<vmem>>, vector<1x3x256xf32>
    %41 = vector.shape_cast %40 : vector<1x3x256xf32> to vector<3x256xf32>
    %42 = vector.shape_cast %39 : vector<3x256xf32> to vector<1x3x256xf32>
    tpu.vector_store %arg6[%c0_14, %c0_15, %c0_16], %42 {strides = array<i32>} : memref<1x3x256xf32, #tpu.memory_space<vmem>>, vector<1x3x256xf32>,
    return
  }
  func.func @transform_0(%arg0: i32) -> (i32, i32, i32, i32) {
    %c0_i32 = arith.constant 0 : i32
    %c0_i32_0 = arith.constant 0 : i32
    %c0_i32_1 = arith.constant 0 : i32
    %c0_i32_2 = arith.constant 0 : i32
    return %arg0, %c0_i32, %c0_i32_0, %c0_i32_1 : i32, i32, i32, i32
  }
  func.func @transform_1(%arg0: i32) -> (i32, i32) {
    %c0_i32 = arith.constant 0 : i32
    %c0_i32_0 = arith.constant 0 : i32
    %c0_i32_1 = arith.constant 0 : i32
    return %c0_i32, %c0_i32_0 : i32, i32
  }
  func.func @transform_2(%arg0: i32) -> (i32, i32) {
    %c0_i32 = arith.constant 0 : i32
    %c0_i32_0 = arith.constant 0 : i32
    %c0_i32_1 = arith.constant 0 : i32
    return %c0_i32, %c0_i32_0 : i32, i32
  }
  func.func @transform_3(%arg0: i32) -> (i32, i32) {
    %c0_i32 = arith.constant 0 : i32
    %c0_i32_0 = arith.constant 0 : i32
    %c0_i32_1 = arith.constant 0 : i32
    return %c0_i32, %c0_i32_0 : i32, i32
  }
  func.func @transform_4(%arg0: i32) -> (i32, i32) {
    %c0_i32 = arith.constant 0 : i32
    %c0_i32_0 = arith.constant 0 : i32
    %c0_i32_1 = arith.constant 0 : i32
    return %c0_i32, %c0_i32_0 : i32, i32
  }
  func.func @transform_5(%arg0: i32) -> (i32, i32, i32) {
    %c0_i32 = arith.constant 0 : i32
    %c0_i32_0 = arith.constant 0 : i32
    %c0_i32_1 = arith.constant 0 : i32
    return %arg0, %c0_i32, %c0_i32_0 : i32, i32, i32
  }
}

</mosaic_0001>

<bundles_post_ra>
// kernel: decoder_forward.2
= control target key start
LH: loop header
LB: loop body
LE: loop exit
PB: predicated region body
PF: predicated region fallthrough
CT: control target
= control target key end

     0   :  { %s3864_s18 = smov 0   ;;  %s5038_s0 = inlined_call_operand.vmem [shape: f32[4,8,4,4], index: 0, kind: input, shape index: {}]   ;;  %s5039_s1 = inlined_call_operand.vmem [shape: f32[10,4], index: 1, kind: input, shape index: {}, may-alias: {1,2}]   ;;  %s5040_s2 = inlined_call_operand.vmem [shape: f32[10,4], index: 2, kind: input, shape index: {}, may-alias: {1,2}]   ;;  %s5041_s3 = inlined_call_operand.vmem [shape: f32[8,72], index: 3, kind: input, shape index: {}]   ;;  %s5042_s4 = inlined_call_operand.vmem [shape: f32[8,1], index: 4, kind: input, shape index: {}]   ;;  %s5043_s5 = inlined_call_operand.vmem [shape: bf16[4,8,64], index: 5, kind: output, shape index: {}]  }
   0x1 LB: > { %s3367_s19 = sadd.s32 4294967295, %s3817_s18   ;;  %p3371_p0 = scmp.ge.s32.totalorder %s3817_s18, 1  ;;  %s3817_s18 = sphi %s3864_s18, %s15_s18  }
   0x2   : > { %p187_p1 = scmp.lt.s32.totalorder %s3817_s18, 5 }
   0x4   : > { %p188_p2 = pnand %p3371_p0, %p187_p1 }
   0x6   : > { %191 = sbr.rel (%p188_p2) target bundleno = 1065 (0x429), region = 40 }
   0xd   : > { %v231_v0 = vld [vmem:[%s5040_s2] sm:$0xff]  ;;  %v232_v1 = vld [vmem:[%s5040_s2 + $0x8] sm:$0x3]  ;;  %vm233_vm0 = vcmask 31744   ;;  %v5045_v2 = vmov 0.0|0.0   ;;  %p214_p3 = scmp.lt.s32.totalorder %s3367_s19, 3  ;;  %v1462_v43 = vlaneseq }
   0xe   : > { %3602 = vmatprep.subr.bf16.mxu1 %v5045_v2  ;;  %v3603_v3 = vpack.c.bf16 %v232_v1, %v231_v0  ;;  %vm3881_vm1 = vmpackc.low %vm233_vm0, %vm233_vm0  ;;  %3610 = vmatprep.subr.bf16.mxu0 %v5045_v2  ;;  %vm3820_vm2 = vmmov 0   ;;  %v5044_v5 = vmov 0.0   ;;  %v824_v14 = vld [vmem:[%s5039_s1] sm:$0xff]  ;;  %vm832_vm3 = vcmask 1043456   ;;  %v825_v17 = vld [vmem:[%s5039_s1 + $0x8] sm:$0x3] }
   0xf   : > { %3489 = vmatprep.mubr.msk.f32.mxu1 %vm3820_vm2, %v5044_v5  ;;  %3503 = vmatprep.mubr.msk.f32.mxu0 %vm3820_vm2, %v5044_v5  ;;  %s5167_s19 = smov (!%p214_p3, %s3367_s19), 3  ;;  %vm2041_vm4 = vcmask 1046528   ;;  %vm2635_vm5 = vcmask 1045504   ;;  %s3822_s7 = smov 127   ;;  %v3823_v38 = vmov 1983009808  }
  0x10   : > { %3605 = vmatpush3.bf16.xpose.msk.msra.mxu1 %vm3881_vm1, %v3603_v3  ;;  %3613 = vmatpush3.bf16.xpose.msk.msra.mxu0 %vm3881_vm1, %v3603_v3  ;;  %s3426_s24 = sshll.u32 %s5167_s19, 5  ;;  %v1460_v39 = vunpack.c.l.s4 %v3823_v38  ;;  %s3824_s8 = smov 126   ;;  %v1463_v53 = vshrl.u32 %v1462_v43, 7  ;;  %v3825_v56 = vmov 1934713408   ;;  %vm1621_vm6 = vcmask 64512  }
  0x11   : > { %3606 = vmatprep.subr.bf16.mxu1 %v5045_v2  ;;  %3618 = vmatprep.subr.bf16.mxu0 %v5045_v2  ;;  %s3902_s27 = scalar_lea.vmem %s5038_s0, %s3426_s24  ;;  %v1524_v57 = vunpack.c.l.s4 %v3825_v56  ;;  %s3826_s9 = smov 16   ;;  %vm1623_vm7 = vcmask 130048   ;;  %vm1625_vm8 = vcmask 195584   ;;  %vm1627_vm9 = vcmask 261120  }
  0x12   : > { %v223_v6 = vld [vmem:[%s3902_s27] sm:$0xf]  ;;  %v225_v7 = vld [vmem:[%s3902_s27 + $0x8] sm:$0xf]  ;;  %v224_v8 = vld [vmem:[%s3902_s27 + $0x4] sm:$0xf]  ;;  %v1461_v51 = vunpack.c.0.s8 %v1460_v39 }
  0x13   : > { %v227_v9 = vld [vmem:[%s3902_s27 + $0x10] sm:$0xf]  ;;  %v226_v10 = vld [vmem:[%s3902_s27 + $0xc] sm:$0xf]  ;;  %v229_v11 = vld [vmem:[%s3902_s27 + $0x18] sm:$0xf] }
  0x14   : > { %v228_v12 = vld [vmem:[%s3902_s27 + $0x14] sm:$0xf]  ;;  %v230_v13 = vld [vmem:[%s3902_s27 + $0x1c] sm:$0xf]  ;;  %s3827_s10 = smov 8   ;;  %s3828_s11 = smov 32  }
  0x15   : > { %s3829_s12 = smov 24   ;;  %s3830_s13 = smov 40   ;;  %vm1629_vm10 = vcmask 326656   ;;  %vm1631_vm11 = vcmask 392192   ;;  %vm1633_vm12 = vcmask 457728   ;;  %vm3236_vm13 = vcmask 588800  }
  0x16   : > { %s3831_s14 = smov 48   ;;  %s3832_s15 = smov 56   ;;  %vm3312_vm14 = vcmask 519168  }
  0x17   : > { %3490 = vmatmul.mubr.msk.f32.vlgmr.msra.gmra.mrb[0].mxu1 %vm233_vm0, %v223_v6  ;;  %3504 = vmatmul.mubr.msk.f32.vlgmr.msra.gmra.mrb[0].mxu0 %vm233_vm0, %v225_v7  ;;  %s3374_s22 = sshll.u32 %s5167_s19, 2 }
  0x18   : > { %3609 = vmatpush3.bf16.xpose.msk.msra.mxu1 %vm3881_vm1, %v3603_v3  ;;  %3496 = vmatprep.mubr.msk.f32.mxu1 %vm3820_vm2, %v5044_v5  ;;  %s222_s25 = scalar_lea.vmem %s5043_s5, %s3374_s22 }
  0x19   : > { %3614 = vmatprep.subr.bf16.mxu1 %v5045_v2  ;;  %3621 = vmatpush3.bf16.xpose.msk.msra.mxu0 %vm3881_vm1, %v3603_v3 }
  0x1a   : > { %3517 = vmatprep.mubr.msk.f32.mxu0 %vm3820_vm2, %v5044_v5  ;;  %3626 = vmatprep.subr.bf16.mxu0 %v5045_v2 }
  0x1f   : > { %3497 = vmatmul.mubr.msk.f32.vlgmr.msra.gmra.mrb[2].mxu1 %vm233_vm0, %v224_v8 }
  0x20   : > { %3617 = vmatpush3.bf16.xpose.msk.msra.mxu1 %vm3881_vm1, %v3603_v3  ;;  %3510 = vmatprep.mubr.msk.f32.mxu1 %vm3820_vm2, %v5044_v5 }
  0x21   : > { %3622 = vmatprep.subr.bf16.mxu1 %v5045_v2  ;;  %3518 = vmatmul.mubr.msk.f32.vlgmr.msra.gmra.mrb[2].mxu0 %vm233_vm0, %v227_v9 }
  0x22   : > { %3629 = vmatpush3.bf16.xpose.msk.msra.mxu0 %vm3881_vm1, %v3603_v3  ;;  %3531 = vmatprep.mubr.msk.f32.mxu0 %vm3820_vm2, %v5044_v5 }
  0x27   : > { %3511 = vmatmul.mubr.msk.f32.vlgmr.msra.gmra.mrb[4].mxu1 %vm233_vm0, %v226_v10 }
  0x28   : > { %3625 = vmatpush3.bf16.xpose.msk.msra.mxu1 %vm3881_vm1, %v3603_v3  ;;  %3524 = vmatprep.mubr.msk.f32.mxu1 %vm3820_vm2, %v5044_v5 }
  0x29   : > { %3630 = vmatprep.subr.bf16.mxu1 %v5045_v2  ;;  %3532 = vmatmul.mubr.msk.f32.vlgmr.msra.gmra.mrb[4].mxu0 %vm233_vm0, %v229_v11  ;;  %v1525_v11 = vunpack.c.0.s8 %v1524_v57 }
  0x2a   : > { %3543 = vmatprep.mubr.msk.f32.mxu0 %vm233_vm0, %v824_v14 }
  0x2f   : > { %3525 = vmatmul.mubr.msk.f32.vlgmr.msra.gmra.mrb[6].mxu1 %vm233_vm0, %v228_v12  ;;  %v4028_v12 = vsub.s32 %v1461_v51, %v1463_v53 }
  0x30   : > { %3633 = vmatpush3.bf16.xpose.msk.msra.mxu1 %vm3881_vm1, %v3603_v3  ;;  %3538 = vmatprep.mubr.msk.f32.mxu1 %vm3820_vm2, %v5044_v5 }
  0x37   : > { %3539 = vmatmul.mubr.msk.f32.vlgmr.msra.gmra.mrb[8].mxu1 %vm233_vm0, %v230_v13 }
  0x38   : > { %3548 = vmatprep.mubr.msk.f32.mxu1 %vm233_vm0, %v824_v14 }
  0xea   : > { %v309_v15 = vpop.f32.mrb[0].mxu1  ;;  %v455_v16 = vpop.f32.mrb[0].mxu0 }
  0xeb   : > { %v3491_v18 = vpop.f32.mrb[1].mxu1  ;;  %3541 = vmatprep.subr.msk.mxu0 %vm832_vm3, %v309_v15  ;;  %v3505_v19 = vpop.f32.mrb[1].mxu0 }
  0xec   : > { %3542 = vmatpush3.msk.msra.mxu0 %vm832_vm3, %v309_v15  ;;  %v4040_v18 = vsub.s32 %v1525_v11, %v1463_v53 }
  0xed   : > { %3544 = vmatmul.mubr.msk.f32.vlgmr.msra.gmra.mrb[6].mxu0 %vm233_vm0, %v825_v17  ;;  %3551 = vmatprep.subr.msk.mxu0 %vm832_vm3, %v455_v16 }
  0xee   : > { %3552 = vmatpush3.msk.msra.mxu0 %vm832_vm3, %v455_v16  ;;  %3553 = vmatprep.mubr.msk.f32.mxu0 %vm233_vm0, %v824_v14 }
  0xf1   : > { %3554 = vmatmul.mubr.msk.f32.vlgmr.msra.gmra.mrb[8].mxu0 %vm233_vm0, %v825_v17 }
  0xf2   : > { %v382_v20 = vpop.f32.mrb[2].mxu1  ;;  %3563 = vmatprep.mubr.msk.f32.mxu0 %vm233_vm0, %v824_v14 }
  0xf3   : > { %v3498_v21 = vpop.f32.mrb[3].mxu1  ;;  %3546 = vmatprep.subr.msk.mxu1 %vm832_vm3, %v382_v20 }
  0xf4   : > { %3547 = vmatpush3.msk.msra.mxu1 %vm832_vm3, %v382_v20  ;;  %v601_v22 = vpop.f32.mrb[2].mxu0 }
  0xf5   : > { %3549 = vmatmul.mubr.msk.f32.vlgmr.msra.gmra.mrb[10].mxu1 %vm233_vm0, %v825_v17  ;;  %3561 = vmatprep.subr.msk.mxu0 %vm832_vm3, %v601_v22  ;;  %v3519_v23 = vpop.f32.mrb[3].mxu0 }
  0xf6   : > { %3558 = vmatprep.mubr.msk.f32.mxu1 %vm233_vm0, %v824_v14  ;;  %3562 = vmatpush3.msk.msra.mxu0 %vm832_vm3, %v601_v22 }
  0xf7   : > { %3564 = vmatmul.mubr.msk.f32.vlgmr.msra.gmra.mrb[10].mxu0 %vm233_vm0, %v825_v17 }
  0xf8   : > { %3573 = vmatprep.mubr.msk.f32.mxu0 %vm233_vm0, %v824_v14 }
  0xfa   : > { %v528_v24 = vpop.f32.mrb[4].mxu1 }
  0xfb   : > { %3556 = vmatprep.subr.msk.mxu1 %vm832_vm3, %v528_v24  ;;  %v3512_v25 = vpop.f32.mrb[5].mxu1 }
  0xfc   : > { %3557 = vmatpush3.msk.msra.mxu1 %vm832_vm3, %v528_v24  ;;  %v747_v26 = vpop.f32.mrb[4].mxu0 }
  0xfd   : > { %3559 = vmatmul.mubr.msk.f32.vlgmr.msra.gmra.mrb[12].mxu1 %vm233_vm0, %v825_v17  ;;  %3571 = vmatprep.subr.msk.mxu0 %vm832_vm3, %v747_v26  ;;  %v3533_v27 = vpop.f32.mrb[5].mxu0 }
  0xfe   : > { %3568 = vmatprep.mubr.msk.f32.mxu1 %vm233_vm0, %v824_v14  ;;  %3572 = vmatpush3.msk.msra.mxu0 %vm832_vm3, %v747_v26 }
  0xff   : > { %3574 = vmatmul.mubr.msk.f32.vlgmr.msra.gmra.mrb[12].mxu0 %vm233_vm0, %v825_v17  ;;  %3634 = vmatprep.subr.bf16.mxu0 %v5045_v2 }
 0x100   : > { %3599 = vmatprep.mubr.msk.f32.mxu0 %vm3820_vm2, %v5044_v5 }
 0x102   : > { %v674_v28 = vpop.f32.mrb[6].mxu1 }
 0x103   : > { %3566 = vmatprep.subr.msk.mxu1 %vm832_vm3, %v674_v28  ;;  %v3526_v29 = vpop.f32.mrb[7].mxu1 }
 0x104   : > { %3567 = vmatpush3.msk.msra.mxu1 %vm832_vm3, %v674_v28 }
 0x105   : > { %3569 = vmatmul.mubr.msk.f32.vlgmr.msra.gmra.mrb[14].mxu1 %vm233_vm0, %v825_v17 }
 0x106   : > { %3578 = vmatprep.mubr.msk.f32.mxu1 %vm233_vm0, %v824_v14 }
 0x10a   : > { %v820_v30 = vpop.f32.mrb[8].mxu1 }
 0x10b   : > { %3576 = vmatprep.subr.msk.mxu1 %vm832_vm3, %v820_v30  ;;  %v3540_v31 = vpop.f32.mrb[9].mxu1 }
 0x10c   : > { %3577 = vmatpush3.msk.msra.mxu1 %vm832_vm3, %v820_v30 }
 0x10d   : > { %3579 = vmatmul.mubr.msk.f32.vlgmr.msra.gmra.mrb[16].mxu1 %vm233_vm0, %v825_v17 }
 0x1c0   : > { %v3545_v32 = vpop.f32.mrb[6].mxu0 }
 0x1c1   : > { %v2043_v33 = vrot.slane %v3545_v32, 1  ;;  %v2637_v34 = vrot.slane %v3545_v32, 2  ;;  %v902_v35 = vpop.f32.mrb[7].mxu0 }
 0x1c2   : > { %1643 = vrot.lane.b32.xlu0 %v902_v35, %s3822_s7  ;;  %v2042_v36 = vrot.slane %v902_v35, 1  ;;  %v2636_v37 = vrot.slane %v902_v35, 2 }
 0x1c4   : > { %v3555_v40 = vpop.f32.mrb[8].mxu0  ;;  %v2044_v41 = vsel %vm2041_vm4, %v2042_v36, %v2043_v33  ;;  %v3992_v42 = vsel %vm2635_vm5, %v2636_v37, %v2637_v34 }
 0x1c5   : > { %v2049_v44 = vrot.slane %v3555_v40, 1  ;;  %v2643_v45 = vrot.slane %v3555_v40, 2  ;;  %v3994_v46 = vpop.f32.mrb[9].mxu0 }
 0x1c6   : > { %v1457_v47 = vcombine.low %v902_v35, %v3994_v46  ;;  %v1458_v48 = vcombine.high %v902_v35, %v3994_v46  ;;  %1838 = vrot.lane.b32.xlu0 %v902_v35, %s3824_s8  ;;  %1647 = vrot.lane.b32.xlu1 %v3994_v46, %s3822_s7  ;;  %v2048_v49 = vrot.slane %v3994_v46, 1  ;;  %v2642_v50 = vrot.slane %v3994_v46, 2 }
 0x1c8   : > { %v3550_v52 = vpop.f32.mrb[10].mxu1  ;;  %v4004_v54 = vsel %vm2041_vm4, %v2048_v49, %v2049_v44  ;;  %v4007_v55 = vsel %vm2635_vm5, %v2642_v50, %v2643_v45  ;;  %v1465_v22 = vrot.slane %v1457_v47, %v4028_v12  ;;  %v4046_v23 = vrot.slane %v1458_v48, %v4028_v12 }
 0x1c9   : > { %v2046_v58 = vrot.slane %v3550_v52, 1  ;;  %v2640_v59 = vrot.slane %v3550_v52, 2  ;;  %v4009_v60 = vpop.f32.mrb[11].mxu1  ;;  %v2074_v61 = vcombine.low %v2044_v41, %v4004_v54  ;;  %v2075_v62 = vcombine.high %v2044_v41, %v4004_v54 }
 0x1ca   : > { %2245 = vrot.lane.b32.xlu0 %v2044_v41, %s3822_s7  ;;  %1840 = vrot.lane.b32.xlu1 %v4009_v60, %s3824_s8  ;;  %v2045_v63 = vrot.slane %v4009_v60, 1  ;;  %v2639_v0 = vrot.slane %v4009_v60, 2  ;;  %v3565_v1 = vpop.f32.mrb[10].mxu0  ;;  %v2668_v3 = vcombine.low %v3992_v42, %v4007_v55  ;;  %v2669_v4 = vcombine.high %v3992_v42, %v4007_v55 }
 0x1cb   : > { %v2055_v6 = vrot.slane %v3565_v1, 1  ;;  %v2649_v7 = vrot.slane %v3565_v1, 2  ;;  %v4022_v8 = vpop.f32.mrb[11].mxu0  ;;  %v4058_v29 = vrot.slane %v2074_v61, %v4028_v12  ;;  %v4061_v30 = vrot.slane %v2075_v62, %v4028_v12 }
 0x1cc   : > { %v2047_v9 = vsel %vm2041_vm4, %v2045_v63, %v2046_v58  ;;  %v4026_v10 = vsel %vm2635_vm5, %v2639_v0, %v2640_v59  ;;  %v2054_v13 = vrot.slane %v4022_v8, 1  ;;  %v2648_v14 = vrot.slane %v4022_v8, 2 }
 0x1cd   : > { %v4086_v43 = vrot.slane %v2668_v3, %v4028_v12  ;;  %v4092_v48 = vrot.slane %v2669_v4, %v4028_v12 }
 0x1ce   : > { %2440 = vrot.lane.b32.xlu0 %v2044_v41, %s3824_s8  ;;  %2247 = vrot.lane.b32.xlu1 %v2047_v9, %s3822_s7  ;;  %v4035_v15 = vsel %vm2041_vm4, %v2054_v13, %v2055_v6  ;;  %v4038_v16 = vsel %vm2635_vm5, %v2648_v14, %v2649_v7 }
 0x1d0   : > { %v3560_v17 = vpop.f32.mrb[12].mxu1 }
 0x1d1   : > { %v2052_v19 = vrot.slane %v3560_v17, 1  ;;  %v2646_v20 = vrot.slane %v3560_v17, 2  ;;  %v4042_v21 = vpop.f32.mrb[13].mxu1 }
 0x1d2   : > { %v1473_v24 = vcombine.low %v4009_v60, %v4042_v21  ;;  %v1474_v25 = vcombine.high %v4009_v60, %v4042_v21  ;;  %2839 = vrot.lane.b32.xlu0 %v3992_v42, %s3822_s7  ;;  %2442 = vrot.lane.b32.xlu1 %v2047_v9, %s3824_s8  ;;  %v3575_v26 = vpop.f32.mrb[12].mxu0  ;;  %v2051_v27 = vrot.slane %v4042_v21, 1  ;;  %v2645_v28 = vrot.slane %v4042_v21, 2 }
 0x1d3   : > { %v2061_v31 = vrot.slane %v3575_v26, 1  ;;  %v2655_v32 = vrot.slane %v3575_v26, 2  ;;  %v4063_v33 = vpop.f32.mrb[13].mxu0 }
 0x1d4   : > { %v1489_v34 = vcombine.low %v4022_v8, %v4063_v33  ;;  %v1490_v35 = vcombine.high %v4022_v8, %v4063_v33  ;;  %v4070_v36 = vsel %vm2041_vm4, %v2051_v27, %v2052_v19  ;;  %v4073_v37 = vsel %vm2635_vm5, %v2645_v28, %v2646_v20 }
 0x1d5   : > { %v2090_v38 = vcombine.low %v2047_v9, %v4070_v36  ;;  %v2091_v39 = vcombine.high %v2047_v9, %v4070_v36  ;;  %v2684_v40 = vcombine.low %v4026_v10, %v4073_v37  ;;  %v2685_v41 = vcombine.high %v4026_v10, %v4073_v37 }
 0x1d6   : > { %3034 = vrot.lane.b32.xlu0 %v3992_v42, %s3824_s8  ;;  %2841 = vrot.lane.b32.xlu1 %v4026_v10, %s3822_s7  ;;  %v2060_v44 = vrot.slane %v4063_v33, 1  ;;  %v2654_v45 = vrot.slane %v4063_v33, 2  ;;  %v1481_v47 = vrot.slane %v1473_v24, %v4028_v12  ;;  %v4097_v42 = vrot.slane %v1489_v34, %v4028_v12 }
 0x1d7   : > { %v2098_v49 = vrot.slane %v2090_v38, %v4028_v12  ;;  %v2105_v50 = vrot.slane %v2091_v39, %v4028_v12  ;;  %v4116_v0 = vrot.slane %v2684_v40, %v4028_v12  ;;  %v4123_v6 = vrot.slane %v2685_v41, %v4028_v12 }
 0x1d8   : > { %v3570_v51 = vpop.f32.mrb[14].mxu1  ;;  %v4100_v52 = vsel %vm2041_vm4, %v2060_v44, %v2061_v31  ;;  %v4103_v53 = vsel %vm2635_vm5, %v2654_v45, %v2655_v32  ;;  %v1522_v56 = vcombine.high %v1465_v22, %v1481_v47  ;;  %v1521_v57 = vcombine.low %v1465_v22, %v1481_v47 }
 0x1d9   : > { %v2058_v58 = vrot.slane %v3570_v51, 1  ;;  %v2652_v59 = vrot.slane %v3570_v51, 2  ;;  %v4105_v61 = vpop.f32.mrb[15].mxu1  ;;  %v2106_v62 = vcombine.low %v4035_v15, %v4100_v52  ;;  %v2107_v63 = vcombine.high %v4035_v15, %v4100_v52 }
 0x1da   : > { %1842 = vrot.lane.b32.xlu0 %v3994_v46, %s3824_s8  ;;  %3036 = vrot.lane.b32.xlu1 %v4026_v10, %s3824_s8  ;;  %v2057_v1 = vrot.slane %v4105_v61, 1  ;;  %v2651_v3 = vrot.slane %v4105_v61, 2  ;;  %v2700_v4 = vcombine.low %v4038_v16, %v4103_v53  ;;  %v2701_v9 = vcombine.high %v4038_v16, %v4103_v53 }
 0x1db   : > { %v4126_v7 = vrot.slane %v2106_v62, %v4028_v12  ;;  %v4129_v46 = vrot.slane %v2107_v63, %v4028_v12  ;;  %v4140_v13 = vrot.slane %v1522_v56, %v4040_v18  ;;  %v4143_v14 = vrot.slane %v1521_v57, %v4040_v18 }
 0x1dc   : > { %v4134_v10 = vsel %vm2041_vm4, %v2057_v1, %v2058_v58  ;;  %v4137_v11 = vsel %vm2635_vm5, %v2651_v3, %v2652_v59  ;;  %v4146_v17 = vrot.slane %v2700_v4, %v4028_v12  ;;  %v1488_v19 = vrot.slane %v1474_v25, %v4028_v12 }
 0x1dd   : > { %5083 = vst [vmem:[#allocation2_spill] sm:$0xff] %v4143_v14  ;;  %v2138_v20 = vcombine.low %v4058_v29, %v2098_v49  ;;  %v2139_v22 = vcombine.high %v4058_v29, %v2098_v49  ;;  %v2154_v24 = vcombine.low %v4061_v30, %v2105_v50  ;;  %v2155_v26 = vcombine.high %v4061_v30, %v2105_v50 }
 0x1de   : > { %2249 = vrot.lane.b32.xlu0 %v4004_v54, %s3822_s7  ;;  %1649 = vrot.lane.b32.xlu1 %v4042_v21, %s3822_s7  ;;  %v2732_v27 = vcombine.low %v4086_v43, %v4116_v0  ;;  %v4160_v28 = vrot.slane %v2701_v9, %v4028_v12  ;;  %v1504_v25 = vrot.slane %v1490_v35, %v4028_v12 }
 0x1df   : > { %v1537_v29 = vcombine.low %v4046_v23, %v1488_v19  ;;  %v1538_v31 = vcombine.high %v4046_v23, %v1488_v19  ;;  %v4166_v34 = vrot.slane %v2138_v20, %v4040_v18  ;;  %v4169_v38 = vrot.slane %v2139_v22, %v4040_v18 }
 0x1e0   : > { %v3580_v32 = vpop.f32.mrb[16].mxu1  ;;  %v4172_v30 = vrot.slane %v2154_v24, %v4040_v18  ;;  %v2733_v39 = vcombine.high %v4086_v43, %v4116_v0  ;;  %v4179_v44 = vrot.slane %v2155_v26, %v4040_v18  ;;  %v4182_v23 = vrot.slane %v2732_v27, %v4040_v18 }
 0x1e1   : > { %v2064_v40 = vrot.slane %v3580_v32, 1  ;;  %v2658_v41 = vrot.slane %v3580_v32, 2  ;;  %v4176_v35 = vpop.f32.mrb[17].mxu1  ;;  %v4195_v51 = vrot.slane %v1537_v29, %v4040_v18  ;;  %v4198_v56 = vrot.slane %v1538_v31, %v4040_v18 }
 0x1e2   : > { %5084 = vst [vmem:[#allocation3_spill] sm:$0xff] %v4182_v23  ;;  %v1505_v45 = vcombine.low %v4105_v61, %v4176_v35  ;;  %v1506_v47 = vcombine.high %v4105_v61, %v4176_v35  ;;  %2444 = vrot.lane.b32.xlu0 %v4004_v54, %s3824_s8  ;;  %1844 = vrot.lane.b32.xlu1 %v4042_v21, %s3824_s8  ;;  %v2063_v49 = vrot.slane %v4176_v35, 1  ;;  %v2657_v50 = vrot.slane %v4176_v35, 2 }
 0x1e3   : > { %v2748_v57 = vcombine.low %v4092_v48, %v4123_v6  ;;  %v2749_v58 = vcombine.high %v4092_v48, %v4123_v6 }
 0x1e4   : > { %v1513_v54 = vrot.slane %v1505_v45, %v4028_v12  ;;  %v1520_v21 = vrot.slane %v1506_v47, %v4028_v12  ;;  %v4207_v59 = vsel %vm2041_vm4, %v2063_v49, %v2064_v40  ;;  %v4210_v62 = vsel %vm2635_vm5, %v2657_v50, %v2658_v41 }
 0x1e5   : > { %v2122_v63 = vcombine.low %v4134_v10, %v4207_v59  ;;  %v2123_v1 = vcombine.high %v4134_v10, %v4207_v59  ;;  %v2716_v3 = vcombine.low %v4137_v11, %v4210_v62  ;;  %v2717_v4 = vcombine.high %v4137_v11, %v4210_v62 }
 0x1e6   : > { %2843 = vrot.lane.b32.xlu0 %v4007_v55, %s3822_s7  ;;  %2251 = vrot.lane.b32.xlu1 %v4070_v36, %s3822_s7  ;;  %v1554_v9 = vcombine.high %v4097_v42, %v1513_v54  ;;  %v1553_v19 = vcombine.low %v4097_v42, %v1513_v54  ;;  %v1569_v20 = vcombine.low %v1504_v25, %v1520_v21 }
 0x1e7   : > { %v2130_v22 = vrot.slane %v2122_v63, %v4028_v12  ;;  %v2137_v24 = vrot.slane %v2123_v1, %v4028_v12  ;;  %v2724_v26 = vrot.slane %v2716_v3, %v4028_v12  ;;  %v2731_v27 = vrot.slane %v2717_v4, %v4028_v12 }
 0x1e8   : > { %v4231_v29 = vrot.slane %v1554_v9, %v4040_v18  ;;  %v4234_v31 = vrot.slane %v1553_v19, %v4040_v18  ;;  %v4237_v32 = vrot.slane %v1569_v20, %v4040_v18  ;;  %v1570_v40 = vcombine.high %v1504_v25, %v1520_v21 }
 0x1e9   : > { %v2170_v42 = vcombine.low %v4126_v7, %v2130_v22  ;;  %v2171_v41 = vcombine.high %v4126_v7, %v2130_v22  ;;  %v2186_v45 = vcombine.low %v4129_v46, %v2137_v24  ;;  %v2187_v47 = vcombine.high %v4129_v46, %v2137_v24 }
 0x1ea   : > { %5085 = vst [vmem:[#allocation4_spill] sm:$0xff] %v4234_v31  ;;  %3038 = vrot.lane.b32.xlu0 %v4007_v55, %s3824_s8  ;;  %2446 = vrot.lane.b32.xlu1 %v4070_v36, %s3824_s8  ;;  %v4266_v21 = vrot.slane %v1570_v40, %v4040_v18  ;;  %v2764_v9 = vcombine.low %v4146_v17, %v2724_v26 }
 0x1eb   : > { %v4258_v55 = vrot.slane %v2170_v42, %v4040_v18  ;;  %v4263_v54 = vrot.slane %v2171_v41, %v4040_v18  ;;  %v4269_v63 = vrot.slane %v2186_v45, %v4040_v18  ;;  %v4272_v1 = vrot.slane %v2187_v47, %v4040_v18 }
 0x1ec   : > { %v2765_v19 = vcombine.high %v4146_v17, %v2724_v26  ;;  %v4301_v41 = vrot.slane %v2764_v9, %v4040_v18  ;;  %v4307_v45 = vrot.slane %v2733_v39, %v4040_v18  ;;  %v4313_v5 = vrot.slane %v2748_v57, %v4040_v18 }
 0x1ed   : > { %v2780_v2 = vcombine.low %v4160_v28, %v2731_v27  ;;  %v2781_v4 = vcombine.high %v4160_v28, %v2731_v27 }
 0x1ee   : > { %1645 = vrot.lane.b32.xlu0 %v4009_v60, %s3822_s7  ;;  %2845 = vrot.lane.b32.xlu1 %v4073_v37, %s3822_s7  ;;  %5086 = vst [vmem:[#allocation5_spill] sm:$0xff] %v4301_v41  ;;  %5087 = vst [vmem:[#allocation6_spill] sm:$0xff] %v4307_v45  ;;  %v4310_v47 = vrot.slane %v2765_v19, %v4040_v18 }
 0x1ef   : > { %5089 = vst [vmem:[#allocation8_spill] sm:$0xff] %v4313_v5  ;;  %v4330_v28 = vrot.slane %v2780_v2, %v4040_v18  ;;  %v4339_v27 = vrot.slane %v2781_v4, %v4040_v18 }
 0x1f0   : > { %5088 = vst [vmem:[#allocation7_spill] sm:$0xff] %v4310_v47 }
 0x1f1   : > { %5090 = vst [vmem:[#allocation9_spill] sm:$0xff] %v4330_v28  ;;  %5092 = vst [vmem:[#allocation11_spill] sm:$0xff] %v4339_v27 }
 0x1f2   : > { %1651 = vrot.lane.b32.xlu0 %v4022_v8, %s3822_s7  ;;  %3040 = vrot.lane.b32.xlu1 %v4073_v37, %s3824_s8  ;;  %v4336_v37 = vrot.slane %v2749_v58, %v4040_v18 }
 0x1f4   : > { %5091 = vst [vmem:[#allocation10_spill] sm:$0xff] %v4336_v37 }
 0x1f6   : > { %1846 = vrot.lane.b32.xlu0 %v4022_v8, %s3824_s8  ;;  %1653 = vrot.lane.b32.xlu1 %v4105_v61, %s3822_s7 }
 0x1fa   : > { %2253 = vrot.lane.b32.xlu0 %v4035_v15, %s3822_s7  ;;  %1848 = vrot.lane.b32.xlu1 %v4105_v61, %s3824_s8 }
 0x1fe   : > { %2448 = vrot.lane.b32.xlu0 %v4035_v15, %s3824_s8  ;;  %2255 = vrot.lane.b32.xlu1 %v4134_v10, %s3822_s7 }
 0x202   : > { %2847 = vrot.lane.b32.xlu0 %v4038_v16, %s3822_s7  ;;  %2450 = vrot.lane.b32.xlu1 %v4134_v10, %s3824_s8 }
 0x206   : > { %1655 = vrot.lane.b32.xlu0 %v4063_v33, %s3822_s7  ;;  %2849 = vrot.lane.b32.xlu1 %v4137_v11, %s3822_s7 }
 0x20a   : > { %1850 = vrot.lane.b32.xlu0 %v4063_v33, %s3824_s8  ;;  %1657 = vrot.lane.b32.xlu1 %v4176_v35, %s3822_s7 }
 0x20e   : > { %2257 = vrot.lane.b32.xlu0 %v4100_v52, %s3822_s7  ;;  %1852 = vrot.lane.b32.xlu1 %v4176_v35, %s3824_s8 }
 0x212   : > { %2452 = vrot.lane.b32.xlu0 %v4100_v52, %s3824_s8  ;;  %2259 = vrot.lane.b32.xlu1 %v4207_v59, %s3822_s7 }
 0x216   : > { %2851 = vrot.lane.b32.xlu0 %v4103_v53, %s3822_s7  ;;  %2454 = vrot.lane.b32.xlu1 %v4207_v59, %s3824_s8 }
 0x21a   : > { %3042 = vrot.lane.b32.xlu0 %v4038_v16, %s3824_s8  ;;  %2853 = vrot.lane.b32.xlu1 %v4210_v62, %s3822_s7 }
 0x21e   : > { %3046 = vrot.lane.b32.xlu0 %v4103_v53, %s3824_s8  ;;  %3044 = vrot.lane.b32.xlu1 %v4137_v11, %s3824_s8 }
 0x222   : > { %3048 = vrot.lane.b32.xlu1 %v4210_v62, %s3824_s8 }
 0x234   : > { %v4395_v8 = vpop.permute.xlu0 %1643 }
 0x238   : > { %v1839_v15 = vpop.permute.xlu0 %1838  ;;  %v4397_v33 = vpop.permute.xlu1 %1647 }
 0x239   : > { %v1667_v16 = vcombine.low %v4395_v8, %v4397_v33 }
 0x23c   : > { %v2246_v52 = vpop.permute.xlu0 %2245  ;;  %v1841_v61 = vpop.permute.xlu1 %1840 }
 0x240   : > { %v2441_v53 = vpop.permute.xlu0 %2440  ;;  %v2248_v6 = vpop.permute.xlu1 %2247 }
 0x244   : > { %v4403_v10 = vpop.permute.xlu0 %2839  ;;  %v2443_v11 = vpop.permute.xlu1 %2442 }
 0x248   : > { %v4405_v35 = vpop.permute.xlu0 %3034  ;;  %v2842_v58 = vpop.permute.xlu1 %2841 }
 0x24c   : > { %v1843_v59 = vpop.permute.xlu0 %1842  ;;  %v4407_v62 = vpop.permute.xlu1 %3036 }
 0x24d   : > { %v1863_v4 = vcombine.high %v1839_v15, %v1843_v59  ;;  %v1862_v9 = vcombine.low %v1839_v15, %v1843_v59 }
 0x24f   : > { %v4412_v60 = vrot.slane %v1862_v9, %v4028_v12  ;;  %v4415_v17 = vrot.slane %v1863_v4, %v4028_v12 }
 0x250   : > { %v2250_v50 = vpop.permute.xlu0 %2249  ;;  %v4409_v2 = vpop.permute.xlu1 %1649 }
 0x251   : > { %v2269_v43 = vcombine.low %v2246_v52, %v2250_v50  ;;  %v2270_v19 = vcombine.high %v2246_v52, %v2250_v50 }
 0x253   : > { %v4437_v4 = vrot.slane %v2270_v19, %v4028_v12 }
 0x254   : > { %v2445_v57 = vpop.permute.xlu0 %2444  ;;  %v1845_v39 = vpop.permute.xlu1 %1844 }
 0x255   : > { %v2465_v0 = vcombine.high %v2441_v53, %v2445_v57  ;;  %v1878_v42 = vcombine.low %v1841_v61, %v1845_v39  ;;  %v1879_v26 = vcombine.high %v1841_v61, %v1845_v39  ;;  %v2464_v22 = vcombine.low %v2441_v53, %v2445_v57 }
 0x256   : > { %v4434_v53 = vrot.slane %v2269_v43, %v4028_v12 }
 0x257   : > { %v4418_v40 = vrot.slane %v1878_v42, %v4028_v12  ;;  %v4421_v24 = vrot.slane %v1879_v26, %v4028_v12  ;;  %v4440_v20 = vrot.slane %v2464_v22, %v4028_v12 }
 0x258   : > { %v2844_v50 = vpop.permute.xlu0 %2843  ;;  %v2252_v15 = vpop.permute.xlu1 %2251 }
 0x259   : > { %v2863_v42 = vcombine.low %v4403_v10, %v2844_v50  ;;  %v2864_v26 = vcombine.high %v4403_v10, %v2844_v50  ;;  %v2285_v59 = vcombine.low %v2248_v6, %v2252_v15  ;;  %v2286_v57 = vcombine.high %v2248_v6, %v2252_v15 }
 0x25b   : > { %v4443_v36 = vrot.slane %v2285_v59, %v4028_v12  ;;  %v4446_v3 = vrot.slane %v2286_v57, %v4028_v12  ;;  %v4459_v57 = vrot.slane %v2465_v0, %v4028_v12  ;;  %v4479_v9 = vrot.slane %v2863_v42, %v4028_v12 }
 0x25c   : > { %v3039_v46 = vpop.permute.xlu0 %3038  ;;  %v2447_v7 = vpop.permute.xlu1 %2446 }
 0x25d   : > { %v3058_v10 = vcombine.low %v4405_v35, %v3039_v46  ;;  %v3059_v6 = vcombine.high %v4405_v35, %v3039_v46  ;;  %v2480_v43 = vcombine.low %v2443_v11, %v2447_v7  ;;  %v2481_v50 = vcombine.high %v2443_v11, %v2447_v7 }
 0x25e   : > { %v2333_v19 = vcombine.low %v4434_v53, %v4443_v36  ;;  %v2334_v22 = vcombine.high %v4434_v53, %v4443_v36  ;;  %v2349_v15 = vcombine.low %v4437_v4, %v4446_v3  ;;  %v2350_v59 = vcombine.high %v4437_v4, %v4446_v3 }
 0x25f   : > { %v4462_v25 = vrot.slane %v3059_v6, %v4028_v12  ;;  %v2488_v7 = vrot.slane %v2480_v43, %v4028_v12  ;;  %v2495_v46 = vrot.slane %v2481_v50, %v4028_v12 }
 0x260   : > { %v1646_v11 = vpop.permute.xlu0 %1645  ;;  %v2846_v35 = vpop.permute.xlu1 %2845  ;;  %v4574_v47 = vrot.slane %v2350_v59, %v4040_v18 }
 0x261   : > { %5093 = vst [vmem:[#allocation12_spill] sm:$0xff] %v4462_v25  ;;  %v2528_v36 = vcombine.low %v4440_v20, %v2488_v7  ;;  %v2529_v53 = vcombine.high %v4440_v20, %v2488_v7  ;;  %v2544_v49 = vcombine.low %v4459_v57, %v2495_v46  ;;  %v2545_v3 = vcombine.high %v4459_v57, %v2495_v46 }
 0x262   : > { %v2879_v4 = vcombine.low %v2842_v58, %v2846_v35  ;;  %v2880_v0 = vcombine.high %v2842_v58, %v2846_v35  ;;  %v4482_v20 = vrot.slane %v2864_v26, %v4028_v12  ;;  %5103 = vst [vmem:[#allocation17_spill] sm:$0xff] %v4574_v47 }
 0x264   : > { %v4471_v61 = vrot.slane %v2879_v4, %v4028_v12  ;;  %v4474_v6 = vrot.slane %v2880_v0, %v4028_v12  ;;  %v4476_v43 = vpop.permute.xlu0 %1651  ;;  %v3041_v50 = vpop.permute.xlu1 %3040  ;;  %v4497_v0 = vrot.slane %v3058_v10, %v4028_v12 }
 0x265   : > { %v3074_v7 = vcombine.low %v4407_v62, %v3041_v50  ;;  %v3075_v57 = vcombine.high %v4407_v62, %v3041_v50 }
 0x266   : > { %v2927_v58 = vcombine.low %v4479_v9, %v4471_v61  ;;  %v2928_v46 = vcombine.high %v4479_v9, %v4471_v61  ;;  %v2943_v35 = vcombine.low %v4482_v20, %v4474_v6  ;;  %v2944_v42 = vcombine.high %v4482_v20, %v4474_v6  ;;  %5094 = vst [vmem:[#allocation13_spill] sm:$0xff] %v4497_v0 }
 0x267   : > { %v4500_v62 = vrot.slane %v3074_v7, %v4028_v12  ;;  %v4503_v50 = vrot.slane %v3075_v57, %v4028_v12  ;;  %v1683_v7 = vcombine.low %v1646_v11, %v4409_v2  ;;  %v1684_v9 = vcombine.high %v1646_v11, %v4409_v2 }
 0x268   : > { %v4494_v4 = vpop.permute.xlu0 %1846  ;;  %v1654_v26 = vpop.permute.xlu1 %1653  ;;  %v1675_v20 = vrot.slane %v1667_v16, %v4028_v12  ;;  %v5097_v0 = vcombine.high %v4395_v8, %v4397_v33  ;;  %v5098_v2 = vcombine.low %v4412_v60, %v4418_v40  ;;  %v5100_v8 = vcombine.low %v4415_v17, %v4421_v24 }
 0x269   : > { %5095 = vst [vmem:[#allocation14_spill] sm:$0xff] %v4500_v62  ;;  %5096 = vst [vmem:[#allocation15_spill] sm:$0xff] %v4503_v50  ;;  %v1691_v61 = vrot.slane %v1683_v7, %v4028_v12  ;;  %v1698_v62 = vrot.slane %v1684_v9, %v4028_v12  ;;  %v5099_v7 = vcombine.high %v4412_v60, %v4418_v40 }
 0x26a   : > { %v1682_v27 = vrot.slane %v5097_v0, %v4028_v12  ;;  %v4541_v11 = vrot.slane %v5098_v2, %v4040_v18  ;;  %v4555_v33 = vrot.slane %v5100_v8, %v4040_v18  ;;  %v5101_v0 = vcombine.high %v4415_v17, %v4421_v24 }
 0x26b   : > { %v4547_v37 = vrot.slane %v5099_v7, %v4040_v18  ;;  %v1731_v16 = vcombine.low %v1675_v20, %v1691_v61  ;;  %v4564_v40 = vrot.slane %v2333_v19, %v4040_v18  ;;  %v1732_v60 = vcombine.high %v1675_v20, %v1691_v61 }
 0x26c   : > { %v4513_v10 = vpop.permute.xlu0 %2253  ;;  %v4515_v39 = vpop.permute.xlu1 %1848  ;;  %v4561_v2 = vrot.slane %v5101_v0, %v4040_v18  ;;  %v4567_v7 = vrot.slane %v2334_v22, %v4040_v18  ;;  %v1747_v25 = vcombine.low %v1682_v27, %v1698_v62  ;;  %v1748_v28 = vcombine.high %v1682_v27, %v1698_v62 }
 0x26d   : > { %v4571_v8 = vrot.slane %v2349_v15, %v4040_v18  ;;  %v4577_v24 = vrot.slane %v2528_v36, %v4040_v18  ;;  %v4581_v19 = vrot.slane %v2529_v53, %v4040_v18  ;;  %v4584_v22 = vrot.slane %v2544_v49, %v4040_v18 }
 0x26e   : > { %v4587_v27 = vrot.slane %v2545_v3, %v4040_v18  ;;  %v4590_v15 = vrot.slane %v1731_v16, %v4040_v18  ;;  %v4593_v61 = vrot.slane %v1732_v60, %v4040_v18  ;;  %v4597_v53 = vrot.slane %v1747_v25, %v4040_v18 }
 0x26f   : > { %5102 = vst [vmem:[#allocation16_spill] sm:$0xff] %v4571_v8  ;;  %5104 = vst [vmem:[#allocation18_spill] sm:$0xff] %v4584_v22  ;;  %v4600_v49 = vrot.slane %v1748_v28, %v4040_v18  ;;  %v4603_v3 = vrot.slane %v2927_v58, %v4040_v18  ;;  %v4614_v25 = vrot.slane %v2943_v35, %v4040_v18 }
 0x270   : > { %v4518_v57 = vpop.permute.xlu0 %2448  ;;  %v4520_v52 = vpop.permute.xlu1 %2255  ;;  %5105 = vst [vmem:[#allocation19_spill] sm:$0xff] %v4587_v27  ;;  %v4617_v28 = vrot.slane %v2944_v42, %v4040_v18 }
 0x271   : > { %5107 = vst [vmem:[#allocation21_spill] sm:$0xff] %v4614_v25 }
 0x272   : > { %5108 = vst [vmem:[#allocation22_spill] sm:$0xff] %v4617_v28 }
 0x274   : > { %v4524_v48 = vpop.permute.xlu0 %2847  ;;  %v4526_v6 = vpop.permute.xlu1 %2450 }
 0x278   : > { %v1656_v50 = vpop.permute.xlu0 %1655  ;;  %v4549_v9 = vpop.permute.xlu1 %2849 }
 0x279   : > { %v1699_v5 = vcombine.low %v4476_v43, %v1656_v50  ;;  %v1700_v17 = vcombine.high %v4476_v43, %v1656_v50 }
 0x27b   : > { %v1707_v20 = vrot.slane %v1699_v5, %v4028_v12  ;;  %v1714_v16 = vrot.slane %v1700_v17, %v4028_v12 }
 0x27c   : > { %v1851_v62 = vpop.permute.xlu0 %1850  ;;  %v1658_v59 = vpop.permute.xlu1 %1657 }
 0x27d   : > { %v1894_v36 = vcombine.low %v4494_v4, %v1851_v62  ;;  %v1715_v43 = vcombine.low %v1654_v26, %v1658_v59  ;;  %v1716_v50 = vcombine.high %v1654_v26, %v1658_v59  ;;  %v1895_v0 = vcombine.high %v4494_v4, %v1851_v62 }
 0x27e   : > { %v4611_v26 = vrot.slane %v2928_v46, %v4040_v18 }
 0x27f   : > { %v1723_v60 = vrot.slane %v1715_v43, %v4028_v12  ;;  %v1730_v45 = vrot.slane %v1716_v50, %v4028_v12  ;;  %v1902_v58 = vrot.slane %v1894_v36, %v4028_v12  ;;  %v1909_v25 = vrot.slane %v1895_v0, %v4028_v12 }
 0x280   : > { %5106 = vst [vmem:[#allocation20_spill] sm:$0xff] %v4611_v26  ;;  %v2258_v5 = vpop.permute.xlu0 %2257  ;;  %v1853_v59 = vpop.permute.xlu1 %1852 }
 0x281   : > { %v1763_v17 = vcombine.low %v1707_v20, %v1723_v60  ;;  %v1764_v27 = vcombine.high %v1707_v20, %v1723_v60  ;;  %v1779_v4 = vcombine.low %v1714_v16, %v1730_v45  ;;  %v1780_v62 = vcombine.high %v1714_v16, %v1730_v45 }
 0x282   : > { %v2301_v43 = vcombine.low %v4513_v10, %v2258_v5  ;;  %v2302_v50 = vcombine.high %v4513_v10, %v2258_v5  ;;  %v1910_v46 = vcombine.low %v4515_v39, %v1853_v59  ;;  %v1911_v35 = vcombine.high %v4515_v39, %v1853_v59 }
 0x283   : > { %v4626_v42 = vrot.slane %v1763_v17, %v4040_v18  ;;  %v4629_v36 = vrot.slane %v1764_v27, %v4040_v18  ;;  %v4632_v20 = vrot.slane %v1779_v4, %v4040_v18  ;;  %v4635_v45 = vrot.slane %v1780_v62, %v4040_v18 }
 0x284   : > { %v2309_v10 = vrot.slane %v2301_v43, %v4028_v12  ;;  %v1918_v16 = vrot.slane %v1910_v46, %v4028_v12  ;;  %v1925_v39 = vrot.slane %v1911_v35, %v4028_v12  ;;  %v2453_v60 = vpop.permute.xlu0 %2452  ;;  %v2260_v0 = vpop.permute.xlu1 %2259  ;;  %v2316_v4 = vrot.slane %v2302_v50, %v4028_v12 }
 0x285   : > { %5109 = vst [vmem:[#allocation23_spill] sm:$0xff] %v4626_v42  ;;  %v2496_v27 = vcombine.low %v4518_v57, %v2453_v60  ;;  %v2497_v59 = vcombine.high %v4518_v57, %v2453_v60  ;;  %v2317_v17 = vcombine.low %v4520_v52, %v2260_v0  ;;  %v2318_v35 = vcombine.high %v4520_v52, %v2260_v0 }
 0x286   : > { %v1958_v62 = vcombine.low %v1902_v58, %v1918_v16  ;;  %v1959_v28 = vcombine.high %v1902_v58, %v1918_v16  ;;  %v1974_v43 = vcombine.low %v1909_v25, %v1925_v39  ;;  %v1975_v47 = vcombine.high %v1909_v25, %v1925_v39 }
 0x287   : > { %v2504_v46 = vrot.slane %v2496_v27, %v4028_v12  ;;  %v2325_v41 = vrot.slane %v2317_v17, %v4028_v12  ;;  %v2511_v50 = vrot.slane %v2497_v59, %v4028_v12  ;;  %v2332_v25 = vrot.slane %v2318_v35, %v4028_v12 }
 0x288   : > { %v4650_v5 = vrot.slane %v1958_v62, %v4040_v18  ;;  %v4653_v23 = vrot.slane %v1959_v28, %v4040_v18  ;;  %v4656_v57 = vrot.slane %v1974_v43, %v4040_v18  ;;  %v2852_v58 = vpop.permute.xlu0 %2851  ;;  %v2455_v16 = vpop.permute.xlu1 %2454  ;;  %v4667_v62 = vrot.slane %v1975_v47, %v4040_v18 }
 0x289   : > { %v2365_v39 = vcombine.low %v2309_v10, %v2325_v41  ;;  %v2366_v60 = vcombine.high %v2309_v10, %v2325_v41  ;;  %v2895_v52 = vcombine.low %v4524_v48, %v2852_v58  ;;  %v2896_v27 = vcombine.high %v4524_v48, %v2852_v58 }
 0x28a   : > { %v2512_v28 = vcombine.low %v4526_v6, %v2455_v16  ;;  %v2513_v17 = vcombine.high %v4526_v6, %v2455_v16  ;;  %v2381_v41 = vcombine.low %v2316_v4, %v2332_v25  ;;  %v2382_v10 = vcombine.high %v2316_v4, %v2332_v25 }
 0x28b   : > { %v4670_v59 = vrot.slane %v2365_v39, %v4040_v18  ;;  %v4673_v43 = vrot.slane %v2366_v60, %v4040_v18  ;;  %v2903_v35 = vrot.slane %v2895_v52, %v4028_v12  ;;  %v2910_v16 = vrot.slane %v2896_v27, %v4028_v12 }
 0x28c   : > { %v2520_v0 = vrot.slane %v2512_v28, %v4028_v12  ;;  %v2527_v48 = vrot.slane %v2513_v17, %v4028_v12  ;;  %v3043_v58 = vpop.permute.xlu0 %3042  ;;  %v2854_v26 = vpop.permute.xlu1 %2853  ;;  %v4679_v6 = vrot.slane %v2381_v41, %v4040_v18  ;;  %v1797_v39 = vcombine.low %v4593_v61, %v4629_v36 }
 0x28d   : > { %v5110_v28 = vcombine.low %v4140_v13, %v4231_v29  ;;  %v1796_v41 = vcombine.high %v4590_v15, %v4626_v42  ;;  %v2911_v22 = vcombine.low %v4549_v9, %v2854_v26  ;;  %v2912_v47 = vcombine.high %v4549_v9, %v2854_v26 }
 0x28e   : > { %v2560_v4 = vcombine.low %v2504_v46, %v2520_v0  ;;  %v2561_v25 = vcombine.high %v2504_v46, %v2520_v0  ;;  %v2576_v60 = vcombine.low %v2511_v50, %v2527_v48  ;;  %v2577_v52 = vcombine.high %v2511_v50, %v2527_v48 }
 0x28f   : > { %v3674_v17 = vpack.i.bf16 %v1797_v39, %v5110_v28  ;;  %v4694_v27 = vrot.slane %v2382_v10, %v4040_v18  ;;  %v5111_v9 = vcombine.high %v4143_v14, %v4234_v31  ;;  %v2919_v10 = vrot.slane %v2911_v22, %v4028_v12 }
 0x290   : > { %v4697_v8 = vrot.slane %v2560_v4, %v4040_v18  ;;  %v4700_v46 = vrot.slane %v2561_v25, %v4040_v18  ;;  %v4703_v50 = vrot.slane %v2576_v60, %v4040_v18  ;;  %v3047_v0 = vpop.permute.xlu0 %3046  ;;  %v3045_v48 = vpop.permute.xlu1 %3044  ;;  %v2926_v39 = vrot.slane %v2912_v47, %v4028_v12 }
 0x291   : > { %3675 = vrot.lane.b32.xlu1 %v3674_v17, %s3826_s9  ;;  %v3669_v26 = vpack.i.bf16 %v1796_v41, %v5111_v9  ;;  %v1799_v4 = vcombine.low %v4597_v53, %v4632_v20  ;;  %v1798_v60 = vcombine.high %v4593_v61, %v4629_v36  ;;  %v3090_v28 = vcombine.low %v3043_v58, %v3047_v0 }
 0x292   : > { %v3091_v42 = vcombine.high %v3043_v58, %v3047_v0  ;;  %v4718_v17 = vrot.slane %v2577_v52, %v4040_v18  ;;  %v2959_v22 = vcombine.low %v2903_v35, %v2919_v10  ;;  %v2960_v41 = vcombine.high %v2903_v35, %v2919_v10 }
 0x293   : > { %3670 = vrot.lane.b32.xlu0 %v3669_v26, %s3827_s10  ;;  %v2975_v47 = vcombine.low %v2910_v16, %v2926_v39  ;;  %v2976_v9 = vcombine.high %v2910_v16, %v2926_v39  ;;  %v5112_v31 = vcombine.low %v4195_v51, %v4237_v32  ;;  %v5113_v25 = vcombine.high %v4140_v13, %v4231_v29 }
 0x294   : > { %v4728_v36 = vrot.slane %v3090_v28, %v4028_v12  ;;  %v3049_v58 = vpop.permute.xlu1 %3048  ;;  %v4731_v52 = vrot.slane %v2959_v22, %v4040_v18  ;;  %v4734_v0 = vrot.slane %v2960_v41, %v4040_v18  ;;  %v4740_v16 = vrot.slane %v3091_v42, %v4028_v12 }
 0x295   : > { %v3684_v14 = vpack.i.bf16 %v1799_v4, %v5112_v31  ;;  %v3679_v61 = vpack.i.bf16 %v1798_v60, %v5113_v25  ;;  %v4737_v35 = vrot.slane %v2975_v47, %v4040_v18  ;;  %v1991_v13 = vcombine.high %v4541_v11, %v4650_v5 }
 0x296   : > { %v1800_v29 = vcombine.high %v4597_v53, %v4632_v20  ;;  %v3106_v31 = vcombine.low %v3045_v48, %v3049_v58  ;;  %v3107_v26 = vcombine.high %v3045_v48, %v3049_v58  ;;  %v2991_v10 = vcombine.low %v4603_v3, %v4731_v52 }
 0x297   : > { %3685 = vrot.lane.b32.xlu1 %v3684_v14, %s3828_s11  ;;  %3680 = vrot.lane.b32.xlu0 %v3679_v61, %s3829_s12  ;;  %v1992_v42 = vcombine.low %v4547_v37, %v4653_v23  ;;  %v1801_v14 = vcombine.low %v4600_v49, %v4635_v45  ;;  %v1993_v39 = vcombine.high %v4547_v37, %v4653_v23 }
 0x298   : > { %v5114_v53 = vcombine.high %v4166_v34, %v4258_v55  ;;  %v5115_v48 = vcombine.high %v4195_v51, %v4237_v32  ;;  %v4763_v25 = vrot.slane %v3106_v31, %v4028_v12  ;;  %v4766_v60 = vrot.slane %v3107_v26, %v4028_v12 }
 0x299   : > { %v5116_v28 = vcombine.low %v4169_v38, %v4263_v54  ;;  %v5117_v23 = vcombine.low %v4198_v56, %v4266_v21  ;;  %v5118_v41 = vcombine.high %v4169_v38, %v4263_v54  ;;  %v1802_v51 = vcombine.high %v4600_v49, %v4635_v45 }
 0x29a   : > { %v3694_v20 = vpack.i.bf16 %v5114_v53, %v1991_v13  ;;  %v3689_v4 = vpack.i.bf16 %v1800_v29, %v5115_v48  ;;  %v2990_v32 = vrot.slane %v2976_v9, %v4040_v18  ;;  %v3154_v12 = vcombine.low %v4728_v36, %v4763_v25  ;;  %v5124_v53 = vld [vmem:[#allocation16_spill] sm:$0xff] }
 0x29b   : > { %v3704_v22 = vpack.i.bf16 %v5116_v28, %v1992_v42  ;;  %v3699_v37 = vpack.i.bf16 %v1801_v14, %v5117_v23  ;;  %v3714_v47 = vpack.i.bf16 %v5118_v41, %v1993_v39  ;;  %v3170_v61 = vcombine.low %v4740_v16, %v4766_v60  ;;  %v5126_v23 = vld [vmem:[#allocation20_spill] sm:$0xff] }
 0x29c   : > { %3695 = vrot.lane.b32.xlu1 %v3694_v20, %s3827_s10  ;;  %v3171_v58 = vcombine.high %v4740_v16, %v4766_v60  ;;  %3690 = vrot.lane.b32.xlu0 %v3689_v4, %s3830_s13  ;;  %v5119_v38 = vcombine.high %v4198_v56, %v4266_v21  ;;  %v1995_v49 = vcombine.high %v4555_v33, %v4656_v57 }
 0x29d   : > { %v1994_v45 = vcombine.low %v4555_v33, %v4656_v57  ;;  %v1996_v9 = vcombine.low %v4561_v2, %v4667_v62  ;;  %v2398_v13 = vcombine.high %v4564_v40, %v4670_v59  ;;  %v2593_v16 = vcombine.high %v4577_v24, %v4697_v8 }
 0x29e   : > { %v3709_v54 = vpack.i.bf16 %v1802_v51, %v5119_v38  ;;  %v1997_v29 = vcombine.high %v4561_v2, %v4667_v62  ;;  %v2399_v56 = vcombine.low %v4567_v7, %v4673_v43  ;;  %v5120_v21 = vcombine.high %v4172_v30, %v4269_v63  ;;  %v5127_v51 = vld [vmem:[#allocation3_spill] sm:$0xff]  ;;  %v5128_v38 = vld [vmem:[#allocation5_spill] sm:$0xff] }
 0x29f   : > { %v5121_v33 = vcombine.low %v4172_v30, %v4269_v63  ;;  %v5122_v26 = vcombine.low %v4179_v44, %v4272_v1  ;;  %v2594_v14 = vcombine.low %v4581_v19, %v4700_v46  ;;  %v3739_v2 = vpack.i.bf16 %v2593_v16, %v2398_v13  ;;  %v5125_v30 = vld [vmem:[#allocation18_spill] sm:$0xff]  ;;  %v5133_v13 = vld [vmem:[#allocation7_spill] sm:$0xff] }
 0x2a0   : > { %v3724_v31 = vpack.i.bf16 %v5120_v21, %v1995_v49  ;;  %3705 = vrot.lane.b32.xlu1 %v3704_v22, %s3826_s9  ;;  %v5123_v62 = vcombine.high %v4179_v44, %v4272_v1  ;;  %v2401_v20 = vcombine.low %v5124_v53, %v4679_v6  ;;  %v2596_v63 = vcombine.low %v5125_v30, %v4703_v50  ;;  %v5131_v49 = vld [vmem:[#allocation19_spill] sm:$0xff] }
 0x2a1   : > { %v3719_v57 = vpack.i.bf16 %v5121_v33, %v1994_v45  ;;  %v3729_v42 = vpack.i.bf16 %v5122_v26, %v1996_v9  ;;  %3700 = vrot.lane.b32.xlu0 %v3699_v37, %s3831_s14  ;;  %v3744_v48 = vpack.i.bf16 %v2594_v14, %v2399_v56  ;;  %v2400_v4 = vcombine.high %v4567_v7, %v4673_v43  ;;  %v5132_v9 = vld [vmem:[#allocation6_spill] sm:$0xff] }
 0x2a2   : > { %v3734_v39 = vpack.i.bf16 %v5123_v62, %v1997_v29  ;;  %v2595_v60 = vcombine.high %v4581_v19, %v4700_v46  ;;  %v2992_v44 = vcombine.high %v4603_v3, %v4731_v52  ;;  %v3754_v1 = vpack.i.bf16 %v2596_v63, %v2401_v20  ;;  %v5130_v19 = vld [vmem:[#allocation17_spill] sm:$0xff] }
 0x2a3   : > { %v2402_v28 = vcombine.high %v5124_v53, %v4679_v6  ;;  %v2597_v22 = vcombine.high %v5125_v30, %v4703_v50  ;;  %v2993_v37 = vcombine.low %v5126_v23, %v4734_v0  ;;  %v5129_v7 = vcombine.high %v5127_v51, %v5128_v38  ;;  %v5137_v53 = vld [vmem:[#allocation22_spill] sm:$0xff]  ;;  %v5139_v63 = vld [vmem:[#allocation9_spill] sm:$0xff] }
 0x2a4   : > { %v3749_v41 = vpack.i.bf16 %v2595_v60, %v2400_v4  ;;  %v2403_v46 = vcombine.low %v5130_v19, %v4694_v27  ;;  %v2598_v45 = vcombine.low %v5131_v49, %v4718_v17  ;;  %3715 = vrot.lane.b32.xlu1 %v3714_v47, %s3829_s12  ;;  %v5134_v50 = vcombine.low %v5132_v9, %v5133_v13  ;;  %v5135_v47 = vld [vmem:[#allocation21_spill] sm:$0xff] }
 0x2a5   : > { %v3764_v43 = vpack.i.bf16 %v2992_v44, %v5129_v7  ;;  %v3759_v6 = vpack.i.bf16 %v2597_v22, %v2402_v28  ;;  %v2994_v29 = vcombine.high %v5126_v23, %v4734_v0  ;;  %v2404_v56 = vcombine.high %v5130_v19, %v4694_v27  ;;  %3710 = vrot.lane.b32.xlu0 %v3709_v54, %s3832_s15  ;;  %v5138_v54 = vld [vmem:[#allocation8_spill] sm:$0xff]  ;;  %v5146_v7 = vld [vmem:[#allocation11_spill] sm:$0xff] }
 0x2a6   : > { %v3774_v16 = vpack.i.bf16 %v2993_v37, %v5134_v50  ;;  %v3769_v21 = vpack.i.bf16 %v2598_v45, %v2403_v46  ;;  %v2599_v33 = vcombine.high %v5131_v49, %v4718_v17  ;;  %v2996_v26 = vcombine.high %v5135_v47, %v4737_v35  ;;  %v5142_v28 = vld [vmem:[#allocation12_spill] sm:$0xff]  ;;  %v5145_v37 = vld [vmem:[#allocation10_spill] sm:$0xff] }
 0x2a7   : > { %v2995_v14 = vcombine.low %v5135_v47, %v4737_v35  ;;  %v5136_v62 = vcombine.high %v5132_v9, %v5133_v13  ;;  %v2998_v20 = vcombine.high %v5137_v53, %v2990_v32  ;;  %v2997_v27 = vcombine.low %v5137_v53, %v2990_v32  ;;  %v5143_v35 = vld [vmem:[#allocation15_spill] sm:$0xff] }
 0x2a8   : > { %v3779_v30 = vpack.i.bf16 %v2599_v33, %v2404_v56  ;;  %v5140_v4 = vcombine.high %v5138_v54, %v5139_v63  ;;  %v5141_v17 = vcombine.low %v5138_v54, %v5139_v63  ;;  %v5144_v22 = vcombine.low %v5142_v28, %v5143_v35  ;;  %3725 = vrot.lane.b32.xlu1 %v3724_v31, %s3830_s13  ;;  %v5151_v56 = vld [vmem:[#allocation14_spill] sm:$0xff] }
 0x2a9   : > { %v3784_v0 = vpack.i.bf16 %v2994_v29, %v5136_v62  ;;  %v5147_v19 = vcombine.high %v5145_v37, %v5146_v7  ;;  %v5148_v46 = vcombine.low %v5145_v37, %v5146_v7  ;;  %v4882_v45 = vrot.slane %v3154_v12, %v4040_v18  ;;  %3720 = vrot.lane.b32.xlu0 %v3719_v57, %s3828_s11  ;;  %v5150_v29 = vld [vmem:[#allocation13_spill] sm:$0xff] }
 0x2aa   : > { %v3794_v60 = vpack.i.bf16 %v2996_v26, %v5140_v4  ;;  %v3789_v44 = vpack.i.bf16 %v2995_v14, %v5141_v17  ;;  %v3146_v23 = vrot.slane %v5144_v22, %v4040_v18  ;;  %v3178_v9 = vrot.slane %v3170_v61, %v4040_v18  ;;  %v5156_v4 = vld [vmem:[#allocation2_spill] sm:$0xff] }
 0x2ab   : > { %v3804_v32 = vpack.i.bf16 %v2998_v20, %v5147_v19  ;;  %v3799_v49 = vpack.i.bf16 %v2997_v27, %v5148_v46  ;;  %v5149_v13 = vcombine.high %v5142_v28, %v5143_v35  ;;  %v3185_v50 = vrot.slane %v3171_v58, %v4040_v18 }
 0x2ac   : > { %v5152_v33 = vcombine.low %v5150_v29, %v5151_v56  ;;  %v3190_v26 = vcombine.low %v3146_v23, %v3178_v9  ;;  %v3191_v12 = vcombine.high %v3146_v23, %v3178_v9  ;;  %3730 = vrot.lane.b32.xlu1 %v3729_v42, %s3831_s14  ;;  %v3155_v58 = vcombine.high %v4728_v36, %v4763_v25 }
 0x2ad   : > { %v3153_v31 = vrot.slane %v5149_v13, %v4040_v18  ;;  %3740 = vrot.lane.b32.xlu0 %v3739_v2, %s3827_s10  ;;  %v5153_v42 = vcombine.high %v5150_v29, %v5151_v56  ;;  %v3833_v25 = vmov 0  }
 0x2ae   : > { %v4895_v47 = vrot.slane %v5152_v33, %v4040_v18  ;;  %v3169_v57 = vrot.slane %v3155_v58, %v4040_v18  ;;  %3809 = vset.pattern.permute.xlu1 %v3833_v25  ;;  %3810 = vset.pattern.permute.xlu0 %v3833_v25 }
 0x2af   : > { %v3192_v14 = vcombine.low %v3153_v31, %v3185_v50  ;;  %v3193_v62 = vcombine.high %v3153_v31, %v3185_v50  ;;  %v3137_v2 = vrot.slane %v5153_v42, %v4040_v18  ;;  %v3230_v18 = vld [vmem:[%s5042_s4] sm:$0xff] }
 0x2b0   : > { %v3186_v61 = vcombine.low %v4895_v47, %v4882_v45  ;;  %3735 = vrot.lane.b32.xlu1 %v3734_v39, %s3832_s15 }
 0x2b1   : > { %3745 = vrot.lane.b32.xlu0 %v3744_v48, %s3826_s9  ;;  %v3188_v39 = vcombine.low %v3137_v2, %v3169_v57  ;;  %v3187_v48 = vcombine.high %v4895_v47, %v4882_v45  ;;  %v3189_v36 = vcombine.high %v3137_v2, %v3169_v57 }
 0x2b4   : > { %3755 = vrot.lane.b32.xlu1 %v3754_v1, %s3828_s11 }
 0x2b5   : > { %3750 = vrot.lane.b32.xlu0 %v3749_v41, %s3829_s12 }
 0x2b8   : > { %3765 = vrot.lane.b32.xlu1 %v3764_v43, %s3827_s10 }
 0x2b9   : > { %3760 = vrot.lane.b32.xlu0 %v3759_v6, %s3830_s13 }
 0x2bc   : > { %3775 = vrot.lane.b32.xlu1 %v3774_v16, %s3826_s9 }
 0x2bd   : > { %3770 = vrot.lane.b32.xlu0 %v3769_v21, %s3831_s14 }
 0x2c0   : > { %3785 = vrot.lane.b32.xlu1 %v3784_v0, %s3829_s12 }
 0x2c1   : > { %3780 = vrot.lane.b32.xlu0 %v3779_v30, %s3832_s15  ;;  %v5154_v30 = vld [vmem:[#allocation23_spill] sm:$0xff] }
 0x2c2   : > { %v5155_v54 = vcombine.low %v4590_v15, %v5154_v30 }
 0x2c4   : > { %3795 = vrot.lane.b32.xlu1 %v3794_v60, %s3830_s13  ;;  %v5157_v60 = vld [vmem:[#allocation4_spill] sm:$0xff] }
 0x2c5   : > { %3790 = vrot.lane.b32.xlu0 %v3789_v44, %s3828_s11  ;;  %v5158_v17 = vcombine.low %v5156_v4, %v5157_v60  ;;  %v5161_v4 = vmov 0.0|0.0  }
 0x2c8   : > { %3805 = vrot.lane.b32.xlu1 %v3804_v32, %s3832_s15 }
 0x2c9   : > { %3800 = vrot.lane.b32.xlu0 %v3799_v49, %s3831_s14 }
 0x2cc   : > { %3199 = vrot.lane.b32.xlu1 %v3188_v39, %s3826_s9 }
 0x2cd   : > { %3195 = vrot.lane.b32.xlu0 %v3187_v48, %s3827_s10 }
 0x2d0   : > { %3207 = vrot.lane.b32.xlu1 %v3190_v26, %s3828_s11 }
 0x2d1   : > { %3203 = vrot.lane.b32.xlu0 %v3189_v36, %s3829_s12 }
 0x2d4   : > { %3215 = vrot.lane.b32.xlu1 %v3192_v14, %s3831_s14 }
 0x2d5   : > { %3211 = vrot.lane.b32.xlu0 %v3191_v12, %s3830_s13 }
 0x2d8   : > { %3233 = vperm.xlu1 %3809, %v3230_v18  }
 0x2d9   : > { %3219 = vrot.lane.b32.xlu0 %v3193_v62, %s3832_s15 }
 0x303   : > { %v3676_v1 = vpop.permute.xlu1 %3675 }
 0x304   : > { %v3678_v53 = vunpack.i.h.bf16 %v3676_v1  ;;  %v3677_v20 = vunpack.i.l.bf16 %v3676_v1 }
 0x305   : > { %v3671_v41 = vpop.permute.xlu0 %3670 }
 0x306   : > { %v3673_v16 = vunpack.i.h.bf16 %v3671_v41  ;;  %v3672_v21 = vunpack.i.l.bf16 %v3671_v41 }
 0x308   : > { %v1831_v63 = vsel %vm1621_vm6, %v5155_v54, %v3673_v16  ;;  %v1622_v44 = vsel %vm1621_vm6, %v5158_v17, %v3672_v21 }
 0x309   : > { %v3686_v43 = vpop.permute.xlu1 %3685  ;;  %v3681_v6 = vpop.permute.xlu0 %3680  ;;  %v1624_v7 = vsel %vm1623_vm7, %v1622_v44, %v3677_v20  ;;  %v1832_v19 = vsel %vm1623_vm7, %v1831_v63, %v3678_v53  ;;  %v5160_v20 = vcombine.low %v4541_v11, %v4650_v5 }
 0x30a   : > { %v3683_v28 = vunpack.i.h.bf16 %v3681_v6  ;;  %v3682_v35 = vunpack.i.l.bf16 %v3681_v6  ;;  %v3688_v23 = vunpack.i.h.bf16 %v3686_v43  ;;  %v3687_v37 = vunpack.i.l.bf16 %v3686_v43 }
 0x30c   : > { %v1626_v15 = vsel %vm1625_vm8, %v1624_v7, %v3682_v35  ;;  %v1833_v46 = vsel %vm1625_vm8, %v1832_v19, %v3683_v28 }
 0x30d   : > { %v1628_v29 = vsel %vm1627_vm9, %v1626_v15, %v3687_v37  ;;  %v1834_v56 = vsel %vm1627_vm9, %v1833_v46, %v3688_v23 }
 0x30e   : > { %v3696_v0 = vpop.permute.xlu1 %3695  ;;  %v3691_v27 = vpop.permute.xlu0 %3690 }
 0x30f   : > { %v3693_v49 = vunpack.i.h.bf16 %v3691_v27  ;;  %v3692_v9 = vunpack.i.l.bf16 %v3691_v27  ;;  %v3698_v58 = vunpack.i.h.bf16 %v3696_v0  ;;  %v3697_v57 = vunpack.i.l.bf16 %v3696_v0 }
 0x310   : > { %v5159_v0 = vcombine.low %v4166_v34, %v4258_v55 }
 0x311   : > { %v1630_v26 = vsel %vm1629_vm10, %v1628_v29, %v3692_v9  ;;  %v1835_v12 = vsel %vm1629_vm10, %v1834_v56, %v3693_v49  ;;  %v2026_v27 = vsel %vm1621_vm6, %v5160_v20, %v3697_v57  ;;  %v5162_v57 = vcombine.low %v4577_v24, %v4697_v8 }
 0x312   : > { %v3706_v22 = vpop.permute.xlu1 %3705  ;;  %v2238_v53 = vsel %vm1621_vm6, %v5159_v0, %v3698_v58 }
 0x313   : > { %v3701_v32 = vpop.permute.xlu0 %3700  ;;  %v3708_v39 = vunpack.i.h.bf16 %v3706_v22  ;;  %v3707_v48 = vunpack.i.l.bf16 %v3706_v22 }
 0x314   : > { %v3703_v13 = vunpack.i.h.bf16 %v3701_v32  ;;  %v3702_v31 = vunpack.i.l.bf16 %v3701_v32 }
 0x315   : > { %v2027_v30 = vsel %vm1623_vm7, %v2026_v27, %v3707_v48  ;;  %v2239_v54 = vsel %vm1623_vm7, %v2238_v53, %v3708_v39 }
 0x316   : > { %v3716_v50 = vpop.permute.xlu1 %3715  ;;  %v1632_v42 = vsel %vm1631_vm11, %v1630_v26, %v3702_v31  ;;  %v1836_v2 = vsel %vm1631_vm11, %v1835_v12, %v3703_v13 }
 0x317   : > { %v3711_v33 = vpop.permute.xlu0 %3710  ;;  %v3718_v1 = vunpack.i.h.bf16 %v3716_v50  ;;  %v3717_v41 = vunpack.i.l.bf16 %v3716_v50 }
 0x318   : > { %v3713_v14 = vunpack.i.h.bf16 %v3711_v33  ;;  %v3712_v62 = vunpack.i.l.bf16 %v3711_v33 }
 0x319   : > { %v2028_v60 = vsel %vm1625_vm8, %v2027_v30, %v3717_v41  ;;  %v2240_v17 = vsel %vm1625_vm8, %v2239_v54, %v3718_v1 }
 0x31a   : > { %v1634_v36 = vsel %vm1633_vm12, %v1632_v42, %v3712_v62  ;;  %v1837_v25 = vsel %vm1633_vm12, %v1836_v2, %v3713_v14  ;;  %v3726_v18 = vpop.permute.xlu1 %3725  ;;  %v5163_v2 = vcombine.low %v4564_v40, %v4670_v59 }
 0x31b   : > { %v3635_v43 = vpack.c.bf16 %v1837_v25, %v1634_v36  ;;  %v3721_v6 = vpop.permute.xlu0 %3720  ;;  %v3728_v34 = vunpack.i.h.bf16 %v3726_v18  ;;  %v3727_v55 = vunpack.i.l.bf16 %v3726_v18 }
 0x31c   : > { %v3723_v16 = vunpack.i.h.bf16 %v3721_v6  ;;  %v3722_v21 = vunpack.i.l.bf16 %v3721_v6 }
 0x31d   : > { %3636 = vmatpush3.bf16.msra.mxu0 %v3635_v43 }
 0x31e   : > { %v3731_v63 = vpop.permute.xlu1 %3730  ;;  %3637 = vmatprep.subr.bf16.mxu0 %v5161_v4  ;;  %v2241_v28 = vsel %vm1627_vm9, %v2240_v17, %v3723_v16  ;;  %v2029_v11 = vsel %vm1627_vm9, %v2028_v60, %v3722_v21 }
 0x31f   : > { %v3741_v44 = vpop.permute.xlu0 %3740  ;;  %v3733_v5 = vunpack.i.h.bf16 %v3731_v63  ;;  %v3732_v35 = vunpack.i.l.bf16 %v3731_v63  ;;  %v2030_v23 = vsel %vm1629_vm10, %v2029_v11, %v3727_v55  ;;  %v2242_v37 = vsel %vm1629_vm10, %v2241_v28, %v3728_v34 }
 0x320   : > { %v3743_v29 = vunpack.i.h.bf16 %v3741_v44  ;;  %v3742_v56 = vunpack.i.l.bf16 %v3741_v44 }
 0x321   : > { %v2031_v15 = vsel %vm1631_vm11, %v2030_v23, %v3732_v35  ;;  %v2243_v46 = vsel %vm1631_vm11, %v2242_v37, %v3733_v5  ;;  %v5164_v37 = vcombine.low %v5127_v51, %v5128_v38 }
 0x322   : > { %v3736_v22 = vpop.permute.xlu1 %3735  ;;  %v2628_v42 = vsel %vm1621_vm6, %v5162_v57, %v3743_v29  ;;  %v2433_v39 = vsel %vm1621_vm6, %v5163_v2, %v3742_v56 }
 0x323   : > { %v3738_v7 = vunpack.i.h.bf16 %v3736_v22  ;;  %v3737_v19 = vunpack.i.l.bf16 %v3736_v22  ;;  %v3746_v32 = vpop.permute.xlu0 %3745 }
 0x324   : > { %v3748_v33 = vunpack.i.h.bf16 %v3746_v32  ;;  %v3747_v26 = vunpack.i.l.bf16 %v3746_v32 }
 0x325   : > { %v2032_v49 = vsel %vm1633_vm12, %v2031_v15, %v3737_v19  ;;  %v2244_v9 = vsel %vm1633_vm12, %v2243_v46, %v3738_v7 }
 0x326   : > { %v3638_v13 = vpack.c.bf16 %v2244_v9, %v2032_v49  ;;  %v3756_v31 = vpop.permute.xlu1 %3755  ;;  %v2434_v48 = vsel %vm1623_vm7, %v2433_v39, %v3747_v26  ;;  %v2629_v36 = vsel %vm1623_vm7, %v2628_v42, %v3748_v33 }
 0x327   : > { %v3751_v50 = vpop.permute.xlu0 %3750  ;;  %v3758_v25 = vunpack.i.h.bf16 %v3756_v31  ;;  %v3757_v18 = vunpack.i.l.bf16 %v3756_v31 }
 0x328   : > { %3639 = vmatpush3.bf16.msra.mxu0 %v3638_v13  ;;  %v3753_v14 = vunpack.i.h.bf16 %v3751_v50  ;;  %v3752_v62 = vunpack.i.l.bf16 %v3751_v50 }
 0x329   : > { %3640 = vmatprep.subr.bf16.mxu0 %v5161_v4 }
 0x32a   : > { %v3766_v12 = vpop.permute.xlu1 %3765  ;;  %v2435_v41 = vsel %vm1625_vm8, %v2434_v48, %v3752_v62  ;;  %v2630_v43 = vsel %vm1625_vm8, %v2629_v36, %v3753_v14 }
 0x32b   : > { %v3761_v58 = vpop.permute.xlu0 %3760  ;;  %v2436_v40 = vsel %vm1627_vm9, %v2435_v41, %v3757_v18  ;;  %v2631_v59 = vsel %vm1627_vm9, %v2630_v43, %v3758_v25  ;;  %v3768_v53 = vunpack.i.h.bf16 %v3766_v12  ;;  %v3767_v20 = vunpack.i.l.bf16 %v3766_v12 }
 0x32c   : > { %v3763_v6 = vunpack.i.h.bf16 %v3761_v58  ;;  %v3762_v8 = vunpack.i.l.bf16 %v3761_v58 }
 0x32d   : > { %v3027_v23 = vsel %vm1621_vm6, %v2991_v10, %v3768_v53  ;;  %v2832_v7 = vsel %vm1621_vm6, %v5164_v37, %v3767_v20 }
 0x32e   : > { %v3776_v1 = vpop.permute.xlu1 %3775  ;;  %v2437_v27 = vsel %vm1629_vm10, %v2436_v40, %v3762_v8  ;;  %v2632_v30 = vsel %vm1629_vm10, %v2631_v59, %v3763_v6 }
 0x32f   : > { %v3771_v24 = vpop.permute.xlu0 %3770  ;;  %v3778_v63 = vunpack.i.h.bf16 %v3776_v1  ;;  %v3777_v60 = vunpack.i.l.bf16 %v3776_v1  ;;  %v5165_v1 = vmov 0.0  }
 0x330   : > { %v3773_v16 = vunpack.i.h.bf16 %v3771_v24  ;;  %v3772_v21 = vunpack.i.l.bf16 %v3771_v24 }
 0x331   : > { %v2833_v15 = vsel %vm1623_vm7, %v2832_v7, %v3777_v60  ;;  %v3028_v46 = vsel %vm1623_vm7, %v3027_v23, %v3778_v63 }
 0x332   : > { %v3786_v0 = vpop.permute.xlu1 %3785  ;;  %v2438_v55 = vsel %vm1631_vm11, %v2437_v27, %v3772_v21  ;;  %v2633_v44 = vsel %vm1631_vm11, %v2632_v30, %v3773_v16 }
 0x333   : > { %v3781_v54 = vpop.permute.xlu0 %3780  ;;  %v3788_v28 = vunpack.i.h.bf16 %v3786_v0  ;;  %v3787_v11 = vunpack.i.l.bf16 %v3786_v0 }
 0x334   : > { %v3783_v17 = vunpack.i.h.bf16 %v3781_v54  ;;  %v3782_v34 = vunpack.i.l.bf16 %v3781_v54 }
 0x335   : > { %v2834_v13 = vsel %vm1625_vm8, %v2833_v15, %v3787_v11  ;;  %v3029_v31 = vsel %vm1625_vm8, %v3028_v46, %v3788_v28 }
 0x336   : > { %v2439_v5 = vsel %vm1633_vm12, %v2438_v55, %v3782_v34  ;;  %v2634_v35 = vsel %vm1633_vm12, %v2633_v44, %v3783_v17  ;;  %v3796_v22 = vpop.permute.xlu1 %3795 }
 0x337   : > { %v3641_v19 = vpack.c.bf16 %v2634_v35, %v2439_v5  ;;  %v3791_v32 = vpop.permute.xlu0 %3790  ;;  %v3798_v3 = vunpack.i.h.bf16 %v3796_v22  ;;  %v3797_v52 = vunpack.i.l.bf16 %v3796_v22 }
 0x338   : > { %v3793_v49 = vunpack.i.h.bf16 %v3791_v32  ;;  %v3792_v9 = vunpack.i.l.bf16 %v3791_v32 }
 0x339   : > { %3642 = vmatpush3.bf16.msra.mxu0 %v3641_v19 }
 0x33a   : > { %v3030_v10 = vsel %vm1627_vm9, %v3029_v31, %v3793_v49  ;;  %v2835_v51 = vsel %vm1627_vm9, %v2834_v13, %v3792_v9  ;;  %v3806_v38 = vpop.permute.xlu1 %3805  ;;  %3643 = vmatprep.subr.bf16.mxu0 %v5161_v4 }
 0x33b   : > { %v3808_v50 = vunpack.i.h.bf16 %v3806_v38  ;;  %v3807_v29 = vunpack.i.l.bf16 %v3806_v38  ;;  %v3801_v56 = vpop.permute.xlu0 %3800  ;;  %v2836_v12 = vsel %vm1629_vm10, %v2835_v51, %v3797_v52  ;;  %v3031_v14 = vsel %vm1629_vm10, %v3030_v10, %v3798_v3 }
 0x33c   : > { %v3803_v33 = vunpack.i.h.bf16 %v3801_v56  ;;  %v3802_v26 = vunpack.i.l.bf16 %v3801_v56 }
 0x33e   : > { %v2837_v62 = vsel %vm1631_vm11, %v2836_v12, %v3802_v26  ;;  %v3032_v58 = vsel %vm1631_vm11, %v3031_v14, %v3803_v33  ;;  %v3200_v57 = vpop.permute.xlu1 %3199 }
 0x33f   : > { %v3196_v42 = vpop.permute.xlu0 %3195  ;;  %v2838_v2 = vsel %vm1633_vm12, %v2837_v62, %v3807_v29  ;;  %v3033_v39 = vsel %vm1633_vm12, %v3032_v58, %v3808_v50 }
 0x340   : > { %v3222_v4 = vsel %vm1621_vm6, %v3186_v61, %v3196_v42  ;;  %v3644_v48 = vpack.c.bf16 %v3033_v39, %v2838_v2  ;;  %v3229_v61 = vld [vmem:[%s5041_s3] sm:$0xff] }
 0x341   : > { %v3223_v25 = vsel %vm1623_vm7, %v3222_v4, %v3200_v57 }
 0x342   : > { %3645 = vmatpush3.bf16.msra.mxu0 %v3644_v48  ;;  %v3208_v36 = vpop.permute.xlu1 %3207 }
 0x343   : > { %v3204_v18 = vpop.permute.xlu0 %3203  ;;  %3597 = vmatprep.subr.mxu0 %v5165_v1 }
 0x344   : > { %v3224_v41 = vsel %vm1625_vm8, %v3223_v25, %v3204_v18 }
 0x345   : > { %v3225_v43 = vsel %vm1627_vm9, %v3224_v41, %v3208_v36 }
 0x346   : > { %v3216_v8 = vpop.permute.xlu1 %3215 }
 0x347   : > { %v3212_v6 = vpop.permute.xlu0 %3211 }
 0x348   : > { %v3226_v24 = vsel %vm1629_vm10, %v3225_v43, %v3212_v6 }
 0x349   : > { %v3227_v45 = vsel %vm1631_vm11, %v3226_v24, %v3216_v8 }
 0x34b   : > { %v3220_v47 = vpop.permute.xlu0 %3219 }
 0x34c   : > { %v3228_v16 = vsel %vm1633_vm12, %v3227_v45, %v3220_v47 }
 0x34d   : > { %3598 = vmatpush3.msra.mxu0 %v3228_v16 }
 0x34e   : > { %3600 = vmatmul.mubr.msk.f32.vlgmr.msra.gmra.mrb[14].mxu0 %vm3236_vm13, %v3229_v61 }
 0x357   : > { %v3234_v21 = vpop.permute.xlu1 %3233 }
 0x421   : > { %v3306_v40 = vpop.f32.mrb[14].mxu0 }
 0x422   : > { %v3307_v59 = vadd.f32 %v3306_v40, %v3234_v21  ;;  %v3601_v0 = vpop.f32.mrb[15].mxu0 }
 0x424   : > { %v3310_v53 = vmax.f32 %v3307_v59, 0.0 }
 0x426   : > { %v3311_v20 = vpack.c.bf16 %v3310_v53, %v3310_v53 }
 0x428   : > { %3313 = vst.msk [vmem:[%s222_s25] sm:$0xf] %vm3312_vm14, %v3311_v20 }
 0x429 PF: > { %s15_s18 = sadd.s32 1, %s3817_s18  }
 0x42a   : > { %p12_p4 = scmp.ge.s32.totalorder %s15_s18, 6  }
 0x42c   :  { %14 = sbr.rel (!%p12_p4) target bundleno = 1 (0x1), region = 70 }

// kernel: decoder_forward.3
= control target key start
LH: loop header
LB: loop body
LE: loop exit
PB: predicated region body
PF: predicated region fallthrough
CT: control target
= control target key end

     0   :  { %s5885_s18 = smov 0   ;;  %s8530_s0 = inlined_call_operand.vmem [shape: bf16[4,8,8,8], index: 0, kind: input, shape index: {}]   ;;  %s8531_s1 = inlined_call_operand.vmem [shape: f32[18,8], index: 1, kind: input, shape index: {}, may-alias: {1,2}]   ;;  %s8532_s2 = inlined_call_operand.vmem [shape: f32[18,8], index: 2, kind: input, shape index: {}, may-alias: {1,2}]   ;;  %s8533_s3 = inlined_call_operand.vmem [shape: f32[3,72], index: 3, kind: input, shape index: {}]   ;;  %s8534_s4 = inlined_call_operand.vmem [shape: f32[3,1], index: 4, kind: input, shape index: {}]   ;;  %s8535_s5 = inlined_call_operand.vmem [shape: f32[4,3,256], index: 5, kind: output, shape index: {}]  }
   0x1 LB: > { %s5155_s19 = sadd.s32 4294967295, %s5838_s18   ;;  %p5159_p0 = scmp.ge.s32.totalorder %s5838_s18, 1  ;;  %s5838_s18 = sphi %s5885_s18, %s15_s18  }
   0x2   : > { %p187_p1 = scmp.lt.s32.totalorder %s5838_s18, 5 }
   0x4   : > { %p188_p2 = pnand %p5159_p0, %p187_p1 }
   0x6   : > { %191 = sbr.rel (%p188_p2) target bundleno = 1243 (0x4db), region = 40 }
   0xd   : > { %v241_v0 = vld [vmem:[%s8532_s2] sm:$0xff]  ;;  %v242_v1 = vld [vmem:[%s8532_s2 + $0x8] sm:$0xff]  ;;  %vm244_vm0 = vcmask 64512   ;;  %v5840_v2 = vmov 0.0|0.0   ;;  %p215_p3 = scmp.lt.s32.totalorder %s5155_s19, 3  ;;  %vm5841_vm2 = vmmov 0  }
   0xe   : > { %5470 = vmatprep.subr.bf16.mxu0 %v5840_v2  ;;  %v5471_v3 = vpack.c.bf16 %v242_v1, %v241_v0  ;;  %vm5901_vm1 = vmpackc.low %vm244_vm0, %vm244_vm0  ;;  %5474 = vmatprep.subr.bf16.mxu1 %v5840_v2  ;;  %v5842_v5 = vmov 0.0   ;;  %v243_v7 = vld [vmem:[%s8532_s2 + $0x10] sm:$0x3]  ;;  %v5985_v19 = vld [vmem:[%s8531_s1] sm:$0xff]  ;;  %s5843_s11 = smov 127   ;;  %vm2643_vm3 = vcmask 1046528  }
   0xf   : > { %5316 = vmatprep.mubr.msk.f32.mxu0 %vm5841_vm2, %v5842_v5  ;;  %5325 = vmatprep.mubr.msk.f32.mxu1 %vm5841_vm2, %v5842_v5  ;;  %s9194_s19 = smov (!%p215_p3, %s5155_s19), 3  ;;  %v5990_v20 = vld [vmem:[%s8531_s1 + $0x10] sm:$0x3]  ;;  %v6002_v25 = vld [vmem:[%s8531_s1 + $0x8] sm:$0xff]  ;;  %vm3822_vm4 = vcmask 1045504   ;;  %s5844_s12 = smov 126  }
  0x10   : > { %5473 = vmatpush3.bf16.xpose.msk.msra.mxu0 %vm5901_vm1, %v5471_v3  ;;  %5477 = vmatpush3.bf16.xpose.msk.msra.mxu1 %vm5901_vm1, %v5471_v3  ;;  %s5225_s24 = sshll.u32 %s9194_s19, 5  ;;  %v5845_v1 = vmov 1983009808   ;;  %s5847_s13 = smov 48   ;;  %vm1818_vm5 = vcmask 130048   ;;  %vm1820_vm6 = vcmask 261120  }
  0x11   : > { %5314 = vmatprep.subr.mxu0 %v5842_v5  ;;  %5323 = vmatprep.subr.mxu1 %v5842_v5  ;;  %s5921_s27 = scalar_lea.vmem %s8530_s0, %s5225_s24  ;;  %s5848_s14 = smov 16   ;;  %vm1822_vm7 = vcmask 392192   ;;  %vm1824_vm8 = vcmask 523264   ;;  %vm1826_vm9 = vcmask 654336   ;;  %vm1828_vm10 = vcmask 785408  }
  0x12   : > { %v5228_v6 = vld [vmem:[%s5921_s27] sm:$0xff]   ;;  %v5243_v10 = vld [vmem:[%s5921_s27 + $0x8] sm:$0xff]   ;;  %v5244_v13 = vld [vmem:[%s5921_s27 + $0x10] sm:$0xff]   ;;  %s5849_s15 = smov 64   ;;  %s5850_s16 = smov 32   ;;  %vm1830_vm11 = vcmask 916480  }
  0x13   : > { %v5229_v8 = vunpack.c.l.bf16 %v5228_v6  ;;  %v5230_v9 = vunpack.c.h.bf16 %v5228_v6  ;;  %v5233_v11 = vunpack.c.l.bf16 %v5243_v10  ;;  %v5234_v12 = vunpack.c.h.bf16 %v5243_v10  ;;  %v5245_v16 = vld [vmem:[%s5921_s27 + $0x18] sm:$0xff]   ;;  %s5851_s17 = smov 96   ;;  %s5852_s20 = smov 80  }
  0x14   : > { %v5237_v14 = vunpack.c.l.bf16 %v5244_v13  ;;  %v5238_v15 = vunpack.c.h.bf16 %v5244_v13  ;;  %v5241_v17 = vunpack.c.l.bf16 %v5245_v16  ;;  %v5242_v18 = vunpack.c.h.bf16 %v5245_v16  ;;  %s5853_s21 = smov 112   ;;  %s5226_s26 = sshll.u32 %s9194_s19, 3 }
  0x15   : > { %vm5008_vm12 = vcmask 588800   ;;  %s224_s29 = scalar_lea.vmem %s8535_s5, %s5226_s26 }
  0x18   : > { %5315 = vmatpush3.xpose.msk.msra.mxu0 %vm244_vm0, %v243_v7  ;;  %5324 = vmatpush3.xpose.msk.msra.mxu1 %vm244_vm0, %v243_v7 }
  0x19   : > { %5478 = vmatprep.subr.bf16.mxu0 %v5840_v2  ;;  %5482 = vmatprep.subr.bf16.mxu1 %v5840_v2 }
  0x1b   : > { %5317 = vmatmul.mubr.msk.f32.vlgmr.msra.gmra.mrb[0].mxu0 %vm244_vm0, %v5229_v8  ;;  %5326 = vmatmul.mubr.msk.f32.vlgmr.msra.gmra.mrb[0].mxu1 %vm244_vm0, %v5230_v9 }
  0x1c   : > { %5481 = vmatpush3.bf16.xpose.msk.msra.mxu0 %vm5901_vm1, %v5471_v3  ;;  %5485 = vmatpush3.bf16.xpose.msk.msra.mxu1 %vm5901_vm1, %v5471_v3 }
  0x1d   : > { %5332 = vmatprep.subr.mxu0 %v5842_v5  ;;  %5334 = vmatprep.mubr.msk.f32.mxu0 %vm5841_vm2, %v5842_v5 }
  0x1e   : > { %5341 = vmatprep.subr.mxu1 %v5842_v5  ;;  %5343 = vmatprep.mubr.msk.f32.mxu1 %vm5841_vm2, %v5842_v5 }
  0x24   : > { %5333 = vmatpush3.xpose.msk.msra.mxu0 %vm244_vm0, %v243_v7  ;;  %5342 = vmatpush3.xpose.msk.msra.mxu1 %vm244_vm0, %v243_v7 }
  0x25   : > { %5486 = vmatprep.subr.bf16.mxu0 %v5840_v2  ;;  %5490 = vmatprep.subr.bf16.mxu1 %v5840_v2 }
  0x27   : > { %5335 = vmatmul.mubr.msk.f32.vlgmr.msra.gmra.mrb[2].mxu0 %vm244_vm0, %v5233_v11  ;;  %5344 = vmatmul.mubr.msk.f32.vlgmr.msra.gmra.mrb[2].mxu1 %vm244_vm0, %v5234_v12 }
  0x28   : > { %5489 = vmatpush3.bf16.xpose.msk.msra.mxu0 %vm5901_vm1, %v5471_v3  ;;  %5493 = vmatpush3.bf16.xpose.msk.msra.mxu1 %vm5901_vm1, %v5471_v3 }
  0x29   : > { %5350 = vmatprep.subr.mxu0 %v5842_v5  ;;  %5359 = vmatprep.subr.mxu1 %v5842_v5 }
  0x2a   : > { %5352 = vmatprep.mubr.msk.f32.mxu0 %vm5841_vm2, %v5842_v5  ;;  %5361 = vmatprep.mubr.msk.f32.mxu1 %vm5841_vm2, %v5842_v5 }
  0x30   : > { %5351 = vmatpush3.xpose.msk.msra.mxu0 %vm244_vm0, %v243_v7  ;;  %5360 = vmatpush3.xpose.msk.msra.mxu1 %vm244_vm0, %v243_v7 }
  0x31   : > { %5494 = vmatprep.subr.bf16.mxu0 %v5840_v2  ;;  %5498 = vmatprep.subr.bf16.mxu1 %v5840_v2  ;;  %v1493_v2 = vunpack.c.l.s4 %v5845_v1 }
  0x33   : > { %5353 = vmatmul.mubr.msk.f32.vlgmr.msra.gmra.mrb[4].mxu0 %vm244_vm0, %v5237_v14  ;;  %5362 = vmatmul.mubr.msk.f32.vlgmr.msra.gmra.mrb[4].mxu1 %vm244_vm0, %v5238_v15  ;;  %v1494_v13 = vunpack.c.0.s8 %v1493_v2 }
  0x34   : > { %5497 = vmatpush3.bf16.xpose.msk.msra.mxu0 %vm5901_vm1, %v5471_v3  ;;  %5501 = vmatpush3.bf16.xpose.msk.msra.mxu1 %vm5901_vm1, %v5471_v3  ;;  %v1495_v3 = vlaneseq }
  0x35   : > { %5368 = vmatprep.subr.mxu0 %v5842_v5  ;;  %5377 = vmatprep.subr.mxu1 %v5842_v5 }
  0x36   : > { %5370 = vmatprep.mubr.msk.f32.mxu0 %vm5841_vm2, %v5842_v5  ;;  %5379 = vmatprep.mubr.msk.f32.mxu1 %vm5841_vm2, %v5842_v5  ;;  %v6157_v14 = vshrl.u32 %v1495_v3, 7 }
  0x3c   : > { %5369 = vmatpush3.xpose.msk.msra.mxu0 %vm244_vm0, %v243_v7  ;;  %5378 = vmatpush3.xpose.msk.msra.mxu1 %vm244_vm0, %v243_v7 }
  0x3d   : > { %5382 = vmatprep.subr.mxu0 %v5842_v5  ;;  %5518 = vmatprep.subr.mxu1 %v5842_v5 }
  0x3f   : > { %5371 = vmatmul.mubr.msk.f32.vlgmr.msra.gmra.mrb[6].mxu0 %vm244_vm0, %v5241_v17  ;;  %5380 = vmatmul.mubr.msk.f32.vlgmr.msra.gmra.mrb[6].mxu1 %vm244_vm0, %v5242_v18 }
  0x40   : > { %5384 = vmatprep.mubr.msk.f32.mxu0 %vm5841_vm2, %v5842_v5  ;;  %5390 = vmatprep.mubr.msk.f32.mxu1 %vm5841_vm2, %v5842_v5 }
  0xee   : > { %v323_v21 = vpop.f32.mrb[0].mxu0  ;;  %v396_v22 = vpop.f32.mrb[0].mxu1 }
  0xef   : > { %v5318_v23 = vpop.f32.mrb[1].mxu0  ;;  %5383 = vmatpush3.msra.mxu0 %v323_v21  ;;  %5519 = vmatpush3.msra.mxu1 %v323_v21  ;;  %v5327_v24 = vpop.f32.mrb[1].mxu1 }
  0xf0   : > { %5385 = vmatmul.mubr.msk.f32.vlgmr.msra.gmra.mrb[8].mxu0 %vm244_vm0, %v5985_v19  ;;  %5391 = vmatmul.mubr.msk.f32.vlgmr.msra.gmra.mrb[8].mxu1 %vm244_vm0, %v5990_v20 }
  0xf1   : > { %5393 = vmatprep.subr.mxu1 %v5842_v5  ;;  %5387 = vmatprep.mubr.msk.f32.mxu0 %vm5841_vm2, %v5842_v5 }
  0xf2   : > { %5394 = vmatpush3.msra.mxu1 %v396_v22  ;;  %5395 = vmatprep.mubr.msk.f32.mxu1 %vm5841_vm2, %v5842_v5 }
  0xf3   : > { %5404 = vmatprep.subr.mxu0 %v5842_v5  ;;  %5415 = vmatprep.subr.mxu1 %v5842_v5 }
  0xf4   : > { %5388 = vmatmul.mubr.msk.f32.gmra.mrb[10].mxu0 %vm244_vm0, %v6002_v25  ;;  %5396 = vmatmul.mubr.msk.f32.vlgmr.msra.gmra.mrb[10].mxu1 %vm244_vm0, %v5985_v19 }
  0xf5   : > { %5398 = vmatprep.mubr.msk.f32.mxu1 %vm5841_vm2, %v5842_v5  ;;  %5406 = vmatprep.mubr.msk.f32.mxu0 %vm5841_vm2, %v5842_v5 }
  0xf8   : > { %5399 = vmatmul.mubr.msk.f32.gmra.mrb[12].mxu1 %vm244_vm0, %v6002_v25 }
  0xf9   : > { %5401 = vmatprep.mubr.msk.f32.mxu1 %vm5841_vm2, %v5842_v5 }
  0xfa   : > { %v469_v26 = vpop.f32.mrb[2].mxu0  ;;  %v542_v27 = vpop.f32.mrb[2].mxu1 }
  0xfb   : > { %5405 = vmatpush3.msra.mxu0 %v469_v26  ;;  %5416 = vmatpush3.msra.mxu1 %v542_v27  ;;  %v5336_v28 = vpop.f32.mrb[3].mxu0  ;;  %v5345_v29 = vpop.f32.mrb[3].mxu1  ;;  %v6180_v27 = vsub.s32 %v1494_v13, %v6157_v14 }
  0xfc   : > { %5402 = vmatmul.mubr.msk.f32.gmra.mrb[14].mxu1 %vm244_vm0, %v5990_v20  ;;  %5407 = vmatmul.mubr.msk.f32.vlgmr.msra.gmra.mrb[12].mxu0 %vm244_vm0, %v5985_v19 }
  0xfd   : > { %5409 = vmatprep.mubr.msk.f32.mxu0 %vm5841_vm2, %v5842_v5  ;;  %5417 = vmatprep.mubr.msk.f32.mxu1 %vm5841_vm2, %v5842_v5 }
  0xfe   : > { %5426 = vmatprep.subr.mxu0 %v5842_v5  ;;  %5437 = vmatprep.subr.mxu1 %v5842_v5 }
 0x100   : > { %5410 = vmatmul.mubr.msk.f32.gmra.mrb[14].mxu0 %vm244_vm0, %v6002_v25  ;;  %5418 = vmatmul.mubr.msk.f32.vlgmr.msra.gmra.mrb[16].mxu1 %vm244_vm0, %v5985_v19 }
 0x101   : > { %5412 = vmatprep.mubr.msk.f32.mxu0 %vm5841_vm2, %v5842_v5  ;;  %5420 = vmatprep.mubr.msk.f32.mxu1 %vm5841_vm2, %v5842_v5 }
 0x104   : > { %5413 = vmatmul.mubr.msk.f32.gmra.mrb[16].mxu0 %vm244_vm0, %v5990_v20  ;;  %5421 = vmatmul.mubr.msk.f32.gmra.mrb[18].mxu1 %vm244_vm0, %v6002_v25 }
 0x105   : > { %5423 = vmatprep.mubr.msk.f32.mxu1 %vm5841_vm2, %v5842_v5  ;;  %5428 = vmatprep.mubr.msk.f32.mxu0 %vm5841_vm2, %v5842_v5 }
 0x106   : > { %v615_v30 = vpop.f32.mrb[4].mxu0  ;;  %v688_v31 = vpop.f32.mrb[4].mxu1 }
 0x107   : > { %5427 = vmatpush3.msra.mxu0 %v615_v30  ;;  %5438 = vmatpush3.msra.mxu1 %v688_v31  ;;  %v5354_v32 = vpop.f32.mrb[5].mxu0  ;;  %v5363_v33 = vpop.f32.mrb[5].mxu1 }
 0x108   : > { %5424 = vmatmul.mubr.msk.f32.gmra.mrb[20].mxu1 %vm244_vm0, %v5990_v20  ;;  %5429 = vmatmul.mubr.msk.f32.vlgmr.msra.gmra.mrb[18].mxu0 %vm244_vm0, %v5985_v19 }
 0x109   : > { %5439 = vmatprep.mubr.msk.f32.mxu1 %vm5841_vm2, %v5842_v5  ;;  %5431 = vmatprep.mubr.msk.f32.mxu0 %vm5841_vm2, %v5842_v5 }
 0x10a   : > { %5448 = vmatprep.subr.mxu0 %v5842_v5  ;;  %5459 = vmatprep.subr.mxu1 %v5842_v5 }
 0x10c   : > { %5440 = vmatmul.mubr.msk.f32.vlgmr.msra.gmra.mrb[22].mxu1 %vm244_vm0, %v5985_v19  ;;  %5432 = vmatmul.mubr.msk.f32.gmra.mrb[20].mxu0 %vm244_vm0, %v6002_v25 }
 0x10d   : > { %5442 = vmatprep.mubr.msk.f32.mxu1 %vm5841_vm2, %v5842_v5  ;;  %5434 = vmatprep.mubr.msk.f32.mxu0 %vm5841_vm2, %v5842_v5 }
 0x110   : > { %5443 = vmatmul.mubr.msk.f32.gmra.mrb[24].mxu1 %vm244_vm0, %v6002_v25  ;;  %5435 = vmatmul.mubr.msk.f32.gmra.mrb[22].mxu0 %vm244_vm0, %v5990_v20 }
 0x111   : > { %5445 = vmatprep.mubr.msk.f32.mxu1 %vm5841_vm2, %v5842_v5  ;;  %5450 = vmatprep.mubr.msk.f32.mxu0 %vm5841_vm2, %v5842_v5 }
 0x112   : > { %v761_v34 = vpop.f32.mrb[6].mxu0  ;;  %v834_v35 = vpop.f32.mrb[6].mxu1 }
 0x113   : > { %5449 = vmatpush3.msra.mxu0 %v761_v34  ;;  %5460 = vmatpush3.msra.mxu1 %v834_v35  ;;  %v5372_v36 = vpop.f32.mrb[7].mxu0  ;;  %v5381_v37 = vpop.f32.mrb[7].mxu1 }
 0x114   : > { %5446 = vmatmul.mubr.msk.f32.gmra.mrb[26].mxu1 %vm244_vm0, %v5990_v20  ;;  %5451 = vmatmul.mubr.msk.f32.vlgmr.msra.gmra.mrb[24].mxu0 %vm244_vm0, %v5985_v19 }
 0x115   : > { %5461 = vmatprep.mubr.msk.f32.mxu1 %vm5841_vm2, %v5842_v5  ;;  %5453 = vmatprep.mubr.msk.f32.mxu0 %vm5841_vm2, %v5842_v5 }
 0x118   : > { %5462 = vmatmul.mubr.msk.f32.vlgmr.msra.gmra.mrb[28].mxu1 %vm244_vm0, %v5985_v19  ;;  %5454 = vmatmul.mubr.msk.f32.gmra.mrb[26].mxu0 %vm244_vm0, %v6002_v25 }
 0x119   : > { %5464 = vmatprep.mubr.msk.f32.mxu1 %vm5841_vm2, %v5842_v5  ;;  %5456 = vmatprep.mubr.msk.f32.mxu0 %vm5841_vm2, %v5842_v5 }
 0x11c   : > { %5465 = vmatmul.mubr.msk.f32.gmra.mrb[30].mxu1 %vm244_vm0, %v6002_v25  ;;  %5457 = vmatmul.mubr.msk.f32.gmra.mrb[28].mxu0 %vm244_vm0, %v5990_v20 }
 0x11d   : > { %5467 = vmatprep.mubr.msk.f32.mxu1 %vm5841_vm2, %v5842_v5  ;;  %5076 = vmatprep.mubr.f32.mxu0 %v5842_v5 }
 0x120   : > { %5468 = vmatmul.mubr.msk.f32.gmra.mrb[32].mxu1 %vm244_vm0, %v5990_v20 }
 0x1c3   : > { %v6097_v38 = vpop.f32.mrb[8].mxu0  ;;  %v926_v39 = vpop.f32.mrb[8].mxu1 }
 0x1c4   : > { %1855 = vrot.lane.b32.xlu1 %v6097_v38, %s5843_s11  ;;  %v5386_v40 = vpop.f32.mrb[9].mxu0  ;;  %v5392_v41 = vpop.f32.mrb[9].mxu1  ;;  %v2647_v42 = vrot.slane %v926_v39, 1  ;;  %v3826_v43 = vrot.slane %v926_v39, 2  ;;  %v2644_v49 = vrot.slane %v6097_v38, 1  ;;  %v3823_v51 = vrot.slane %v6097_v38, 2 }
 0x1c7   : > { %v6101_v44 = vpop.f32.mrb[10].mxu0  ;;  %v6103_v45 = vpop.f32.mrb[10].mxu1 }
 0x1c8   : > { %2245 = vrot.lane.b32.xlu1 %v6097_v38, %s5844_s12  ;;  %1857 = vrot.lane.b32.xlu0 %v6101_v44, %s5843_s11  ;;  %v5389_v46 = vpop.f32.mrb[11].mxu0  ;;  %v5397_v47 = vpop.f32.mrb[11].mxu1  ;;  %v2645_v48 = vrot.slane %v6101_v44, 1  ;;  %v3824_v50 = vrot.slane %v6101_v44, 2  ;;  %v2649_v52 = vrot.slane %v6103_v45, 1  ;;  %v3828_v53 = vrot.slane %v6103_v45, 2 }
 0x1ca   : > { %v6116_v54 = vsel %vm2643_vm3, %v2645_v48, %v2647_v42  ;;  %v6119_v55 = vsel %vm2643_vm3, %v2644_v49, %v2645_v48  ;;  %v6122_v56 = vsel %vm3822_vm4, %v3824_v50, %v3826_v43  ;;  %v6125_v57 = vsel %vm3822_vm4, %v3823_v51, %v3824_v50 }
 0x1cb   : > { %v6127_v58 = vpop.f32.mrb[12].mxu1 }
 0x1cc   : > { %1859 = vrot.lane.b32.xlu1 %v6103_v45, %s5843_s11  ;;  %2249 = vrot.lane.b32.xlu0 %v6103_v45, %s5844_s12  ;;  %v5400_v59 = vpop.f32.mrb[13].mxu1  ;;  %v2650_v60 = vrot.slane %v6127_v58, 1  ;;  %v3829_v61 = vrot.slane %v6127_v58, 2 }
 0x1ce   : > { %v6136_v62 = vsel %vm2643_vm3, %v2649_v52, %v2650_v60  ;;  %v6139_v63 = vsel %vm3822_vm4, %v3828_v53, %v3829_v61 }
 0x1cf   : > { %v6141_v0 = vpop.f32.mrb[12].mxu0  ;;  %v1006_v4 = vpop.f32.mrb[14].mxu1 }
 0x1d0   : > { %2247 = vrot.lane.b32.xlu1 %v6101_v44, %s5844_s12  ;;  %1861 = vrot.lane.b32.xlu0 %v6127_v58, %s5843_s11  ;;  %v2652_v7 = vrot.slane %v1006_v4, 1  ;;  %v3831_v8 = vrot.slane %v1006_v4, 2  ;;  %v5403_v9 = vpop.f32.mrb[15].mxu1  ;;  %v5408_v10 = vpop.f32.mrb[13].mxu0  ;;  %v2654_v17 = vrot.slane %v6141_v0, 1  ;;  %v3833_v18 = vrot.slane %v6141_v0, 2 }
 0x1d2   : > { %v6152_v11 = vsel %vm2643_vm3, %v2650_v60, %v2652_v7  ;;  %v6155_v12 = vsel %vm3822_vm4, %v3829_v61, %v3831_v8 }
 0x1d3   : > { %v6159_v15 = vpop.f32.mrb[14].mxu0  ;;  %v6161_v16 = vpop.f32.mrb[16].mxu1 }
 0x1d4   : > { %2251 = vrot.lane.b32.xlu0 %v6127_v58, %s5844_s12  ;;  %v5411_v23 = vpop.f32.mrb[15].mxu0  ;;  %v5419_v24 = vpop.f32.mrb[17].mxu1  ;;  %3044 = vrot.lane.b32.xlu1 %v6116_v54, %s5843_s11  ;;  %v2655_v25 = vrot.slane %v6159_v15, 1  ;;  %v3834_v26 = vrot.slane %v6159_v15, 2  ;;  %v2659_v31 = vrot.slane %v6161_v16, 1  ;;  %v3838_v39 = vrot.slane %v6161_v16, 2 }
 0x1d6   : > { %v6185_v30 = vsel %vm2643_vm3, %v2654_v17, %v2655_v25  ;;  %v6189_v32 = vsel %vm3822_vm4, %v3833_v18, %v3834_v26 }
 0x1d7   : > { %v1086_v28 = vpop.f32.mrb[16].mxu0  ;;  %v6182_v29 = vpop.f32.mrb[18].mxu1  ;;  %v2700_v40 = vcombine.low %v6119_v55, %v6185_v30  ;;  %v2701_v41 = vcombine.high %v6119_v55, %v6185_v30  ;;  %v3879_v43 = vcombine.low %v6125_v57, %v6189_v32  ;;  %v3880_v46 = vcombine.high %v6125_v57, %v6189_v32 }
 0x1d8   : > { %v2657_v33 = vrot.slane %v1086_v28, 1  ;;  %3046 = vrot.lane.b32.xlu0 %v6136_v62, %s5843_s11  ;;  %v5422_v36 = vpop.f32.mrb[19].mxu1  ;;  %v5414_v37 = vpop.f32.mrb[17].mxu0  ;;  %3434 = vrot.lane.b32.xlu1 %v6116_v54, %s5844_s12  ;;  %v2660_v42 = vrot.slane %v6182_v29, 1  ;;  %v3839_v47 = vrot.slane %v6182_v29, 2  ;;  %v3836_v49 = vrot.slane %v1086_v28, 2 }
 0x1d9   : > { %v6216_v52 = vrot.slane %v2700_v40, %v6180_v27  ;;  %v6219_v53 = vrot.slane %v2701_v41, %v6180_v27  ;;  %v6231_v4 = vrot.slane %v3879_v43, %v6180_v27 }
 0x1da   : > { %v6211_v48 = vsel %vm2643_vm3, %v2655_v25, %v2657_v33  ;;  %v6222_v59 = vsel %vm2643_vm3, %v2659_v31, %v2660_v42  ;;  %v6236_v8 = vsel %vm3822_vm4, %v3838_v39, %v3839_v47  ;;  %v6257_v25 = vrot.slane %v3880_v46, %v6180_v27 }
 0x1db   : > { %v1166_v50 = vpop.f32.mrb[20].mxu1  ;;  %v6213_v51 = vpop.f32.mrb[18].mxu0  ;;  %8757 = vst [vmem:[#allocation3_spill] sm:$0xff] %v6219_v53  ;;  %v2716_v2 = vcombine.low %v6136_v62, %v6222_v59  ;;  %v2717_v3 = vcombine.high %v6136_v62, %v6222_v59  ;;  %v2836_v9 = vcombine.low %v6116_v54, %v6211_v48  ;;  %v2837_v10 = vcombine.high %v6116_v54, %v6211_v48 }
 0x1dc   : > { %8756 = vst [vmem:[#allocation2_spill] sm:$0xff] %v6213_v51  ;;  %v2662_v60 = vrot.slane %v1166_v50, 1  ;;  %3436 = vrot.lane.b32.xlu0 %v6136_v62, %s5844_s12  ;;  %v5425_v61 = vpop.f32.mrb[21].mxu1  ;;  %v5430_v1 = vpop.f32.mrb[19].mxu0  ;;  %v3841_v7 = vrot.slane %v1166_v50, 2  ;;  %3042 = vrot.lane.b32.xlu1 %v6119_v55, %s5843_s11  ;;  %v3895_v17 = vcombine.low %v6139_v63, %v6236_v8  ;;  %v3896_v18 = vcombine.high %v6139_v63, %v6236_v8 }
 0x1dd   : > { %v6243_v13 = vrot.slane %v2716_v2, %v6180_v27  ;;  %v6246_v62 = vrot.slane %v2717_v3, %v6180_v27  ;;  %8761 = vst [vmem:[#allocation7_spill] sm:$0xff] %v6257_v25  ;;  %v6260_v54 = vrot.slane %v2836_v9, %v6180_v27  ;;  %v6266_v31 = vsel %vm3822_vm4, %v3834_v26, %v3836_v49 }
 0x1de   : > { %v6263_v28 = vsel %vm2643_vm3, %v2660_v42, %v2662_v60  ;;  %v6281_v26 = vrot.slane %v3895_v17, %v6180_v27  ;;  %v6284_v42 = vrot.slane %v3896_v18, %v6180_v27  ;;  %v6291_v49 = vrot.slane %v2837_v10, %v6180_v27 }
 0x1df   : > { %8758 = vst [vmem:[#allocation4_spill] sm:$0xff] %v6246_v62  ;;  %v6252_v23 = vpop.f32.mrb[22].mxu1  ;;  %v6254_v24 = vpop.f32.mrb[20].mxu0  ;;  %v2852_v43 = vcombine.low %v6152_v11, %v6263_v28  ;;  %v2853_v46 = vcombine.high %v6152_v11, %v6263_v28  ;;  %v4015_v50 = vcombine.low %v6122_v56, %v6266_v31  ;;  %v6298_v60 = vsel %vm3822_vm4, %v3839_v47, %v3841_v7 }
 0x1e0   : > { %8759 = vst [vmem:[#allocation5_spill] sm:$0xff] %v6252_v23  ;;  %8760 = vst [vmem:[#allocation6_spill] sm:$0xff] %v6254_v24  ;;  %4225 = vrot.lane.b32.xlu0 %v6139_v63, %s5843_s11  ;;  %v5441_v33 = vpop.f32.mrb[23].mxu1  ;;  %v5433_v36 = vpop.f32.mrb[21].mxu0  ;;  %3432 = vrot.lane.b32.xlu1 %v6119_v55, %s5844_s12  ;;  %v4016_v55 = vcombine.high %v6122_v56, %v6266_v31  ;;  %v3843_v35 = vrot.slane %v6213_v51, 2  ;;  %v3844_v37 = vrot.slane %v6254_v24, 2 }
 0x1e1   : > { %8762 = vst [vmem:[#allocation8_spill] sm:$0xff] %v6284_v42  ;;  %8763 = vst [vmem:[#allocation9_spill] sm:$0xff] %v6291_v49  ;;  %v6316_v18 = vrot.slane %v2852_v43, %v6180_v27  ;;  %v6319_v33 = vrot.slane %v2853_v46, %v6180_v27  ;;  %v2664_v36 = vrot.slane %v6213_v51, 1  ;;  %v6326_v9 = vrot.slane %v4015_v50, %v6180_v27 }
 0x1e2   : > { %8764 = vst [vmem:[#allocation10_spill] sm:$0xff] %v6298_v60  ;;  %v4032_v43 = vcombine.high %v6155_v12, %v6298_v60  ;;  %v6343_v41 = vrot.slane %v4016_v55, %v6180_v27  ;;  %v3848_v20 = vrot.slane %v6252_v23, 2 }
 0x1e3   : > { %v6300_v61 = vpop.f32.mrb[24].mxu1  ;;  %v6302_v1 = vpop.f32.mrb[22].mxu0  ;;  %8766 = vst [vmem:[#allocation12_spill] sm:$0xff] %v6319_v33  ;;  %8767 = vst [vmem:[#allocation13_spill] sm:$0xff] %v6326_v9 }
 0x1e4   : > { %8765 = vst [vmem:[#allocation11_spill] sm:$0xff] %v6300_v61  ;;  %4615 = vrot.lane.b32.xlu0 %v6139_v63, %s5844_s12  ;;  %v5444_v47 = vpop.f32.mrb[25].mxu1  ;;  %v2667_v7 = vrot.slane %v6302_v1, 1  ;;  %v5436_v17 = vpop.f32.mrb[23].mxu0  ;;  %4223 = vrot.lane.b32.xlu1 %v6122_v56, %s5843_s11  ;;  %v3846_v10 = vrot.slane %v6302_v1, 2  ;;  %v4031_v63 = vcombine.low %v6155_v12, %v6298_v60  ;;  %8769 = vst [vmem:[#allocation15_spill] sm:$0xff] %v6343_v41 }
 0x1e5   : > { %v6349_v39 = vrot.slane %v4032_v43, %v6180_v27  ;;  %v2665_v47 = vrot.slane %v6254_v24, 1  ;;  %v2670_v55 = vrot.slane %v6300_v61, 1 }
 0x1e6   : > { %v6346_v40 = vrot.slane %v4031_v63, %v6180_v27  ;;  %v2669_v63 = vrot.slane %v6252_v23, 1 }
 0x1e7   : > { %v1326_v50 = vpop.f32.mrb[26].mxu1  ;;  %v6340_v3 = vpop.f32.mrb[24].mxu0  ;;  %8771 = vst [vmem:[#allocation17_spill] sm:$0xff] %v6349_v39  ;;  %v6382_v34 = vsel %vm2643_vm3, %v2665_v47, %v2667_v7 }
 0x1e8   : > { %8768 = vst [vmem:[#allocation14_spill] sm:$0xff] %v6340_v3  ;;  %8770 = vst [vmem:[#allocation16_spill] sm:$0xff] %v6346_v40  ;;  %3048 = vrot.lane.b32.xlu0 %v6152_v11, %s5843_s11  ;;  %v2672_v17 = vrot.slane %v1326_v50, 1  ;;  %v5447_v2 = vpop.f32.mrb[27].mxu1  ;;  %v5452_v46 = vpop.f32.mrb[25].mxu0  ;;  %4221 = vrot.lane.b32.xlu1 %v6125_v57, %s5843_s11  ;;  %v3851_v19 = vrot.slane %v1326_v50, 2  ;;  %v6397_v7 = vsel %vm2643_vm3, %v2669_v63, %v2670_v55 }
 0x1e9   : > { %v6370_v46 = vsel %vm2643_vm3, %v2664_v36, %v2665_v47  ;;  %v3849_v2 = vrot.slane %v6300_v61, 2  ;;  %v6400_v47 = vsel %vm3822_vm4, %v3843_v35, %v3844_v37  ;;  %v2674_v63 = vrot.slane %v6340_v3, 1 }
 0x1eb   : > { %v6374_v22 = vpop.f32.mrb[28].mxu1  ;;  %v6376_v43 = vpop.f32.mrb[26].mxu0  ;;  %v6403_v50 = vsel %vm3822_vm4, %v3848_v20, %v3849_v2  ;;  %v3853_v20 = vrot.slane %v6340_v3, 2 }
 0x1ec   : > { %8772 = vst [vmem:[#allocation18_spill] sm:$0xff] %v6374_v22  ;;  %8773 = vst [vmem:[#allocation19_spill] sm:$0xff] %v6376_v43  ;;  %v1538_v36 = vcombine.low %v6252_v23, %v6374_v22  ;;  %3438 = vrot.lane.b32.xlu0 %v6152_v11, %s5844_s12  ;;  %v5463_v6 = vpop.f32.mrb[29].mxu1  ;;  %v1659_v5 = vcombine.high %v6254_v24, %v6376_v43  ;;  %v5455_v21 = vpop.f32.mrb[27].mxu0  ;;  %4613 = vrot.lane.b32.xlu1 %v6122_v56, %s5844_s12  ;;  %v2675_v35 = vrot.slane %v6376_v43, 1 }
 0x1ed   : > { %v6406_v6 = vsel %vm2643_vm3, %v2670_v55, %v2672_v17  ;;  %v6409_v11 = vsel %vm3822_vm4, %v3844_v37, %v3846_v10  ;;  %v6412_v21 = vsel %vm3822_vm4, %v3849_v2, %v3851_v19  ;;  %v2679_v39 = vrot.slane %v6374_v22, 1 }
 0x1ee   : > { %v6429_v41 = vsel %vm2643_vm3, %v2674_v63, %v2675_v35  ;;  %v3854_v25 = vrot.slane %v6376_v43, 2  ;;  %v3858_v33 = vrot.slane %v6374_v22, 2 }
 0x1ef   : > { %v6414_v1 = vpop.f32.mrb[30].mxu1  ;;  %v1406_v56 = vpop.f32.mrb[28].mxu0 }
 0x1f0   : > { %8774 = vst [vmem:[#allocation20_spill] sm:$0xff] %v6414_v1  ;;  %v1674_v17 = vcombine.low %v6300_v61, %v6414_v1  ;;  %v1675_v37 = vcombine.high %v6300_v61, %v6414_v1  ;;  %4227 = vrot.lane.b32.xlu0 %v6155_v12, %s5843_s11  ;;  %v5466_v19 = vpop.f32.mrb[31].mxu1  ;;  %v2677_v10 = vrot.slane %v1406_v56, 1  ;;  %v3856_v55 = vrot.slane %v1406_v56, 2  ;;  %v5458_v2 = vpop.f32.mrb[29].mxu0  ;;  %4611 = vrot.lane.b32.xlu1 %v6125_v57, %s5844_s12 }
 0x1f1   : > { %v2680_v42 = vrot.slane %v6414_v1, 1  ;;  %v3859_v49 = vrot.slane %v6414_v1, 2  ;;  %v6439_v56 = vsel %vm3822_vm4, %v3853_v20, %v3854_v25  ;;  %v5846_v1 = vmov 1934713408  }
 0x1f2   : > { %v6442_v57 = vsel %vm2643_vm3, %v2675_v35, %v2677_v10  ;;  %v6445_v63 = vsel %vm3822_vm4, %v3854_v25, %v3856_v55 }
 0x1f3   : > { %v1486_v62 = vpop.f32.mrb[32].mxu1  ;;  %v6436_v19 = vsel %vm2643_vm3, %v2679_v39, %v2680_v42  ;;  %v1557_v39 = vunpack.c.l.s4 %v5846_v1  ;;  %v6452_v61 = vsel %vm3822_vm4, %v3858_v33, %v3859_v49  ;;  %v8777_v33 = vcombine.low %v6213_v51, %v6340_v3 }
 0x1f4   : > { %v2682_v2 = vrot.slane %v1486_v62, 1  ;;  %4617 = vrot.lane.b32.xlu0 %v6155_v12, %s5844_s12  ;;  %v5469_v53 = vpop.f32.mrb[33].mxu1  ;;  %1863 = vrot.lane.b32.xlu1 %v6141_v0, %s5843_s11  ;;  %v3861_v35 = vrot.slane %v1486_v62, 2  ;;  %v8776_v62 = vcombine.low %v6097_v38, %v6141_v0 }
 0x1f5   : > { %v1558_v12 = vunpack.c.0.s8 %v1557_v39  ;;  %v8775_v53 = vcombine.low %v6103_v45, %v6161_v16  ;;  %v1530_v10 = vrot.slane %v8777_v33, %v6180_v27  ;;  %v8779_v39 = vcombine.high %v6101_v44, %v6159_v15 }
 0x1f6   : > { %v6455_v20 = vsel %vm2643_vm3, %v2680_v42, %v2682_v2  ;;  %v6466_v1 = vsel %vm3822_vm4, %v3859_v49, %v3861_v35  ;;  %v1498_v42 = vrot.slane %v8776_v62, %v6180_v27  ;;  %v8778_v49 = vcombine.high %v6097_v38, %v6141_v0 }
 0x1f7   : > { %v1514_v25 = vrot.slane %v8775_v53, %v6180_v27  ;;  %v6481_v55 = vsub.s32 %v1558_v12, %v6157_v14  ;;  %v6493_v35 = vrot.slane %v8779_v39, %v6180_v27  ;;  %v1546_v53 = vrot.slane %v1538_v36, %v6180_v27 }
 0x1f8   : > { %1865 = vrot.lane.b32.xlu0 %v6159_v15, %s5843_s11  ;;  %2253 = vrot.lane.b32.xlu1 %v6141_v0, %s5844_s12  ;;  %v6487_v2 = vrot.slane %v8778_v49, %v6180_v27  ;;  %v8780_v14 = vcombine.high %v6103_v45, %v6161_v16  ;;  %v8781_v38 = vcombine.high %v6127_v58, %v6182_v29 }
 0x1f9   : > { %v1555_v62 = vcombine.high %v1498_v42, %v1514_v25  ;;  %v8782_v33 = vcombine.high %v6213_v51, %v6340_v3  ;;  %v8783_v36 = vcombine.low %v6101_v44, %v6159_v15  ;;  %v8784_v45 = vcombine.high %v6252_v23, %v6374_v22 }
 0x1fa   : > { %v1521_v12 = vrot.slane %v8780_v14, %v6180_v27  ;;  %v6504_v0 = vrot.slane %v8781_v38, %v6180_v27  ;;  %v6521_v14 = vrot.slane %v1659_v5, %v6180_v27  ;;  %v1689_v38 = vrot.slane %v1675_v37, %v6180_v27 }
 0x1fb   : > { %v6510_v49 = vrot.slane %v8782_v33, %v6180_v27  ;;  %v1634_v39 = vrot.slane %v8783_v36, %v6180_v27  ;;  %v1587_v33 = vcombine.high %v1530_v10, %v1546_v53  ;;  %v8785_v44 = vcombine.low %v6127_v58, %v6182_v29 }
 0x1fc   : > { %2257 = vrot.lane.b32.xlu0 %v6161_v16, %s5844_s12  ;;  %1867 = vrot.lane.b32.xlu1 %v6161_v16, %s5843_s11  ;;  %v1553_v16 = vrot.slane %v8784_v45, %v6180_v27  ;;  %v8786_v45 = vcombine.low %v6254_v24, %v6376_v43  ;;  %v1682_v22 = vrot.slane %v1674_v17, %v6180_v27 }
 0x1fd   : > { %v1650_v36 = vrot.slane %v8785_v44, %v6180_v27  ;;  %v1554_v37 = vcombine.low %v1498_v42, %v1514_v25  ;;  %v1569_v58 = vrot.slane %v1555_v62, %v6481_v55  ;;  %v1601_v44 = vrot.slane %v1587_v33, %v6481_v55 }
 0x1fe   : > { %v1666_v5 = vrot.slane %v8786_v45, %v6180_v27  ;;  %v1586_v17 = vcombine.low %v1530_v10, %v1546_v53  ;;  %v1570_v23 = vcombine.low %v6487_v2, %v1521_v12  ;;  %v1602_v3 = vcombine.low %v6510_v49, %v1553_v16 }
 0x1ff   : > { %v1691_v51 = vcombine.high %v1634_v39, %v1650_v36  ;;  %v6546_v45 = vrot.slane %v1554_v37, %v6481_v55  ;;  %v1690_v25 = vcombine.low %v1634_v39, %v1650_v36  ;;  %v1620_v24 = vcombine.low %v1569_v58, %v1601_v44 }
 0x200   : > { %1869 = vrot.lane.b32.xlu0 %v6182_v29, %s5843_s11  ;;  %2255 = vrot.lane.b32.xlu1 %v6159_v15, %s5844_s12  ;;  %v1723_v60 = vcombine.high %v1666_v5, %v1682_v22  ;;  %v1722_v42 = vcombine.low %v1666_v5, %v1682_v22  ;;  %v1621_v15 = vcombine.high %v1569_v58, %v1601_v44 }
 0x201   : > { %8787 = vst [vmem:[#allocation21_spill] sm:$0xff] %v6546_v45  ;;  %v1705_v62 = vrot.slane %v1691_v51, %v6481_v55  ;;  %v6557_v37 = vrot.slane %v1586_v17, %v6481_v55  ;;  %v1578_v10 = vrot.slane %v1570_v23, %v6481_v55  ;;  %v1610_v39 = vrot.slane %v1602_v3, %v6481_v55 }
 0x202   : > { %v1737_v33 = vrot.slane %v1723_v60, %v6481_v55  ;;  %v6563_v22 = vrot.slane %v1722_v42, %v6481_v55  ;;  %v1706_v51 = vcombine.low %v6493_v35, %v6504_v0  ;;  %v1738_v60 = vcombine.low %v6521_v14, %v1689_v38 }
 0x203   : > { %8788 = vst [vmem:[#allocation22_spill] sm:$0xff] %v6557_v37  ;;  %v1619_v5 = vcombine.high %v6546_v45, %v6557_v37  ;;  %v1571_v45 = vcombine.high %v6487_v2, %v1521_v12  ;;  %v1603_v9 = vcombine.high %v6510_v49, %v1553_v16  ;;  %v1707_v3 = vcombine.high %v6493_v35, %v6504_v0 }
 0x204   : > { %2259 = vrot.lane.b32.xlu0 %v6182_v29, %s5844_s12  ;;  %3050 = vrot.lane.b32.xlu1 %v6185_v30, %s5843_s11  ;;  %v6560_v29 = vrot.slane %v1690_v25, %v6481_v55  ;;  %8790 = vst [vmem:[#allocation24_spill] sm:$0xff] %v6563_v22  ;;  %v1757_v53 = vcombine.high %v1705_v62, %v1737_v33 }
 0x205   : > { %v1622_v25 = vcombine.low %v1578_v10, %v1610_v39  ;;  %v1714_v42 = vrot.slane %v1706_v51, %v6481_v55  ;;  %v1746_v43 = vrot.slane %v1738_v60, %v6481_v55  ;;  %v1756_v37 = vcombine.low %v1705_v62, %v1737_v33 }
 0x206   : > { %8789 = vst [vmem:[#allocation23_spill] sm:$0xff] %v6560_v29  ;;  %v1755_v23 = vcombine.high %v6560_v29, %v6563_v22  ;;  %v6582_v17 = vpack.i.bf16 %v1757_v53, %v1621_v15  ;;  %v1585_v53 = vrot.slane %v1571_v45, %v6481_v55  ;;  %v1623_v51 = vcombine.high %v1578_v10, %v1610_v39 }
 0x207   : > { %v1758_v40 = vcombine.low %v1714_v42, %v1746_v43  ;;  %v6595_v15 = vpack.i.bf16 %v1756_v37, %v1620_v24  ;;  %v1759_v58 = vcombine.high %v1714_v42, %v1746_v43  ;;  %v1617_v12 = vrot.slane %v1603_v9, %v6481_v55 }
 0x208   : > { %3054 = vrot.lane.b32.xlu0 %v6222_v59, %s5843_s11  ;;  %3440 = vrot.lane.b32.xlu1 %v6185_v30, %s5844_s12  ;;  %v6586_v36 = vpack.i.bf16 %v1755_v23, %v1619_v5  ;;  %v1739_v30 = vcombine.high %v6521_v14, %v1689_v38  ;;  %v1721_v35 = vrot.slane %v1707_v3, %v6481_v55 }
 0x209   : > { %v6600_v2 = vpack.i.bf16 %v1758_v40, %v1622_v25  ;;  %v2868_v24 = vcombine.low %v6382_v34, %v6442_v57  ;;  %v2884_v43 = vcombine.low %v6406_v6, %v6455_v20  ;;  %v6611_v49 = vpack.i.bf16 %v1759_v58, %v1623_v51 }
 0x20a   : > { %v1753_v0 = vrot.slane %v1739_v30, %v6481_v55  ;;  %v1624_v16 = vcombine.low %v1585_v53, %v1617_v12  ;;  %v1625_v14 = vcombine.high %v1585_v53, %v1617_v12  ;;  %v4047_v9 = vcombine.low %v6409_v11, %v6445_v63 }
 0x20b   : > { %v4063_v44 = vcombine.low %v6412_v21, %v6466_v1  ;;  %v8791_v45 = vcombine.low %v6370_v46, %v6429_v41  ;;  %v8792_v33 = vcombine.low %v6397_v7, %v6436_v19  ;;  %v6647_v23 = vrot.slane %v2868_v24, %v6180_v27 }
 0x20c   : > { %3444 = vrot.lane.b32.xlu0 %v6222_v59, %s5844_s12  ;;  %4229 = vrot.lane.b32.xlu1 %v6189_v32, %s5843_s11  ;;  %v3927_v59 = vcombine.low %v6403_v50, %v6452_v61  ;;  %v1760_v40 = vcombine.low %v1721_v35, %v1753_v0  ;;  %v1761_v38 = vcombine.high %v1721_v35, %v1753_v0 }
 0x20d   : > { %v6625_v62 = vrot.slane %v8791_v45, %v6180_v27  ;;  %v6631_v37 = vrot.slane %v8792_v33, %v6180_v27  ;;  %v6650_v3 = vrot.slane %v2884_v43, %v6180_v27  ;;  %v6655_v25 = vrot.slane %v4047_v9, %v6180_v27 }
 0x20e   : > { %v6633_v10 = vpack.i.bf16 %v1760_v40, %v1624_v16  ;;  %v6635_v39 = vpack.i.bf16 %v1761_v38, %v1625_v14  ;;  %v6644_v5 = vrot.slane %v3927_v59, %v6180_v27  ;;  %v6658_v42 = vrot.slane %v4063_v44, %v6180_v27  ;;  %v8804_v40 = vld [vmem:[#allocation13_spill] sm:$0xff]  ;;  %v8805_v14 = vld [vmem:[#allocation16_spill] sm:$0xff] }
 0x20f   : > { %v2796_v30 = vcombine.low %v6625_v62, %v6631_v37  ;;  %v2932_v51 = vcombine.low %v6647_v23, %v6650_v3  ;;  %v8797_v0 = vcombine.low %v6216_v52, %v6243_v13  ;;  %v8801_v43 = vcombine.low %v6231_v4, %v6281_v26 }
 0x210   : > { %4233 = vrot.lane.b32.xlu0 %v6236_v8, %s5843_s11  ;;  %4619 = vrot.lane.b32.xlu1 %v6189_v32, %s5844_s12  ;;  %v8793_v32 = vcombine.low %v6400_v47, %v6439_v56  ;;  %v8806_v38 = vcombine.low %v8804_v40, %v8805_v14 }
 0x211   : > { %v6675_v58 = vrot.slane %v2796_v30, %v6481_v55  ;;  %v6678_v12 = vrot.slane %v2932_v51, %v6481_v55  ;;  %v6689_v59 = vrot.slane %v8797_v0, %v6481_v55  ;;  %v6701_v16 = vrot.slane %v8801_v43, %v6481_v55  ;;  %v8808_v30 = vld [vmem:[#allocation10_spill] sm:$0xff] }
 0x212   : > { %v6641_v60 = vrot.slane %v8793_v32, %v6180_v27  ;;  %v6712_v9 = vrot.slane %v8806_v38, %v6481_v55  ;;  %v8810_v51 = vld [vmem:[#allocation6_spill] sm:$0xff] }
 0x213   : > { %8794 = vst [vmem:[#allocation25_spill] sm:$0xff] %v6675_v58  ;;  %8795 = vst [vmem:[#allocation26_spill] sm:$0xff] %v6678_v12 }
 0x214   : > { %4623 = vrot.lane.b32.xlu0 %v6236_v8, %s5844_s12  ;;  %3052 = vrot.lane.b32.xlu1 %v6211_v48, %s5843_s11  ;;  %v3975_v53 = vcombine.low %v6641_v60, %v6644_v5  ;;  %v4111_v8 = vcombine.low %v6655_v25, %v6658_v42  ;;  %8798 = vst [vmem:[#allocation28_spill] sm:$0xff] %v6689_v59  ;;  %8802 = vst [vmem:[#allocation30_spill] sm:$0xff] %v6701_v16 }
 0x215   : > { %8807 = vst [vmem:[#allocation13_spill] sm:$0xff] %v6712_v9 }
 0x216   : > { %v6681_v35 = vrot.slane %v3975_v53, %v6481_v55  ;;  %v8809_v53 = vld [vmem:[#allocation2_spill] sm:$0xff] }
 0x218   : > { %3056 = vrot.lane.b32.xlu0 %v6263_v28, %s5843_s11  ;;  %3442 = vrot.lane.b32.xlu1 %v6211_v48, %s5844_s12  ;;  %8796 = vst [vmem:[#allocation27_spill] sm:$0xff] %v6681_v35  ;;  %v8799_v48 = vcombine.low %v6260_v54, %v6316_v18 }
 0x21a   : > { %v6695_v24 = vrot.slane %v8799_v48, %v6481_v55 }
 0x21c   : > { %3446 = vrot.lane.b32.xlu0 %v6263_v28, %s5844_s12  ;;  %8800 = vst [vmem:[#allocation29_spill] sm:$0xff] %v6695_v24  ;;  %v6704_v28 = vrot.slane %v4111_v8, %v6481_v55  ;;  %4231 = vrot.lane.b32.xlu1 %v6266_v31, %s5843_s11  ;;  %v8811_v8 = vld [vmem:[#allocation5_spill] sm:$0xff] }
 0x21e   : > { %8803 = vst [vmem:[#allocation31_spill] sm:$0xff] %v6704_v28 }
 0x220   : > { %4235 = vrot.lane.b32.xlu0 %v8808_v30, %s5843_s11  ;;  %4621 = vrot.lane.b32.xlu1 %v6266_v31, %s5844_s12  ;;  %v8812_v31 = vld [vmem:[#allocation11_spill] sm:$0xff] }
 0x224   : > { %4625 = vrot.lane.b32.xlu0 %v8808_v30, %s5844_s12  ;;  %1871 = vrot.lane.b32.xlu1 %v8809_v53, %s5843_s11 }
 0x228   : > { %1873 = vrot.lane.b32.xlu0 %v8810_v51, %s5843_s11  ;;  %2261 = vrot.lane.b32.xlu1 %v8809_v53, %s5844_s12 }
 0x22c   : > { %2265 = vrot.lane.b32.xlu0 %v8811_v8, %s5844_s12  ;;  %1875 = vrot.lane.b32.xlu1 %v8811_v8, %s5843_s11 }
 0x230   : > { %1877 = vrot.lane.b32.xlu0 %v8812_v31, %s5843_s11  ;;  %2263 = vrot.lane.b32.xlu1 %v8810_v51, %s5844_s12 }
 0x234   : > { %2267 = vrot.lane.b32.xlu0 %v8812_v31, %s5844_s12  ;;  %3058 = vrot.lane.b32.xlu1 %v6370_v46, %s5843_s11 }
 0x236   : > { %v6746_v0 = vpop.permute.xlu1 %1855 }
 0x238   : > { %3062 = vrot.lane.b32.xlu0 %v6397_v7, %s5843_s11  ;;  %3448 = vrot.lane.b32.xlu1 %v6370_v46, %s5844_s12 }
 0x23a   : > { %v6752_v48 = vpop.permute.xlu1 %2245  ;;  %v6754_v43 = vpop.permute.xlu0 %1857 }
 0x23c   : > { %3452 = vrot.lane.b32.xlu0 %v6397_v7, %s5844_s12  ;;  %4237 = vrot.lane.b32.xlu1 %v6400_v47, %s5843_s11 }
 0x23e   : > { %v6760_v38 = vpop.permute.xlu1 %1859  ;;  %v6762_v30 = vpop.permute.xlu0 %2249 }
 0x240   : > { %4241 = vrot.lane.b32.xlu0 %v6403_v50, %s5843_s11  ;;  %4627 = vrot.lane.b32.xlu1 %v6400_v47, %s5844_s12 }
 0x242   : > { %v6768_v53 = vpop.permute.xlu1 %2247  ;;  %v6770_v51 = vpop.permute.xlu0 %1861 }
 0x243   : > { %8813 = vst [vmem:[#allocation16_spill] sm:$0xff] %v6768_v53  ;;  %8814 = vst [vmem:[#allocation10_spill] sm:$0xff] %v6770_v51 }
 0x244   : > { %4631 = vrot.lane.b32.xlu0 %v6403_v50, %s5844_s12  ;;  %3060 = vrot.lane.b32.xlu1 %v6382_v34, %s5843_s11 }
 0x246   : > { %v6776_v8 = vpop.permute.xlu0 %2251  ;;  %v6778_v31 = vpop.permute.xlu1 %3044 }
 0x247   : > { %8815 = vst [vmem:[#allocation2_spill] sm:$0xff] %v6776_v8  ;;  %8816 = vst [vmem:[#allocation6_spill] sm:$0xff] %v6778_v31 }
 0x248   : > { %3064 = vrot.lane.b32.xlu0 %v6406_v6, %s5843_s11  ;;  %3450 = vrot.lane.b32.xlu1 %v6382_v34, %s5844_s12 }
 0x24a   : > { %v6784_v32 = vpop.permute.xlu0 %3046  ;;  %v6786_v33 = vpop.permute.xlu1 %3434  ;;  %v8909_v35 = vld [vmem:[#allocation10_spill] sm:$0xff] }
 0x24b   : > { %8817 = vst [vmem:[#allocation5_spill] sm:$0xff] %v6784_v32  ;;  %8818 = vst [vmem:[#allocation11_spill] sm:$0xff] %v6786_v33  ;;  %v8823_v33 = vld [vmem:[#allocation14_spill] sm:$0xff] }
 0x24c   : > { %3454 = vrot.lane.b32.xlu0 %v6406_v6, %s5844_s12  ;;  %4239 = vrot.lane.b32.xlu1 %v6409_v11, %s5843_s11  ;;  %v8826_v32 = vld [vmem:[#allocation18_spill] sm:$0xff] }
 0x24e   : > { %v6792_v45 = vpop.permute.xlu0 %3436  ;;  %v6794_v44 = vpop.permute.xlu1 %3042  ;;  %v8912_v28 = vld [vmem:[#allocation2_spill] sm:$0xff] }
 0x24f   : > { %8819 = vst [vmem:[#allocation32_spill] sm:$0xff] %v6792_v45  ;;  %8820 = vst [vmem:[#allocation33_spill] sm:$0xff] %v6794_v44 }
 0x250   : > { %4243 = vrot.lane.b32.xlu0 %v6412_v21, %s5843_s11  ;;  %4629 = vrot.lane.b32.xlu1 %v6409_v11, %s5844_s12 }
 0x252   : > { %v6800_v22 = vpop.permute.xlu0 %4225  ;;  %v6802_v29 = vpop.permute.xlu1 %3432 }
 0x253   : > { %8821 = vst [vmem:[#allocation34_spill] sm:$0xff] %v6800_v22  ;;  %8822 = vst [vmem:[#allocation35_spill] sm:$0xff] %v6802_v29  ;;  %v8829_v29 = vld [vmem:[#allocation19_spill] sm:$0xff] }
 0x254   : > { %4633 = vrot.lane.b32.xlu0 %v6412_v21, %s5844_s12  ;;  %1879 = vrot.lane.b32.xlu1 %v8823_v33, %s5843_s11 }
 0x256   : > { %v6808_v31 = vpop.permute.xlu0 %4615  ;;  %v6810_v45 = vpop.permute.xlu1 %4223 }
 0x257   : > { %8824 = vst [vmem:[#allocation14_spill] sm:$0xff] %v6808_v31  ;;  %8825 = vst [vmem:[#allocation36_spill] sm:$0xff] %v6810_v45  ;;  %v8832_v45 = vld [vmem:[#allocation20_spill] sm:$0xff] }
 0x258   : > { %1883 = vrot.lane.b32.xlu0 %v8826_v32, %s5843_s11  ;;  %2269 = vrot.lane.b32.xlu1 %v8823_v33, %s5844_s12 }
 0x25a   : > { %v6816_v44 = vpop.permute.xlu0 %3048  ;;  %v6818_v22 = vpop.permute.xlu1 %4221  ;;  %v8936_v24 = vld [vmem:[#allocation35_spill] sm:$0xff] }
 0x25b   : > { %8827 = vst [vmem:[#allocation18_spill] sm:$0xff] %v6816_v44  ;;  %8828 = vst [vmem:[#allocation37_spill] sm:$0xff] %v6818_v22 }
 0x25c   : > { %2273 = vrot.lane.b32.xlu0 %v8826_v32, %s5844_s12  ;;  %1881 = vrot.lane.b32.xlu1 %v8829_v29, %s5843_s11 }
 0x25e   : > { %v6824_v53 = vpop.permute.xlu0 %3438  ;;  %v6826_v31 = vpop.permute.xlu1 %4613 }
 0x25f   : > { %8830 = vst [vmem:[#allocation19_spill] sm:$0xff] %v6824_v53  ;;  %8831 = vst [vmem:[#allocation38_spill] sm:$0xff] %v6826_v31 }
 0x260   : > { %1885 = vrot.lane.b32.xlu0 %v8832_v45, %s5843_s11  ;;  %2271 = vrot.lane.b32.xlu1 %v8829_v29, %s5844_s12 }
 0x262   : > { %v6832_v33 = vpop.permute.xlu0 %4227  ;;  %v6834_v44 = vpop.permute.xlu1 %4611 }
 0x263   : > { %8833 = vst [vmem:[#allocation20_spill] sm:$0xff] %v6832_v33  ;;  %8834 = vst [vmem:[#allocation39_spill] sm:$0xff] %v6834_v44 }
 0x264   : > { %2275 = vrot.lane.b32.xlu0 %v8832_v45, %s5844_s12  ;;  %3066 = vrot.lane.b32.xlu1 %v6429_v41, %s5843_s11 }
 0x266   : > { %v6840_v32 = vpop.permute.xlu0 %4617  ;;  %v6842_v53 = vpop.permute.xlu1 %1863 }
 0x267   : > { %8835 = vst [vmem:[#allocation40_spill] sm:$0xff] %v6840_v32 }
 0x268   : > { %3070 = vrot.lane.b32.xlu0 %v6436_v19, %s5843_s11  ;;  %3456 = vrot.lane.b32.xlu1 %v6429_v41, %s5844_s12 }
 0x26a   : > { %v6848_v29 = vpop.permute.xlu0 %1865  ;;  %v6850_v31 = vpop.permute.xlu1 %2253 }
 0x26c   : > { %3460 = vrot.lane.b32.xlu0 %v6436_v19, %s5844_s12  ;;  %4245 = vrot.lane.b32.xlu1 %v6439_v56, %s5843_s11 }
 0x26e   : > { %v6856_v45 = vpop.permute.xlu0 %2257  ;;  %v6858_v32 = vpop.permute.xlu1 %1867 }
 0x270   : > { %4249 = vrot.lane.b32.xlu0 %v6452_v61, %s5843_s11  ;;  %4635 = vrot.lane.b32.xlu1 %v6439_v56, %s5844_s12 }
 0x272   : > { %v6864_v33 = vpop.permute.xlu0 %1869  ;;  %v6866_v44 = vpop.permute.xlu1 %2255 }
 0x273   : > { %8836 = vst [vmem:[#allocation41_spill] sm:$0xff] %v6864_v33  ;;  %8837 = vst [vmem:[#allocation42_spill] sm:$0xff] %v6866_v44 }
 0x274   : > { %4639 = vrot.lane.b32.xlu0 %v6452_v61, %s5844_s12  ;;  %3068 = vrot.lane.b32.xlu1 %v6442_v57, %s5843_s11 }
 0x276   : > { %v6872_v22 = vpop.permute.xlu0 %2259  ;;  %v6874_v8 = vpop.permute.xlu1 %3050 }
 0x277   : > { %8838 = vst [vmem:[#allocation43_spill] sm:$0xff] %v6872_v22  ;;  %8839 = vst [vmem:[#allocation44_spill] sm:$0xff] %v6874_v8 }
 0x278   : > { %3072 = vrot.lane.b32.xlu0 %v6455_v20, %s5843_s11  ;;  %3458 = vrot.lane.b32.xlu1 %v6442_v57, %s5844_s12 }
 0x27a   : > { %v6880_v51 = vpop.permute.xlu0 %3054  ;;  %v6882_v33 = vpop.permute.xlu1 %3440 }
 0x27b   : > { %8840 = vst [vmem:[#allocation45_spill] sm:$0xff] %v6880_v51  ;;  %8841 = vst [vmem:[#allocation46_spill] sm:$0xff] %v6882_v33  ;;  %v2869_v33 = vcombine.high %v6382_v34, %v6442_v57  ;;  %v2797_v34 = vcombine.high %v6625_v62, %v6631_v37 }
 0x27c   : > { %3462 = vrot.lane.b32.xlu0 %v6455_v20, %s5844_s12  ;;  %4247 = vrot.lane.b32.xlu1 %v6445_v63, %s5843_s11 }
 0x27d   : > { %v2883_v57 = vrot.slane %v2869_v33, %v6180_v27  ;;  %v6989_v33 = vrot.slane %v2797_v34, %v6481_v55  ;;  %v8865_v34 = vld [vmem:[#allocation4_spill] sm:$0xff] }
 0x27e   : > { %v6888_v44 = vpop.permute.xlu0 %3444  ;;  %v6890_v22 = vpop.permute.xlu1 %4229 }
 0x27f   : > { %8842 = vst [vmem:[#allocation47_spill] sm:$0xff] %v6888_v44  ;;  %8843 = vst [vmem:[#allocation48_spill] sm:$0xff] %v6890_v22 }
 0x280   : > { %4251 = vrot.lane.b32.xlu0 %v6466_v1, %s5843_s11  ;;  %4637 = vrot.lane.b32.xlu1 %v6445_v63, %s5844_s12 }
 0x282   : > { %v6896_v8 = vpop.permute.xlu0 %4233  ;;  %v6898_v51 = vpop.permute.xlu1 %4619 }
 0x283   : > { %8844 = vst [vmem:[#allocation49_spill] sm:$0xff] %v6896_v8  ;;  %8845 = vst [vmem:[#allocation50_spill] sm:$0xff] %v6898_v51 }
 0x284   : > { %4641 = vrot.lane.b32.xlu0 %v6466_v1, %s5844_s12  ;;  %5554 = vrot.lane.b32.xlu1 %v6582_v17, %s5847_s13 }
 0x286   : > { %v6904_v44 = vpop.permute.xlu0 %4623  ;;  %v6906_v22 = vpop.permute.xlu1 %3052 }
 0x287   : > { %8846 = vst [vmem:[#allocation51_spill] sm:$0xff] %v6904_v44  ;;  %8847 = vst [vmem:[#allocation52_spill] sm:$0xff] %v6906_v22 }
 0x288   : > { %5544 = vrot.lane.b32.xlu0 %v6586_v36, %s5848_s14  ;;  %5559 = vrot.lane.b32.xlu1 %v6600_v2, %s5849_s15 }
 0x28a   : > { %v6912_v51 = vpop.permute.xlu0 %3056  ;;  %v6914_v8 = vpop.permute.xlu1 %3442 }
 0x28b   : > { %8848 = vst [vmem:[#allocation53_spill] sm:$0xff] %v6912_v51  ;;  %8849 = vst [vmem:[#allocation54_spill] sm:$0xff] %v6914_v8 }
 0x28c   : > { %5549 = vrot.lane.b32.xlu0 %v6595_v15, %s5850_s16  ;;  %5569 = vrot.lane.b32.xlu1 %v6633_v10, %s5851_s17 }
 0x28e   : > { %v6920_v17 = vpop.permute.xlu0 %3446  ;;  %v6922_v44 = vpop.permute.xlu1 %4231 }
 0x28f   : > { %8850 = vst [vmem:[#allocation55_spill] sm:$0xff] %v6920_v17  ;;  %8851 = vst [vmem:[#allocation56_spill] sm:$0xff] %v6922_v44 }
 0x290   : > { %5564 = vrot.lane.b32.xlu0 %v6611_v49, %s5852_s20 }
 0x292   : > { %v6926_v36 = vpop.permute.xlu0 %4235  ;;  %v6928_v2 = vpop.permute.xlu1 %4621 }
 0x293   : > { %8852 = vst [vmem:[#allocation57_spill] sm:$0xff] %v6926_v36  ;;  %8853 = vst [vmem:[#allocation58_spill] sm:$0xff] %v6928_v2  ;;  %v2733_v2 = vcombine.high %v6370_v46, %v6429_v41  ;;  %v3912_v41 = vcombine.high %v6400_v47, %v6439_v56  ;;  %v3928_v46 = vcombine.high %v6403_v50, %v6452_v61 }
 0x294   : > { %5574 = vrot.lane.b32.xlu0 %v6635_v39, %s5853_s21  ;;  %v2749_v39 = vcombine.high %v6397_v7, %v6436_v19  ;;  %v4048_v7 = vcombine.high %v6409_v11, %v6445_v63  ;;  %v4064_v19 = vcombine.high %v6412_v21, %v6466_v1  ;;  %v2933_v1 = vcombine.high %v6647_v23, %v6650_v3 }
 0x295   : > { %v2747_v22 = vrot.slane %v2733_v2, %v6180_v27  ;;  %v3926_v61 = vrot.slane %v3912_v41, %v6180_v27  ;;  %v3942_v50 = vrot.slane %v3928_v46, %v6180_v27  ;;  %v4112_v23 = vcombine.high %v6655_v25, %v6658_v42 }
 0x296   : > { %v6932_v15 = vpop.permute.xlu0 %4625  ;;  %v6934_v8 = vpop.permute.xlu1 %1871  ;;  %v4062_v11 = vrot.slane %v4048_v7, %v6180_v27  ;;  %v4078_v21 = vrot.slane %v4064_v19, %v6180_v27  ;;  %v8863_v3 = vcombine.high %v6216_v52, %v6243_v13  ;;  %v8864_v19 = vld [vmem:[#allocation3_spill] sm:$0xff] }
 0x297   : > { %8854 = vst [vmem:[#allocation59_spill] sm:$0xff] %v6932_v15  ;;  %v3992_v46 = vcombine.high %v3926_v61, %v3942_v50  ;;  %v8867_v25 = vcombine.high %v8864_v19, %v8865_v34 }
 0x298   : > { %v7005_v7 = vrot.slane %v8863_v3, %v6481_v55 }
 0x299   : > { %v7021_v52 = vrot.slane %v8867_v25, %v6481_v55  ;;  %v8874_v25 = vld [vmem:[#allocation9_spill] sm:$0xff] }
 0x29a   : > { %v6936_v10 = vpop.permute.xlu0 %1873  ;;  %v6938_v17 = vpop.permute.xlu1 %2261 }
 0x29b   : > { %8855 = vst [vmem:[#allocation60_spill] sm:$0xff] %v6936_v10  ;;  %v2763_v10 = vrot.slane %v2749_v39, %v6180_v27 }
 0x29d   : > { %v2813_v56 = vcombine.high %v2747_v22, %v2763_v10 }
 0x29e   : > { %v6940_v44 = vpop.permute.xlu0 %2265  ;;  %v6942_v51 = vpop.permute.xlu1 %1875 }
 0x29f   : > { %8856 = vst [vmem:[#allocation61_spill] sm:$0xff] %v6940_v44  ;;  %v6997_v41 = vrot.slane %v2813_v56, %v6481_v55 }
 0x2a2   : > { %v6944_v49 = vpop.permute.xlu0 %1877  ;;  %v6950_v36 = vpop.permute.xlu1 %2263 }
 0x2a3   : > { %8857 = vst [vmem:[#allocation62_spill] sm:$0xff] %v6944_v49  ;;  %8858 = vst [vmem:[#allocation63_spill] sm:$0xff] %v6950_v36  ;;  %v2885_v49 = vcombine.high %v6406_v6, %v6455_v20  ;;  %v2812_v6 = vcombine.low %v2747_v22, %v2763_v10  ;;  %v3976_v10 = vcombine.high %v6641_v60, %v6644_v5 }
 0x2a4   : > { %v4127_v5 = vcombine.low %v4062_v11, %v4078_v21 }
 0x2a5   : > { %v2899_v20 = vrot.slane %v2885_v49, %v6180_v27  ;;  %v6992_v22 = vrot.slane %v2812_v6, %v6481_v55  ;;  %v3991_v49 = vcombine.low %v3926_v61, %v3942_v50  ;;  %v8866_v6 = vcombine.low %v8864_v19, %v8865_v34 }
 0x2a6   : > { %v6952_v15 = vpop.permute.xlu0 %2267  ;;  %v6960_v44 = vpop.permute.xlu1 %3058  ;;  %v7030_v50 = vrot.slane %v2933_v1, %v6481_v55  ;;  %v8872_v1 = vcombine.high %v6260_v54, %v6316_v18  ;;  %v7059_v19 = vrot.slane %v3976_v10, %v6481_v55  ;;  %v7102_v56 = vrot.slane %v4127_v5, %v6481_v55  ;;  %v8934_v12 = vld [vmem:[#allocation61_spill] sm:$0xff] }
 0x2a7   : > { %8859 = vst [vmem:[#allocation64_spill] sm:$0xff] %v6952_v15  ;;  %8860 = vst [vmem:[#allocation65_spill] sm:$0xff] %v6960_v44  ;;  %v2949_v62 = vcombine.high %v2883_v57, %v2899_v20  ;;  %v2948_v39 = vcombine.low %v2883_v57, %v2899_v20  ;;  %v7011_v60 = vrot.slane %v8866_v6, %v6481_v55 }
 0x2a8   : > { %v4128_v57 = vcombine.high %v4062_v11, %v4078_v21  ;;  %8869 = vst [vmem:[#allocation4_spill] sm:$0xff] %v7030_v50  ;;  %v8875_v21 = vld [vmem:[#allocation12_spill] sm:$0xff]  ;;  %v7078_v10 = vrot.slane %v3991_v49, %v6481_v55  ;;  %v8887_v49 = vld [vmem:[#allocation7_spill] sm:$0xff]  ;;  %v2294_v5 = vcombine.high %v6752_v48, %v6850_v31 }
 0x2a9   : > { %v7033_v11 = vrot.slane %v2949_v62, %v6481_v55  ;;  %v7042_v34 = vrot.slane %v2948_v39, %v6481_v55  ;;  %v7050_v62 = vrot.slane %v8872_v1, %v6481_v55  ;;  %v8876_v61 = vcombine.high %v8874_v25, %v8875_v21  ;;  %8878 = vst [vmem:[#allocation12_spill] sm:$0xff] %v7059_v19 }
 0x2aa   : > { %v6970_v2 = vpop.permute.xlu0 %3062  ;;  %v6976_v47 = vpop.permute.xlu1 %3448  ;;  %v8880_v54 = vcombine.low %v8874_v25, %v8875_v21  ;;  %v8882_v1 = vcombine.high %v6231_v4, %v6281_v26  ;;  %8884 = vst [vmem:[#allocation74_spill] sm:$0xff] %v7078_v10  ;;  %v7089_v25 = vrot.slane %v3992_v46, %v6481_v55  ;;  %v8896_v46 = vld [vmem:[#allocation17_spill] sm:$0xff]  ;;  %v1920_v21 = vcombine.high %v6760_v38, %v6858_v32 }
 0x2ab   : > { %8861 = vst [vmem:[#allocation66_spill] sm:$0xff] %v6970_v2  ;;  %8870 = vst [vmem:[#allocation68_spill] sm:$0xff] %v7033_v11  ;;  %v7056_v3 = vrot.slane %v8876_v61, %v6481_v55 }
 0x2ac   : > { %8871 = vst [vmem:[#allocation69_spill] sm:$0xff] %v7042_v34  ;;  %8873 = vst [vmem:[#allocation70_spill] sm:$0xff] %v7050_v62  ;;  %v7069_v18 = vrot.slane %v8880_v54, %v6481_v55  ;;  %v7075_v61 = vrot.slane %v8882_v1, %v6481_v55  ;;  %v8888_v54 = vld [vmem:[#allocation8_spill] sm:$0xff] }
 0x2ad   : > { %8877 = vst [vmem:[#allocation9_spill] sm:$0xff] %v7056_v3  ;;  %8886 = vst [vmem:[#allocation76_spill] sm:$0xff] %v7089_v25  ;;  %v8889_v1 = vcombine.low %v8887_v49, %v8888_v54  ;;  %v8892_v4 = vcombine.high %v8887_v49, %v8888_v54  ;;  %v2309_v49 = vcombine.low %v6762_v30, %v6856_v45 }
 0x2ae   : > { %v6982_v63 = vpop.permute.xlu0 %3452  ;;  %v6986_v37 = vpop.permute.xlu1 %4237  ;;  %8881 = vst [vmem:[#allocation72_spill] sm:$0xff] %v7069_v18  ;;  %8883 = vst [vmem:[#allocation73_spill] sm:$0xff] %v7075_v61  ;;  %v2310_v54 = vcombine.high %v6762_v30, %v6856_v45  ;;  %v7152_v30 = vrot.slane %v4112_v23, %v6481_v55  ;;  %v2293_v45 = vcombine.low %v6752_v48, %v6850_v31 }
 0x2af   : > { %8862 = vst [vmem:[#allocation67_spill] sm:$0xff] %v6986_v37  ;;  %v7099_v6 = vrot.slane %v8889_v1, %v6481_v55  ;;  %8891 = vst [vmem:[#allocation8_spill] sm:$0xff] %v7102_v56  ;;  %v7112_v26 = vrot.slane %v8892_v4, %v6481_v55  ;;  %v7129_v4 = vrot.slane %v4128_v57, %v6481_v55  ;;  %v8915_v56 = vld [vmem:[#allocation16_spill] sm:$0xff] }
 0x2b0   : > { %8903 = vst [vmem:[#allocation81_spill] sm:$0xff] %v7152_v30  ;;  %v8905_v48 = vcombine.high %v8804_v40, %v8805_v14 }
 0x2b1   : > { %8890 = vst [vmem:[#allocation7_spill] sm:$0xff] %v7099_v6  ;;  %8893 = vst [vmem:[#allocation77_spill] sm:$0xff] %v7112_v26 }
 0x2b2   : > { %v7013_v20 = vpop.permute.xlu0 %4241  ;;  %v7023_v13 = vpop.permute.xlu1 %4627  ;;  %8899 = vst [vmem:[#allocation17_spill] sm:$0xff] %v7129_v4  ;;  %v7174_v31 = vrot.slane %v8905_v48, %v6481_v55  ;;  %v2040_v48 = vcombine.high %v6754_v43, %v6848_v29 }
 0x2b3   : > { %8868 = vst [vmem:[#allocation3_spill] sm:$0xff] %v7023_v13 }
 0x2b4   : > { %8906 = vst [vmem:[#allocation83_spill] sm:$0xff] %v7174_v31  ;;  %v8911_v31 = vld [vmem:[#allocation43_spill] sm:$0xff] }
 0x2b6   : > { %v7061_v39 = vpop.permute.xlu0 %4631  ;;  %v7080_v42 = vpop.permute.xlu1 %3060 }
 0x2b7   : > { %8879 = vst [vmem:[#allocation71_spill] sm:$0xff] %v7061_v39  ;;  %8885 = vst [vmem:[#allocation75_spill] sm:$0xff] %v7080_v42  ;;  %v8895_v39 = vld [vmem:[#allocation15_spill] sm:$0xff] }
 0x2b8   : > { %v8897_v34 = vcombine.low %v8895_v39, %v8896_v46  ;;  %v8901_v10 = vcombine.high %v8895_v39, %v8896_v46  ;;  %v1903_v39 = vcombine.low %v6746_v0, %v6842_v53  ;;  %v2039_v46 = vcombine.low %v6754_v43, %v6848_v29 }
 0x2b9   : > { %v2445_v43 = vcombine.low %v8912_v28, %v8911_v31 }
 0x2ba   : > { %v7116_v1 = vpop.permute.xlu0 %3064  ;;  %v7126_v18 = vrot.slane %v8897_v34, %v6481_v55  ;;  %v7135_v13 = vpop.permute.xlu1 %3450  ;;  %v1919_v34 = vcombine.low %v6760_v38, %v6858_v32  ;;  %v7149_v6 = vrot.slane %v8901_v10, %v6481_v55  ;;  %v1904_v10 = vcombine.high %v6746_v0, %v6842_v53 }
 0x2bb   : > { %8894 = vst [vmem:[#allocation78_spill] sm:$0xff] %v7116_v1  ;;  %8900 = vst [vmem:[#allocation79_spill] sm:$0xff] %v7135_v13  ;;  %v2317_v38 = vrot.slane %v2309_v49, %v6180_v27  ;;  %v2324_v32 = vrot.slane %v2310_v54, %v6180_v27  ;;  %v2301_v49 = vrot.slane %v2293_v45, %v6180_v27 }
 0x2bc   : > { %8898 = vst [vmem:[#allocation15_spill] sm:$0xff] %v7126_v18  ;;  %8902 = vst [vmem:[#allocation80_spill] sm:$0xff] %v7149_v6  ;;  %v1927_v25 = vrot.slane %v1919_v34, %v6180_v27  ;;  %v2308_v54 = vrot.slane %v2294_v5, %v6180_v27  ;;  %v1934_v53 = vrot.slane %v1920_v21, %v6180_v27  ;;  %v8908_v34 = vld [vmem:[#allocation41_spill] sm:$0xff]  ;;  %v8914_v6 = vld [vmem:[#allocation42_spill] sm:$0xff] }
 0x2bd   : > { %v1911_v0 = vrot.slane %v1903_v39, %v6180_v27  ;;  %v1918_v26 = vrot.slane %v1904_v10, %v6180_v27  ;;  %v2055_v16 = vcombine.low %v8909_v35, %v8908_v34  ;;  %v2056_v40 = vcombine.high %v8909_v35, %v8908_v34 }
 0x2be   : > { %v7166_v23 = vpop.permute.xlu0 %3454  ;;  %v7178_v57 = vpop.permute.xlu1 %4239  ;;  %v2357_v45 = vcombine.low %v2301_v49, %v2317_v38  ;;  %v2358_v30 = vcombine.high %v2301_v49, %v2317_v38  ;;  %v2373_v5 = vcombine.low %v2308_v54, %v2324_v32  ;;  %v2374_v9 = vcombine.high %v2308_v54, %v2324_v32  ;;  %v8921_v54 = vld [vmem:[#allocation33_spill] sm:$0xff] }
 0x2bf   : > { %8904 = vst [vmem:[#allocation82_spill] sm:$0xff] %v7166_v23  ;;  %8907 = vst [vmem:[#allocation84_spill] sm:$0xff] %v7178_v57  ;;  %v1967_v21 = vcombine.low %v1911_v0, %v1927_v25  ;;  %v1968_v39 = vcombine.high %v1911_v0, %v1927_v25  ;;  %v2446_v10 = vcombine.high %v8912_v28, %v8911_v31 }
 0x2c0   : > { %v2047_v4 = vrot.slane %v2039_v46, %v6180_v27  ;;  %v2054_v35 = vrot.slane %v2040_v48, %v6180_v27  ;;  %v1983_v34 = vcombine.low %v1918_v26, %v1934_v53  ;;  %v2429_v38 = vcombine.low %v8915_v56, %v8914_v6 }
 0x2c1   : > { %v1984_v49 = vcombine.high %v1918_v26, %v1934_v53  ;;  %v2430_v18 = vcombine.high %v8915_v56, %v8914_v6  ;;  %v2063_v19 = vrot.slane %v2055_v16, %v6180_v27  ;;  %v2070_v25 = vrot.slane %v2056_v40, %v6180_v27  ;;  %v8920_v40 = vld [vmem:[#allocation44_spill] sm:$0xff] }
 0x2c2   : > { %v7202_v14 = vpop.permute.xlu0 %4243  ;;  %v7206_v29 = vpop.permute.xlu1 %4629  ;;  %v7221_v28 = vrot.slane %v2357_v45, %v6481_v55  ;;  %v7224_v46 = vrot.slane %v2358_v30, %v6481_v55  ;;  %v7227_v31 = vrot.slane %v2373_v5, %v6481_v55  ;;  %v2453_v26 = vrot.slane %v2445_v43, %v6180_v27 }
 0x2c3   : > { %8910 = vst [vmem:[#allocation41_spill] sm:$0xff] %v7202_v14  ;;  %8913 = vst [vmem:[#allocation10_spill] sm:$0xff] %v7206_v29  ;;  %v7233_v56 = vrot.slane %v1967_v21, %v6481_v55  ;;  %v7236_v16 = vrot.slane %v1968_v39, %v6481_v55  ;;  %v7239_v6 = vrot.slane %v2374_v9, %v6481_v55  ;;  %v8940_v29 = vld [vmem:[#allocation32_spill] sm:$0xff] }
 0x2c4   : > { %8917 = vst [vmem:[#allocation2_spill] sm:$0xff] %v7221_v28  ;;  %v2460_v53 = vrot.slane %v2446_v10, %v6180_v27  ;;  %v2437_v30 = vrot.slane %v2429_v38, %v6180_v27  ;;  %v3090_v48 = vcombine.low %v8921_v54, %v8920_v40  ;;  %v3091_v45 = vcombine.high %v8921_v54, %v8920_v40 }
 0x2c5   : > { %8918 = vst [vmem:[#allocation42_spill] sm:$0xff] %v7233_v56  ;;  %8919 = vst [vmem:[#allocation16_spill] sm:$0xff] %v7236_v16  ;;  %v2444_v43 = vrot.slane %v2430_v18, %v6180_v27  ;;  %v2103_v21 = vcombine.low %v2047_v4, %v2063_v19  ;;  %v2104_v39 = vcombine.high %v2047_v4, %v2063_v19 }
 0x2c6   : > { %v7218_v32 = vpop.permute.xlu0 %4633  ;;  %v7230_v0 = vpop.permute.xlu1 %1879  ;;  %v2119_v61 = vcombine.low %v2054_v35, %v2070_v25  ;;  %v2120_v11 = vcombine.high %v2054_v35, %v2070_v25  ;;  %v2493_v10 = vcombine.low %v2437_v30, %v2453_v26  ;;  %v2494_v3 = vcombine.high %v2437_v30, %v2453_v26 }
 0x2c7   : > { %8916 = vst [vmem:[#allocation43_spill] sm:$0xff] %v7218_v32  ;;  %v1935_v5 = vcombine.low %v6934_v8, %v7230_v0  ;;  %v7255_v62 = vrot.slane %v1983_v34, %v6481_v55  ;;  %v7258_v40 = vrot.slane %v1984_v49, %v6481_v55  ;;  %v2509_v54 = vcombine.low %v2444_v43, %v2460_v53 }
 0x2c8   : > { %v2510_v18 = vcombine.high %v2444_v43, %v2460_v53  ;;  %v7261_v19 = vrot.slane %v3090_v48, %v6180_v27  ;;  %v7264_v4 = vrot.slane %v3091_v45, %v6180_v27  ;;  %v7273_v34 = vrot.slane %v2103_v21, %v6481_v55 }
 0x2c9   : > { %8922 = vst [vmem:[#allocation44_spill] sm:$0xff] %v7255_v62  ;;  %8923 = vst [vmem:[#allocation33_spill] sm:$0xff] %v7258_v40  ;;  %v7267_v35 = vrot.slane %v1935_v5, %v6180_v27  ;;  %v7276_v49 = vrot.slane %v2104_v39, %v6481_v55  ;;  %v7279_v26 = vrot.slane %v2119_v61, %v6481_v55  ;;  %v8942_v62 = vld [vmem:[#allocation37_spill] sm:$0xff] }
 0x2ca   : > { %v7250_v9 = vpop.permute.xlu0 %1883  ;;  %v2270_v50 = vpop.permute.xlu1 %2269  ;;  %8924 = vst [vmem:[#allocation85_spill] sm:$0xff] %v7273_v34  ;;  %v7283_v48 = vrot.slane %v2120_v11, %v6481_v55  ;;  %v7286_v45 = vrot.slane %v2493_v10, %v6481_v55  ;;  %v7289_v5 = vrot.slane %v2494_v3, %v6481_v55  ;;  %v7296_v61 = vrot.slane %v2509_v54, %v6481_v55  ;;  %v8933_v11 = vld [vmem:[#allocation5_spill] sm:$0xff]  ;;  %v8938_v54 = vld [vmem:[#allocation60_spill] sm:$0xff] }
 0x2cb   : > { %v1951_v38 = vcombine.low %v6942_v51, %v7250_v9  ;;  %8925 = vst [vmem:[#allocation86_spill] sm:$0xff] %v7276_v49  ;;  %8926 = vst [vmem:[#allocation87_spill] sm:$0xff] %v7279_v26  ;;  %v2325_v53 = vcombine.low %v6938_v17, %v2270_v50  ;;  %v7299_v39 = vrot.slane %v2510_v18, %v6481_v55 }
 0x2cc   : > { %8927 = vst [vmem:[#allocation88_spill] sm:$0xff] %v7283_v48  ;;  %8928 = vst [vmem:[#allocation89_spill] sm:$0xff] %v7286_v45 }
 0x2cd   : > { %v7270_v25 = vrot.slane %v1951_v38, %v6180_v27  ;;  %8929 = vst [vmem:[#allocation90_spill] sm:$0xff] %v7289_v5  ;;  %8930 = vst [vmem:[#allocation91_spill] sm:$0xff] %v7296_v61  ;;  %v8932_v38 = vld [vmem:[#allocation45_spill] sm:$0xff]  ;;  %v8935_v5 = vld [vmem:[#allocation46_spill] sm:$0xff]  ;;  %v2333_v57 = vrot.slane %v2325_v53, %v6180_v27 }
 0x2ce   : > { %v2274_v30 = vpop.permute.xlu0 %2273  ;;  %v7293_v21 = vpop.permute.xlu1 %1881  ;;  %8931 = vst [vmem:[#allocation92_spill] sm:$0xff] %v7299_v39  ;;  %v3106_v32 = vcombine.low %v8933_v11, %v8932_v38  ;;  %v3107_v3 = vcombine.high %v8933_v11, %v8932_v38  ;;  %v3480_v48 = vcombine.low %v8936_v24, %v8935_v5  ;;  %v3481_v18 = vcombine.high %v8936_v24, %v8935_v5  ;;  %v8939_v39 = vld [vmem:[#allocation47_spill] sm:$0xff]  ;;  %v8943_v24 = vld [vmem:[#allocation62_spill] sm:$0xff] }
 0x2cf   : > { %v1999_v43 = vcombine.low %v7267_v35, %v7270_v25  ;;  %v2341_v10 = vcombine.low %v8934_v12, %v2274_v30  ;;  %v2071_v61 = vcombine.low %v8938_v54, %v7293_v21  ;;  %v3496_v14 = vcombine.low %v8940_v29, %v8939_v39 }
 0x2d0   : > { %v3497_v11 = vcombine.high %v8940_v29, %v8939_v39  ;;  %v3114_v53 = vrot.slane %v3106_v32, %v6180_v27  ;;  %v2342_v13 = vcombine.high %v8934_v12, %v2274_v30  ;;  %v3121_v29 = vrot.slane %v3107_v3, %v6180_v27 }
 0x2d1   : > { %v7309_v40 = vrot.slane %v1999_v43, %v6481_v55  ;;  %v2349_v26 = vrot.slane %v2341_v10, %v6180_v27  ;;  %v8941_v43 = vld [vmem:[#allocation48_spill] sm:$0xff]  ;;  %v2326_v39 = vcombine.high %v6938_v17, %v2270_v50  ;;  %v7338_v42 = vrot.slane %v2071_v61, %v6180_v27 }
 0x2d2   : > { %v7319_v38 = vpop.permute.xlu0 %1885  ;;  %v4269_v23 = vcombine.low %v8942_v62, %v8941_v43  ;;  %v7329_v16 = vpop.permute.xlu1 %2271  ;;  %v4270_v10 = vcombine.high %v8942_v62, %v8941_v43  ;;  %v3488_v56 = vrot.slane %v3480_v48, %v6180_v27  ;;  %v3495_v32 = vrot.slane %v3481_v18, %v6180_v27 }
 0x2d3   : > { %8937 = vst [vmem:[#allocation45_spill] sm:$0xff] %v7309_v40  ;;  %v2087_v5 = vcombine.low %v8943_v24, %v7319_v38  ;;  %v2389_v1 = vcombine.low %v2333_v57, %v2349_v26  ;;  %v2461_v12 = vcombine.low %v6950_v36, %v7329_v16  ;;  %v3504_v17 = vrot.slane %v3496_v14, %v6180_v27 }
 0x2d4   : > { %v3511_v50 = vrot.slane %v3497_v11, %v6180_v27  ;;  %v7355_v30 = vrot.slane %v4269_v23, %v6180_v27  ;;  %v7365_v3 = vrot.slane %v2342_v13, %v6180_v27  ;;  %v3154_v23 = vcombine.low %v7261_v19, %v3114_v53 }
 0x2d5   : > { %v7341_v49 = vrot.slane %v2087_v5, %v6180_v27  ;;  %v7346_v40 = vrot.slane %v2389_v1, %v6481_v55  ;;  %v7362_v1 = vrot.slane %v4270_v10, %v6180_v27  ;;  %v3155_v11 = vcombine.high %v7261_v19, %v3114_v53 }
 0x2d6   : > { %v7350_v62 = vpop.permute.xlu0 %2275  ;;  %v7359_v61 = vpop.permute.xlu1 %3066  ;;  %v7374_v43 = vrot.slane %v2326_v39, %v6180_v27  ;;  %v2390_v10 = vcombine.high %v2333_v57, %v2349_v26  ;;  %v7380_v13 = vrot.slane %v2461_v12, %v6180_v27  ;;  %v3170_v19 = vcombine.low %v7264_v4, %v3121_v29  ;;  %v8951_v39 = vld [vmem:[#allocation49_spill] sm:$0xff] }
 0x2d7   : > { %8944 = vst [vmem:[#allocation5_spill] sm:$0xff] %v7346_v40  ;;  %8945 = vst [vmem:[#allocation61_spill] sm:$0xff] %v7350_v62  ;;  %v2135_v48 = vcombine.low %v7338_v42, %v7341_v49  ;;  %v2477_v14 = vcombine.low %v6952_v15, %v7350_v62  ;;  %v3122_v18 = vcombine.low %v6960_v44, %v7359_v61 }
 0x2d8   : > { %8946 = vst [vmem:[#allocation46_spill] sm:$0xff] %v7359_v61  ;;  %8947 = vst [vmem:[#allocation35_spill] sm:$0xff] %v7362_v1  ;;  %v3171_v53 = vcombine.high %v7264_v4, %v3121_v29  ;;  %v3544_v12 = vcombine.low %v3488_v56, %v3504_v17  ;;  %v3560_v61 = vcombine.low %v3495_v32, %v3511_v50 }
 0x2d9   : > { %v7377_v5 = vrot.slane %v2135_v48, %v6481_v55  ;;  %8949 = vst [vmem:[#allocation47_spill] sm:$0xff] %v7380_v13  ;;  %v7383_v1 = vrot.slane %v2477_v14, %v6180_v27  ;;  %v3545_v48 = vcombine.high %v3488_v56, %v3504_v17  ;;  %v2405_v14 = vcombine.low %v7374_v43, %v7365_v3 }
 0x2da   : > { %v7387_v15 = vpop.permute.xlu0 %3070  ;;  %v7395_v26 = vpop.permute.xlu1 %3456  ;;  %v3561_v62 = vcombine.high %v3495_v32, %v3511_v50  ;;  %v7402_v4 = vrot.slane %v3122_v18, %v6180_v27  ;;  %v2404_v36 = vrot.slane %v2390_v10, %v6481_v55  ;;  %v2422_v17 = vcombine.high %v7221_v28, %v7346_v40 }
 0x2db   : > { %8948 = vst [vmem:[#allocation60_spill] sm:$0xff] %v7377_v5  ;;  %8950 = vst [vmem:[#allocation32_spill] sm:$0xff] %v7387_v15  ;;  %v3138_v57 = vcombine.low %v6970_v2, %v7387_v15  ;;  %v2525_v44 = vcombine.low %v7380_v13, %v7383_v1  ;;  %v8952_v2 = vld [vmem:[#allocation34_spill] sm:$0xff]  ;;  %v7418_v32 = vrot.slane %v3154_v23, %v6481_v55 }
 0x2dc   : > { %v4285_v15 = vcombine.low %v8952_v2, %v8951_v39  ;;  %v7421_v50 = vrot.slane %v3155_v11, %v6481_v55  ;;  %v7424_v18 = vrot.slane %v3170_v19, %v6481_v55  ;;  %v7434_v40 = vrot.slane %v3544_v12, %v6481_v55 }
 0x2dd   : > { %v7405_v29 = vrot.slane %v3138_v57, %v6180_v27  ;;  %v7411_v56 = vrot.slane %v2525_v44, %v6481_v55  ;;  %8954 = vst [vmem:[#allocation37_spill] sm:$0xff] %v7418_v32  ;;  %v7431_v44 = vrot.slane %v3171_v53, %v6481_v55  ;;  %v7437_v23 = vrot.slane %v2405_v14, %v6481_v55  ;;  %v8970_v32 = vld [vmem:[#allocation6_spill] sm:$0xff] }
 0x2de   : > { %v7415_v13 = vpop.permute.xlu0 %3460  ;;  %8955 = vst [vmem:[#allocation62_spill] sm:$0xff] %v7421_v50  ;;  %8956 = vst [vmem:[#allocation49_spill] sm:$0xff] %v7424_v18  ;;  %v7428_v57 = vpop.permute.xlu1 %4245  ;;  %v7442_v19 = vrot.slane %v3545_v48, %v6481_v55  ;;  %v7445_v28 = vrot.slane %v3560_v61, %v6481_v55  ;;  %v3512_v53 = vcombine.low %v6976_v47, %v7395_v26  ;;  %v8972_v50 = vld [vmem:[#allocation53_spill] sm:$0xff] }
 0x2df   : > { %8953 = vst [vmem:[#allocation48_spill] sm:$0xff] %v7411_v56  ;;  %v3186_v10 = vcombine.low %v7402_v4, %v7405_v29  ;;  %8957 = vst [vmem:[#allocation34_spill] sm:$0xff] %v7428_v57  ;;  %v7453_v12 = vrot.slane %v3561_v62, %v6481_v55  ;;  %v7456_v14 = vrot.slane %v4285_v15, %v6180_v27 }
 0x2e0   : > { %8958 = vst [vmem:[#allocation93_spill] sm:$0xff] %v7431_v44  ;;  %8959 = vst [vmem:[#allocation94_spill] sm:$0xff] %v7434_v40  ;;  %v8964_v11 = vcombine.high %v6689_v59, %v6675_v58  ;;  %v2423_v44 = vcombine.low %v7224_v46, %v2404_v36  ;;  %v3528_v15 = vcombine.low %v6982_v63, %v7415_v13 }
 0x2e1   : > { %8960 = vst [vmem:[#allocation95_spill] sm:$0xff] %v7442_v19  ;;  %8961 = vst [vmem:[#allocation96_spill] sm:$0xff] %v7445_v28  ;;  %v7448_v18 = vrot.slane %v3186_v10, %v6481_v55  ;;  %v4286_v10 = vcombine.high %v8952_v2, %v8951_v39  ;;  %v2406_v28 = vcombine.high %v7374_v43, %v7365_v3  ;;  %v8966_v43 = vld [vmem:[#allocation50_spill] sm:$0xff]  ;;  %v8967_v39 = vld [vmem:[#allocation39_spill] sm:$0xff] }
 0x2e2   : > { %8963 = vst [vmem:[#allocation98_spill] sm:$0xff] %v7453_v12  ;;  %v5578_v48 = vpack.i.bf16 %v8964_v11, %v2422_v17  ;;  %v7462_v61 = vpop.permute.xlu0 %4249  ;;  %v8965_v17 = vcombine.low %v7005_v7, %v6989_v33  ;;  %v4301_v58 = vcombine.low %v6986_v37, %v7428_v57  ;;  %v2426_v2 = vcombine.high %v7227_v31, %v7437_v23  ;;  %v8973_v19 = vld [vmem:[#allocation18_spill] sm:$0xff] }
 0x2e3   : > { %8962 = vst [vmem:[#allocation97_spill] sm:$0xff] %v7448_v18  ;;  %v2424_v3 = vcombine.high %v7224_v46, %v2404_v36  ;;  %v4659_v62 = vcombine.low %v8967_v39, %v8966_v43  ;;  %v7484_v59 = vrot.slane %v3512_v53, %v6180_v27  ;;  %v4333_v12 = vcombine.low %v7355_v30, %v7456_v14  ;;  %v8969_v46 = vld [vmem:[#allocation52_spill] sm:$0xff] }
 0x2e4   : > { %5579 = vrot.lane.b32.xlu0 %v5578_v48, %s5848_s14  ;;  %v5583_v11 = vpack.i.bf16 %v8965_v17, %v2423_v44  ;;  %v7487_v48 = vrot.slane %v3528_v15, %v6180_v27  ;;  %v4317_v44 = vcombine.low %v7013_v20, %v7462_v61  ;;  %v7491_v17 = vpop.permute.xlu1 %4635  ;;  %v3226_v18 = vcombine.low %v8970_v32, %v8969_v46  ;;  %v8976_v32 = vld [vmem:[#allocation51_spill] sm:$0xff] }
 0x2e5   : > { %8968 = vst [vmem:[#allocation99_spill] sm:$0xff] %v7491_v17  ;;  %v8971_v53 = vcombine.high %v7011_v60, %v6992_v22  ;;  %v3242_v37 = vcombine.low %v8973_v19, %v8972_v50  ;;  %v1936_v17 = vcombine.high %v6934_v8, %v7230_v0  ;;  %v2420_v57 = vrot.slane %v2406_v28, %v6481_v55 }
 0x2e6   : > { %5584 = vrot.lane.b32.xlu1 %v5583_v11, %s5850_s16  ;;  %v3576_v36 = vcombine.low %v7484_v59, %v7487_v48  ;;  %v7510_v43 = vpop.permute.xlu0 %4639  ;;  %v1952_v11 = vcombine.high %v6942_v51, %v7250_v9  ;;  %v7515_v39 = vrot.slane %v4301_v58, %v6180_v27  ;;  %v7522_v8 = vrot.slane %v4317_v44, %v6180_v27  ;;  %v8977_v51 = vld [vmem:[#allocation14_spill] sm:$0xff]  ;;  %v8983_v44 = vld [vmem:[#allocation11_spill] sm:$0xff] }
 0x2e7   : > { %v5598_v15 = vpack.i.bf16 %v8971_v53, %v2426_v2  ;;  %8974 = vst [vmem:[#allocation100_spill] sm:$0xff] %v7510_v43  ;;  %v8975_v2 = vcombine.high %v7005_v7, %v6989_v33  ;;  %v7525_v28 = vrot.slane %v4286_v10, %v6180_v27  ;;  %v7528_v0 = vrot.slane %v4659_v62, %v6180_v27  ;;  %v9035_v43 = vld [vmem:[#allocation43_spill] sm:$0xff] }
 0x2e8   : > { %v4675_v9 = vcombine.low %v8977_v51, %v8976_v32  ;;  %v7533_v58 = vrot.slane %v3576_v36, %v6481_v55  ;;  %v7539_v33 = vrot.slane %v3226_v18, %v6180_v27  ;;  %v2088_v7 = vcombine.high %v8943_v24, %v7319_v38 }
 0x2e9   : > { %5599 = vrot.lane.b32.xlu0 %v5598_v15, %s5852_s20  ;;  %v5588_v53 = vpack.i.bf16 %v8975_v2, %v2424_v3  ;;  %v7536_v15 = vrot.slane %v4333_v12, %v6481_v55  ;;  %v4365_v10 = vcombine.low %v7515_v39, %v7522_v8  ;;  %v7547_v62 = vrot.slane %v3242_v37, %v6180_v27  ;;  %v8982_v3 = vld [vmem:[#allocation54_spill] sm:$0xff]  ;;  %v7554_v2 = vpop.permute.xlu1 %3068 }
 0x2ea   : > { %8978 = vst [vmem:[#allocation101_spill] sm:$0xff] %v7533_v58  ;;  %8980 = vst [vmem:[#allocation103_spill] sm:$0xff] %v7539_v33  ;;  %v3616_v36 = vcombine.low %v8983_v44, %v8982_v3  ;;  %v2427_v18 = vcombine.low %v7239_v6, %v2420_v57  ;;  %v7557_v38 = vrot.slane %v1936_v17, %v6180_v27  ;;  %v7576_v32 = vpop.permute.xlu0 %3072  ;;  %v8993_v44 = vld [vmem:[#allocation20_spill] sm:$0xff] }
 0x2eb   : > { %8979 = vst [vmem:[#allocation102_spill] sm:$0xff] %v7536_v15  ;;  %5589 = vrot.lane.b32.xlu1 %v5588_v53, %s5847_s13  ;;  %8981 = vst [vmem:[#allocation104_spill] sm:$0xff] %v7547_v62  ;;  %v7560_v24 = vrot.slane %v1952_v11, %v6180_v27  ;;  %v2072_v37 = vcombine.high %v8938_v54, %v7293_v21  ;;  %v7565_v53 = vrot.slane %v4365_v10, %v6481_v55  ;;  %v8990_v10 = vld [vmem:[#allocation19_spill] sm:$0xff]  ;;  %v8992_v54 = vld [vmem:[#allocation57_spill] sm:$0xff] }
 0x2ec   : > { %8984 = vst [vmem:[#allocation105_spill] sm:$0xff] %v7554_v2  ;;  %v2000_v46 = vcombine.high %v7267_v35, %v7270_v25  ;;  %v2136_v12 = vcombine.high %v7338_v42, %v7341_v49  ;;  %v8986_v51 = vcombine.low %v7021_v52, %v6997_v41  ;;  %v2425_v11 = vcombine.low %v7227_v31, %v7437_v23  ;;  %v8988_v35 = vld [vmem:[#allocation75_spill] sm:$0xff] }
 0x2ed   : > { %8985 = vst [vmem:[#allocation106_spill] sm:$0xff] %v7565_v53  ;;  %8987 = vst [vmem:[#allocation107_spill] sm:$0xff] %v7576_v32  ;;  %v7579_v21 = vrot.slane %v2088_v7, %v6180_v27  ;;  %v3258_v25 = vcombine.low %v8988_v35, %v7554_v2  ;;  %v2428_v42 = vcombine.high %v7239_v6, %v2420_v57 }
 0x2ee   : > { %v5603_v17 = vpack.i.bf16 %v8986_v51, %v2427_v18  ;;  %v3290_v49 = vcombine.low %v7539_v33, %v7547_v62  ;;  %v8989_v51 = vld [vmem:[#allocation55_spill] sm:$0xff]  ;;  %v8991_v31 = vcombine.low %v7011_v60, %v6992_v22  ;;  %v2168_v7 = vcombine.high %v7273_v34, %v7377_v5  ;;  %v8994_v33 = vld [vmem:[#allocation78_spill] sm:$0xff]  ;;  %v7611_v34 = vpop.permute.xlu1 %3458 }
 0x2ef   : > { %v3632_v18 = vcombine.low %v8990_v10, %v8989_v51  ;;  %v4421_v35 = vcombine.low %v8993_v44, %v8992_v54  ;;  %v2015_v6 = vcombine.low %v7557_v38, %v7560_v24  ;;  %v2086_v57 = vrot.slane %v2072_v37, %v6180_v27  ;;  %8998 = vst [vmem:[#allocation57_spill] sm:$0xff] %v7611_v34  ;;  %v9010_v10 = vld [vmem:[#allocation63_spill] sm:$0xff] }
 0x2f0   : > { %5604 = vrot.lane.b32.xlu0 %v5603_v17, %s5851_s17  ;;  %v5593_v23 = vpack.i.bf16 %v8991_v31, %v2425_v11  ;;  %v3274_v62 = vcombine.low %v8994_v33, %v7576_v32  ;;  %v2014_v17 = vrot.slane %v2000_v46, %v6481_v55  ;;  %v2150_v2 = vrot.slane %v2136_v12, %v6481_v55  ;;  %v8996_v11 = vld [vmem:[#allocation45_spill] sm:$0xff]  ;;  %v8997_v31 = vld [vmem:[#allocation42_spill] sm:$0xff] }
 0x2f1   : > { %v8995_v22 = vcombine.high %v7021_v52, %v6997_v41  ;;  %v2032_v5 = vcombine.high %v8997_v31, %v8996_v11  ;;  %v7614_v37 = vrot.slane %v4675_v9, %v6180_v27  ;;  %v2151_v3 = vcombine.low %v2086_v57, %v7579_v21  ;;  %v9003_v52 = vld [vmem:[#allocation56_spill] sm:$0xff]  ;;  %v7632_v11 = vpop.permute.xlu0 %3462 }
 0x2f2   : > { %5594 = vrot.lane.b32.xlu1 %v5593_v23, %s5849_s15  ;;  %v7618_v46 = vrot.slane %v3258_v25, %v6180_v27  ;;  %v7621_v12 = vrot.slane %v3274_v62, %v6180_v27  ;;  %v7624_v23 = vrot.slane %v3616_v36, %v6180_v27  ;;  %v7627_v41 = vrot.slane %v3632_v18, %v6180_v27  ;;  %v7662_v50 = vpop.permute.xlu1 %4247 }
 0x2f3   : > { %v5608_v60 = vpack.i.bf16 %v8995_v22, %v2428_v42  ;;  %v9004_v42 = vld [vmem:[#allocation36_spill] sm:$0xff]  ;;  %v5613_v9 = vpack.i.bf16 %v2032_v5, %v2168_v7  ;;  %9005 = vst [vmem:[#allocation56_spill] sm:$0xff] %v7632_v11  ;;  %v7635_v25 = vrot.slane %v3290_v49, %v6481_v55  ;;  %v7638_v62 = vrot.slane %v4421_v35, %v6180_v27  ;;  %v9007_v5 = vld [vmem:[#allocation79_spill] sm:$0xff]  ;;  %v9009_v49 = vld [vmem:[#allocation86_spill] sm:$0xff] }
 0x2f4   : > { %8999 = vst [vmem:[#allocation20_spill] sm:$0xff] %v7618_v46  ;;  %9000 = vst [vmem:[#allocation108_spill] sm:$0xff] %v7621_v12  ;;  %v4405_v22 = vcombine.low %v9004_v42, %v9003_v52  ;;  %v2016_v36 = vcombine.high %v7557_v38, %v7560_v24  ;;  %v3322_v18 = vcombine.low %v7618_v46, %v7621_v12  ;;  %v9011_v38 = vld [vmem:[#allocation61_spill] sm:$0xff]  ;;  %v9012_v24 = vld [vmem:[#allocation64_spill] sm:$0xff] }
 0x2f5   : > { %9001 = vst [vmem:[#allocation109_spill] sm:$0xff] %v7624_v23  ;;  %9002 = vst [vmem:[#allocation110_spill] sm:$0xff] %v7627_v41  ;;  %5609 = vrot.lane.b32.xlu0 %v5608_v60, %s5853_s21  ;;  %v2023_v31 = vrot.slane %v2015_v6, %v6481_v55  ;;  %v3648_v7 = vcombine.low %v9007_v5, %v7611_v34  ;;  %v9008_v60 = vld [vmem:[#allocation16_spill] sm:$0xff]  ;;  %v2169_v32 = vcombine.low %v9009_v49, %v2150_v2  ;;  %v9014_v5 = vld [vmem:[#allocation82_spill] sm:$0xff] }
 0x2f6   : > { %9006 = vst [vmem:[#allocation36_spill] sm:$0xff] %v7635_v25  ;;  %5614 = vrot.lane.b32.xlu1 %v5613_v9, %s5848_s14  ;;  %v2033_v33 = vcombine.low %v9008_v60, %v2014_v17  ;;  %v2159_v35 = vrot.slane %v2151_v3, %v6481_v55  ;;  %v2462_v51 = vcombine.high %v9010_v10, %v7329_v16 }
 0x2f7   : > { %v2478_v19 = vcombine.high %v9012_v24, %v9011_v38  ;;  %v7656_v46 = vrot.slane %v3322_v18, %v6481_v55  ;;  %v2034_v9 = vcombine.high %v9008_v60, %v2014_v17  ;;  %v2170_v12 = vcombine.high %v9009_v49, %v2150_v2  ;;  %v7681_v60 = vpop.permute.xlu0 %4251  ;;  %v9019_v38 = vld [vmem:[#allocation87_spill] sm:$0xff] }
 0x2f8   : > { %v5618_v6 = vpack.i.bf16 %v2033_v33, %v2169_v32  ;;  %v3664_v34 = vcombine.low %v9014_v5, %v7632_v11  ;;  %v7667_v16 = vrot.slane %v4405_v22, %v6180_v27  ;;  %v2152_v10 = vcombine.high %v2086_v57, %v7579_v21  ;;  %v9018_v22 = vld [vmem:[#allocation44_spill] sm:$0xff]  ;;  %v9032_v5 = vld [vmem:[#allocation29_spill] sm:$0xff]  ;;  %v9033_v11 = vld [vmem:[#allocation26_spill] sm:$0xff] }
 0x2f9   : > { %9013 = vst [vmem:[#allocation16_spill] sm:$0xff] %v7656_v46  ;;  %v3680_v33 = vcombine.low %v7624_v23, %v7627_v41  ;;  %v7675_v2 = vrot.slane %v3648_v7, %v6180_v27  ;;  %v5623_v17 = vpack.i.bf16 %v2034_v9, %v2170_v12  ;;  %v2492_v57 = vrot.slane %v2478_v19, %v6180_v27  ;;  %v9020_v12 = vld [vmem:[#allocation84_spill] sm:$0xff]  ;;  %v9024_v23 = vld [vmem:[#allocation41_spill] sm:$0xff] }
 0x2fa   : > { %9015 = vst [vmem:[#allocation86_spill] sm:$0xff] %v7667_v16  ;;  %5619 = vrot.lane.b32.xlu0 %v5618_v6, %s5850_s16  ;;  %v7679_v18 = vrot.slane %v3664_v34, %v6180_v27  ;;  %v4469_v21 = vcombine.low %v7667_v16, %v7638_v62  ;;  %v2035_v49 = vcombine.low %v9018_v22, %v2023_v31 }
 0x2fb   : > { %9016 = vst [vmem:[#allocation63_spill] sm:$0xff] %v7675_v2  ;;  %v2171_v24 = vcombine.low %v9019_v38, %v2159_v35  ;;  %v2030_v7 = vrot.slane %v2016_v36, %v6481_v55  ;;  %v2476_v32 = vrot.slane %v2462_v51, %v6180_v27  ;;  %5624 = vrot.lane.b32.xlu1 %v5623_v17, %s5847_s13  ;;  %v9022_v51 = vld [vmem:[#allocation47_spill] sm:$0xff] }
 0x2fc   : > { %9017 = vst [vmem:[#allocation61_spill] sm:$0xff] %v7679_v18  ;;  %v3712_v34 = vcombine.low %v7675_v2, %v7679_v18  ;;  %v4437_v6 = vcombine.low %v9020_v12, %v7662_v50  ;;  %v2166_v9 = vrot.slane %v2152_v10, %v6481_v55  ;;  %v2036_v19 = vcombine.high %v9018_v22, %v2023_v31  ;;  %v4638_v2 = vpop.permute.xlu1 %4637  ;;  %v9025_v10 = vld [vmem:[#allocation35_spill] sm:$0xff] }
 0x2fd   : > { %v5628_v3 = vpack.i.bf16 %v2035_v49, %v2171_v24  ;;  %v2172_v25 = vcombine.high %v9019_v38, %v2159_v35  ;;  %v7699_v46 = vrot.slane %v3680_v33, %v6481_v55  ;;  %v2526_v36 = vcombine.high %v9022_v51, %v7383_v1  ;;  %v9028_v49 = vld [vmem:[#allocation33_spill] sm:$0xff] }
 0x2fe   : > { %v7704_v17 = vrot.slane %v3712_v34, %v6481_v55  ;;  %v4453_v41 = vcombine.low %v9024_v23, %v7681_v60  ;;  %v7711_v31 = vrot.slane %v4469_v21, %v6481_v55  ;;  %v2542_v35 = vcombine.high %v2476_v32, %v2492_v57  ;;  %v4642_v34 = vpop.permute.xlu0 %4641  ;;  %v9027_v21 = vld [vmem:[#allocation10_spill] sm:$0xff] }
 0x2ff   : > { %9021 = vst [vmem:[#allocation64_spill] sm:$0xff] %v7699_v46  ;;  %5629 = vrot.lane.b32.xlu0 %v5628_v3, %s5849_s15  ;;  %v5633_v33 = vpack.i.bf16 %v2036_v19, %v2172_v25  ;;  %v3529_v1 = vcombine.high %v6982_v63, %v7415_v13  ;;  %v7719_v38 = vrot.slane %v4437_v6, %v6180_v27  ;;  %v9029_v25 = vld [vmem:[#allocation88_spill] sm:$0xff]  ;;  %v9031_v46 = vld [vmem:[#allocation66_spill] sm:$0xff] }
 0x300   : > { %9023 = vst [vmem:[#allocation44_spill] sm:$0xff] %v7704_v17  ;;  %9026 = vst [vmem:[#allocation87_spill] sm:$0xff] %v7711_v31  ;;  %v7722_v24 = vrot.slane %v4453_v41, %v6180_v27  ;;  %v4827_v51 = vcombine.low %v9027_v21, %v4638_v2  ;;  %v2037_v3 = vcombine.low %v9028_v49, %v2030_v7  ;;  %v9030_v6 = vld [vmem:[#allocation32_spill] sm:$0xff] }
 0x301   : > { %5634 = vrot.lane.b32.xlu1 %v5633_v33, %s5852_s20  ;;  %v2173_v19 = vcombine.low %v9029_v25, %v2166_v9  ;;  %v2558_v63 = vcombine.high %v7286_v45, %v7411_v56  ;;  %v2540_v13 = vrot.slane %v2526_v36, %v6481_v55  ;;  %v2541_v22 = vcombine.low %v2476_v32, %v2492_v57 }
 0x302   : > { %v3139_v17 = vcombine.high %v9031_v46, %v9030_v6  ;;  %v4501_v41 = vcombine.low %v7719_v38, %v7722_v24  ;;  %v4828_v33 = vcombine.high %v9027_v21, %v4638_v2  ;;  %v9034_v15 = vcombine.high %v9032_v5, %v9033_v11 }
 0x303   : > { %v5643_v18 = vpack.i.bf16 %v2037_v3, %v2173_v19  ;;  %v4843_v16 = vcombine.low %v9035_v43, %v4642_v34  ;;  %v2556_v56 = vrot.slane %v2542_v35, %v6481_v55  ;;  %v3513_v32 = vcombine.high %v6976_v47, %v7395_v26  ;;  %v9037_v26 = vld [vmem:[#allocation90_spill] sm:$0xff] }
 0x304   : > { %v5638_v53 = vpack.i.bf16 %v9034_v15, %v2558_v63  ;;  %v7744_v57 = vrot.slane %v3529_v1, %v6180_v27  ;;  %v7747_v46 = vrot.slane %v4501_v41, %v6481_v55  ;;  %v7750_v2 = vrot.slane %v4827_v51, %v6180_v27  ;;  %v9048_v47 = vld [vmem:[#allocation34_spill] sm:$0xff] }
 0x305   : > { %5644 = vrot.lane.b32.xlu1 %v5643_v18, %s5851_s17  ;;  %v4844_v15 = vcombine.high %v9035_v43, %v4642_v34  ;;  %v7756_v36 = vrot.slane %v4843_v16, %v6180_v27  ;;  %v2559_v35 = vcombine.low %v9037_v26, %v2540_v13  ;;  %v2038_v1 = vcombine.high %v9028_v49, %v2030_v7  ;;  %v9039_v16 = vld [vmem:[#allocation46_spill] sm:$0xff]  ;;  %v9040_v34 = vld [vmem:[#allocation65_spill] sm:$0xff] }
 0x306   : > { %9036 = vst [vmem:[#allocation84_spill] sm:$0xff] %v7747_v46  ;;  %5639 = vrot.lane.b32.xlu0 %v5638_v53, %s5848_s14  ;;  %v2174_v21 = vcombine.high %v9029_v25, %v2166_v9  ;;  %v7764_v51 = vrot.slane %v4828_v33, %v6180_v27  ;;  %v3123_v3 = vcombine.high %v9040_v34, %v9039_v16  ;;  %v9041_v49 = vld [vmem:[#allocation70_spill] sm:$0xff]  ;;  %v9042_v9 = vld [vmem:[#allocation4_spill] sm:$0xff]  ;;  %v9045_v34 = vld [vmem:[#allocation9_spill] sm:$0xff] }
 0x307   : > { %v7767_v18 = vrot.slane %v4844_v15, %v6180_v27  ;;  %v3577_v7 = vcombine.high %v7484_v59, %v7487_v48  ;;  %v9043_v25 = vcombine.low %v9041_v49, %v9042_v9  ;;  %v2549_v6 = vrot.slane %v2541_v22, %v6481_v55  ;;  %v9044_v48 = vld [vmem:[#allocation92_spill] sm:$0xff]  ;;  %v9049_v15 = vld [vmem:[#allocation67_spill] sm:$0xff] }
 0x308   : > { %v5653_v63 = vpack.i.bf16 %v2038_v1, %v2174_v21  ;;  %v7782_v41 = vrot.slane %v3513_v32, %v6180_v27  ;;  %v7789_v16 = vrot.slane %v3139_v17, %v6180_v27  ;;  %v3187_v59 = vcombine.high %v7402_v4, %v7405_v29 }
 0x309   : > { %9038 = vst [vmem:[#allocation47_spill] sm:$0xff] %v7767_v18  ;;  %v5648_v19 = vpack.i.bf16 %v9043_v25, %v2559_v35  ;;  %v2563_v22 = vcombine.low %v9044_v48, %v2556_v56  ;;  %v4350_v32 = vcombine.high %v9025_v10, %v7525_v28  ;;  %v4318_v1 = vcombine.high %v7013_v20, %v7462_v61  ;;  %v9046_v25 = vld [vmem:[#allocation68_spill] sm:$0xff]  ;;  %v9113_v18 = vld [vmem:[#allocation79_spill] sm:$0xff] }
 0x30a   : > { %5654 = vrot.lane.b32.xlu0 %v5653_v63, %s5853_s21  ;;  %v3592_v35 = vcombine.low %v7782_v41, %v7744_v57  ;;  %v2560_v17 = vcombine.high %v9037_v26, %v2540_v13  ;;  %v7806_v29 = vrot.slane %v3123_v3, %v6180_v27  ;;  %v7809_v21 = vrot.slane %v3577_v7, %v6481_v55  ;;  %v9051_v26 = vld [vmem:[#allocation91_spill] sm:$0xff] }
 0x30b   : > { %5649 = vrot.lane.b32.xlu1 %v5648_v19, %s5850_s16  ;;  %v9047_v19 = vcombine.low %v9045_v34, %v9046_v25  ;;  %v4302_v33 = vcombine.high %v9049_v15, %v9048_v47  ;;  %v9050_v20 = vcombine.high %v9041_v49, %v9042_v9  ;;  %v2564_v13 = vcombine.high %v9044_v48, %v2556_v56 }
 0x30c   : > { %v2561_v53 = vcombine.low %v9051_v26, %v2549_v6  ;;  %v9052_v3 = vcombine.high %v7355_v30, %v7456_v14  ;;  %v7828_v43 = vrot.slane %v3187_v59, %v6481_v55  ;;  %v3202_v47 = vcombine.low %v7806_v29, %v7789_v16  ;;  %v9056_v59 = vld [vmem:[#allocation40_spill] sm:$0xff] }
 0x30d   : > { %v5673_v63 = vpack.i.bf16 %v9047_v19, %v2563_v22  ;;  %v5658_v61 = vpack.i.bf16 %v9050_v20, %v2560_v17  ;;  %v4454_v49 = vcombine.high %v9024_v23, %v7681_v60  ;;  %v4406_v56 = vcombine.high %v9004_v42, %v9003_v52  ;;  %v9055_v60 = vld [vmem:[#allocation59_spill] sm:$0xff] }
 0x30e   : > { %v7825_v7 = vrot.slane %v9052_v3, %v6481_v55  ;;  %v4422_v9 = vcombine.high %v8993_v44, %v8992_v54  ;;  %v7840_v30 = vrot.slane %v3592_v35, %v6481_v55  ;;  %v7843_v14 = vrot.slane %v4318_v1, %v6180_v27  ;;  %v9054_v44 = vld [vmem:[#allocation95_spill] sm:$0xff]  ;;  %v9057_v35 = vld [vmem:[#allocation72_spill] sm:$0xff]  ;;  %v9058_v1 = vld [vmem:[#allocation69_spill] sm:$0xff] }
 0x30f   : > { %5674 = vrot.lane.b32.xlu1 %v5673_v63, %s5851_s17  ;;  %5659 = vrot.lane.b32.xlu0 %v5658_v61, %s5847_s13  ;;  %v4366_v15 = vcombine.high %v7515_v39, %v7522_v8  ;;  %v4438_v23 = vcombine.high %v9020_v12, %v7662_v50  ;;  %v9053_v52 = vcombine.high %v9045_v34, %v9046_v25  ;;  %v9060_v50 = vld [vmem:[#allocation58_spill] sm:$0xff] }
 0x310   : > { %v3611_v54 = vcombine.high %v9054_v44, %v7809_v21  ;;  %v4811_v48 = vcombine.low %v9056_v59, %v9055_v60  ;;  %v7858_v22 = vrot.slane %v4302_v33, %v6180_v27  ;;  %v9059_v17 = vcombine.low %v9057_v35, %v9058_v1  ;;  %v9061_v12 = vld [vmem:[#allocation38_spill] sm:$0xff] }
 0x311   : > { %v5678_v42 = vpack.i.bf16 %v9053_v52, %v2564_v13  ;;  %v2562_v8 = vcombine.high %v9051_v26, %v2549_v6  ;;  %v4795_v19 = vcombine.low %v9061_v12, %v9060_v50  ;;  %v7867_v34 = vrot.slane %v3202_v47, %v6481_v55  ;;  %v9062_v63 = vld [vmem:[#allocation62_spill] sm:$0xff] }
 0x312   : > { %v5663_v39 = vpack.i.bf16 %v9059_v17, %v2561_v53  ;;  %v4468_v25 = vrot.slane %v4454_v49, %v6180_v27  ;;  %v3221_v33 = vcombine.high %v9062_v63, %v7828_v43  ;;  %v9063_v20 = vcombine.low %v9025_v10, %v7525_v28  ;;  %v9064_v28 = vld [vmem:[#allocation96_spill] sm:$0xff] }
 0x313   : > { %5679 = vrot.lane.b32.xlu1 %v5678_v42, %s5853_s21  ;;  %v7880_v6 = vrot.slane %v4350_v32, %v6481_v55  ;;  %v4436_v61 = vrot.slane %v4422_v9, %v6180_v27  ;;  %v4381_v13 = vcombine.low %v7858_v22, %v7843_v14  ;;  %v7887_v26 = vrot.slane %v4366_v15, %v6481_v55  ;;  %v9066_v15 = vld [vmem:[#allocation86_spill] sm:$0xff] }
 0x314   : > { %v7877_v53 = vrot.slane %v9063_v20, %v6481_v55  ;;  %5664 = vrot.lane.b32.xlu0 %v5663_v39, %s5849_s15  ;;  %v4452_v3 = vrot.slane %v4438_v23, %v6180_v27  ;;  %v5693_v47 = vpack.i.bf16 %v3611_v54, %v3221_v33  ;;  %v3612_v10 = vcombine.low %v9064_v28, %v7840_v30  ;;  %v9068_v20 = vld [vmem:[#allocation100_spill] sm:$0xff] }
 0x315   : > { %v4420_v49 = vrot.slane %v4406_v56, %v6180_v27  ;;  %v7894_v32 = vrot.slane %v4811_v48, %v6180_v27  ;;  %v9065_v9 = vcombine.high %v9057_v35, %v9058_v1  ;;  %v3609_v42 = vcombine.high %v7434_v40, %v7533_v58  ;;  %v9067_v56 = vld [vmem:[#allocation49_spill] sm:$0xff]  ;;  %v9069_v35 = vld [vmem:[#allocation71_spill] sm:$0xff] }
 0x316   : > { %v4470_v17 = vcombine.high %v9066_v15, %v7638_v62  ;;  %v7904_v23 = vrot.slane %v4795_v19, %v6180_v27  ;;  %v4517_v54 = vcombine.low %v4452_v3, %v4468_v25  ;;  %v3222_v48 = vcombine.low %v9067_v56, %v7867_v34  ;;  %v9072_v40 = vld [vmem:[#allocation99_spill] sm:$0xff] }
 0x317   : > { %v5668_v52 = vpack.i.bf16 %v9065_v9, %v2562_v8  ;;  %5694 = vrot.lane.b32.xlu1 %v5693_v47, %s5847_s13  ;;  %v4485_v39 = vcombine.low %v4420_v49, %v4436_v61  ;;  %v4486_v33 = vcombine.high %v4420_v49, %v4436_v61  ;;  %v4707_v1 = vcombine.low %v9069_v35, %v9068_v20  ;;  %v9070_v8 = vld [vmem:[#allocation97_spill] sm:$0xff]  ;;  %v9073_v61 = vld [vmem:[#allocation3_spill] sm:$0xff] }
 0x318   : > { %v9071_v9 = vld [vmem:[#allocation37_spill] sm:$0xff]  ;;  %v4389_v62 = vrot.slane %v4381_v13, %v6481_v55  ;;  %v4518_v19 = vcombine.high %v4452_v3, %v4468_v25  ;;  %v5698_v15 = vpack.i.bf16 %v3612_v10, %v3222_v48  ;;  %v4400_v47 = vcombine.high %v7825_v7, %v7887_v26 }
 0x319   : > { %5669 = vrot.lane.b32.xlu0 %v5668_v52, %s5852_s20  ;;  %v3219_v4 = vcombine.high %v9071_v9, %v9070_v8  ;;  %v4859_v58 = vcombine.low %v7904_v23, %v7894_v32  ;;  %v4691_v49 = vcombine.low %v9073_v61, %v9072_v40  ;;  %v3610_v52 = vcombine.low %v9054_v44, %v7809_v21  ;;  %v9075_v21 = vld [vmem:[#allocation12_spill] sm:$0xff]  ;;  %v9108_v8 = vld [vmem:[#allocation55_spill] sm:$0xff] }
 0x31a   : > { %v4484_v5 = vrot.slane %v4470_v17, %v6481_v55  ;;  %v3593_v13 = vcombine.high %v7782_v41, %v7744_v57  ;;  %v4502_v25 = vcombine.high %v7719_v38, %v7722_v24  ;;  %v4525_v3 = vrot.slane %v4517_v54, %v6481_v55  ;;  %v9074_v24 = vld [vmem:[#allocation73_spill] sm:$0xff]  ;;  %v9110_v9 = vld [vmem:[#allocation107_spill] sm:$0xff] }
 0x31b   : > { %v5683_v11 = vpack.i.bf16 %v3609_v42, %v3219_v4  ;;  %5699 = vrot.lane.b32.xlu1 %v5698_v15, %s5849_s15  ;;  %v4493_v10 = vrot.slane %v4485_v39, %v6481_v55  ;;  %v4382_v4 = vcombine.high %v7858_v22, %v7843_v14  ;;  %v7934_v42 = vrot.slane %v4707_v1, %v6180_v27 }
 0x31c   : > { %v3220_v57 = vcombine.low %v9062_v63, %v7828_v43  ;;  %v4500_v41 = vrot.slane %v4486_v33, %v6481_v55  ;;  %v4532_v38 = vrot.slane %v4518_v19, %v6481_v55  ;;  %v9076_v44 = vcombine.high %v9074_v24, %v9075_v21  ;;  %v9078_v19 = vld [vmem:[#allocation74_spill] sm:$0xff] }
 0x31d   : > { %5684 = vrot.lane.b32.xlu0 %v5683_v11, %s5848_s14  ;;  %v4401_v54 = vcombine.low %v7877_v53, %v4389_v62  ;;  %v3203_v14 = vcombine.high %v7806_v29, %v7789_v16  ;;  %v7948_v22 = vrot.slane %v4691_v49, %v6180_v27  ;;  %v3613_v43 = vcombine.high %v9064_v28, %v7840_v30  ;;  %v9077_v28 = vld [vmem:[#allocation7_spill] sm:$0xff] }
 0x31e   : > { %v5728_v17 = vpack.i.bf16 %v4400_v47, %v9076_v44  ;;  %v5688_v11 = vpack.i.bf16 %v3610_v52, %v3220_v57  ;;  %v7953_v63 = vrot.slane %v3593_v13, %v6481_v55  ;;  %v4516_v48 = vrot.slane %v4502_v25, %v6481_v55  ;;  %v9080_v49 = vld [vmem:[#allocation15_spill] sm:$0xff]  ;;  %v9081_v52 = vld [vmem:[#allocation8_spill] sm:$0xff]  ;;  %v9084_v44 = vld [vmem:[#allocation106_spill] sm:$0xff] }
 0x31f   : > { %v4537_v39 = vcombine.low %v4493_v10, %v4525_v3  ;;  %v4538_v33 = vcombine.high %v4493_v10, %v4525_v3  ;;  %v7958_v1 = vrot.slane %v4382_v4, %v6481_v55  ;;  %v4755_v16 = vcombine.low %v7948_v22, %v7934_v42 }
 0x320   : > { %5729 = vrot.lane.b32.xlu1 %v5728_v17, %s5847_s13  ;;  %v3223_v29 = vcombine.high %v9067_v56, %v7867_v34  ;;  %v4402_v30 = vcombine.high %v7877_v53, %v4389_v62  ;;  %v9079_v15 = vcombine.low %v9077_v28, %v9078_v19  ;;  %v9082_v13 = vcombine.low %v9080_v49, %v9081_v52  ;;  %v9085_v34 = vld [vmem:[#allocation102_spill] sm:$0xff] }
 0x321   : > { %5689 = vrot.lane.b32.xlu0 %v5688_v11, %s5850_s16  ;;  %v9083_v3 = vcombine.high %v9080_v49, %v9081_v52  ;;  %v4539_v4 = vcombine.low %v4500_v41, %v4532_v38  ;;  %v4398_v56 = vcombine.high %v9085_v34, %v9084_v44  ;;  %v4534_v53 = vcombine.high %v7711_v31, %v7747_v46  ;;  %v9097_v46 = vld [vmem:[#allocation81_spill] sm:$0xff]  ;;  %v9107_v44 = vld [vmem:[#allocation18_spill] sm:$0xff] }
 0x322   : > { %v5733_v47 = vpack.i.bf16 %v4401_v54, %v9079_v15  ;;  %v7972_v25 = vpack.i.bf16 %v4537_v39, %v9082_v13  ;;  %v5703_v57 = vpack.i.bf16 %v3613_v43, %v3223_v29  ;;  %v4540_v62 = vcombine.high %v4500_v41, %v4532_v38  ;;  %v9087_v39 = vld [vmem:[#allocation80_spill] sm:$0xff]  ;;  %v9088_v43 = vld [vmem:[#allocation17_spill] sm:$0xff] }
 0x323   : > { %v7977_v10 = vpack.i.bf16 %v4538_v33, %v9083_v3  ;;  %v7984_v17 = vrot.slane %v3203_v14, %v6481_v55  ;;  %v9086_v54 = vcombine.low %v7528_v0, %v7614_v37  ;;  %v9089_v33 = vcombine.low %v9087_v39, %v9088_v43  ;;  %v9091_v14 = vld [vmem:[#allocation13_spill] sm:$0xff] }
 0x324   : > { %5734 = vrot.lane.b32.xlu1 %v5733_v47, %s5849_s15  ;;  %v4535_v15 = vcombine.low %v4484_v5, %v4516_v48  ;;  %v7999_v49 = vrot.slane %v4755_v16, %v6481_v55  ;;  %v9090_v41 = vcombine.low %v7750_v2, %v7756_v36  ;;  %v9092_v47 = vld [vmem:[#allocation31_spill] sm:$0xff]  ;;  %v9094_v3 = vcombine.high %v9087_v39, %v9088_v43 }
 0x325   : > { %v7991_v11 = vrot.slane %v9086_v54, %v6481_v55  ;;  %v7996_v29 = vpack.i.bf16 %v4539_v4, %v9089_v33  ;;  %5704 = vrot.lane.b32.xlu0 %v5703_v57, %s5852_s20  ;;  %v9093_v52 = vcombine.high %v9091_v14, %v9092_v47  ;;  %v9095_v16 = vcombine.high %v9077_v28, %v9078_v19  ;;  %v9101_v47 = vld [vmem:[#allocation82_spill] sm:$0xff]  ;;  %v9103_v43 = vld [vmem:[#allocation27_spill] sm:$0xff] }
 0x326   : > { %v8005_v38 = vrot.slane %v9090_v41, %v6481_v55  ;;  %v8016_v4 = vpack.i.bf16 %v4540_v62, %v9094_v3  ;;  %v4403_v33 = vcombine.low %v7880_v6, %v7958_v1  ;;  %v9096_v41 = vld [vmem:[#allocation83_spill] sm:$0xff]  ;;  %v9102_v62 = vld [vmem:[#allocation30_spill] sm:$0xff]  ;;  %v4536_v19 = vcombine.high %v4484_v5, %v4516_v48 }
 0x327   : > { %v8011_v13 = vpack.i.bf16 %v4534_v53, %v9093_v52  ;;  %v5738_v54 = vpack.i.bf16 %v4402_v30, %v9095_v16  ;;  %v9098_v57 = vcombine.low %v9096_v41, %v9097_v46  ;;  %v8029_v53 = vrot.slane %v4859_v58, %v6481_v55  ;;  %v9100_v52 = vld [vmem:[#allocation56_spill] sm:$0xff]  ;;  %v9105_v30 = vld [vmem:[#allocation98_spill] sm:$0xff]  ;;  %v9106_v16 = vld [vmem:[#allocation53_spill] sm:$0xff] }
 0x328   : > { %v3665_v39 = vcombine.high %v9101_v47, %v9100_v52  ;;  %v9104_v3 = vcombine.high %v9102_v62, %v9103_v43  ;;  %v3614_v28 = vcombine.low %v9105_v30, %v7953_v63  ;;  %v3243_v34 = vcombine.high %v9107_v44, %v9106_v16  ;;  %v9111_v58 = vld [vmem:[#allocation78_spill] sm:$0xff]  ;;  %v9119_v16 = vld [vmem:[#allocation76_spill] sm:$0xff] }
 0x329   : > { %v8026_v31 = vpack.i.bf16 %v4535_v15, %v9098_v57  ;;  %v9109_v15 = vld [vmem:[#allocation19_spill] sm:$0xff]  ;;  %v3275_v45 = vcombine.high %v9111_v58, %v9110_v9  ;;  %5739 = vrot.lane.b32.xlu1 %v5738_v54, %s5852_s20  ;;  %v9115_v5 = vcombine.high %v9096_v41, %v9097_v46  ;;  %v9116_v44 = vld [vmem:[#allocation54_spill] sm:$0xff]  ;;  %v4756_v54 = vcombine.high %v7948_v22, %v7934_v42  ;;  %v9125_v42 = vld [vmem:[#allocation52_spill] sm:$0xff] }
 0x32a   : > { %v5708_v14 = vpack.i.bf16 %v4398_v56, %v9104_v3  ;;  %v3633_v57 = vcombine.high %v9109_v15, %v9108_v8  ;;  %v9114_v56 = vld [vmem:[#allocation93_spill] sm:$0xff]  ;;  %v9122_v15 = vld [vmem:[#allocation75_spill] sm:$0xff]  ;;  %v9124_v9 = vld [vmem:[#allocation14_spill] sm:$0xff] }
 0x32b   : > { %9099 = vst [vmem:[#allocation41_spill] sm:$0xff] %v8026_v31  ;;  %v9112_v31 = vld [vmem:[#allocation57_spill] sm:$0xff]  ;;  %v3224_v52 = vcombine.low %v9114_v56, %v7984_v17  ;;  %v8053_v48 = vpack.i.bf16 %v4536_v19, %v9115_v5  ;;  %v8071_v5 = vrot.slane %v3665_v39, %v6180_v27  ;;  %v9126_v22 = vld [vmem:[#allocation6_spill] sm:$0xff]  ;;  %v8085_v39 = vrot.slane %v3243_v34, %v6180_v27 }
 0x32c   : > { %v3649_v47 = vcombine.high %v9113_v18, %v9112_v31  ;;  %5709 = vrot.lane.b32.xlu0 %v5708_v14, %s5848_s14  ;;  %v9117_v31 = vld [vmem:[#allocation11_spill] sm:$0xff]  ;;  %v4708_v14 = vcombine.high %v9069_v35, %v9068_v20  ;;  %v9118_v3 = vld [vmem:[#allocation77_spill] sm:$0xff]  ;;  %v4724_v35 = vcombine.high %v7528_v0, %v7614_v37  ;;  %v3227_v43 = vcombine.high %v9126_v22, %v9125_v42 }
 0x32d   : > { %v3617_v18 = vcombine.high %v9117_v31, %v9116_v44  ;;  %v9120_v46 = vcombine.low %v9118_v3, %v9119_v16  ;;  %v9121_v19 = vld [vmem:[#allocation105_spill] sm:$0xff]  ;;  %v5713_v8 = vpack.i.bf16 %v3614_v28, %v3224_v52  ;;  %v4399_v44 = vcombine.low %v7825_v7, %v7887_v26  ;;  %v9123_v31 = vld [vmem:[#allocation51_spill] sm:$0xff] }
 0x32e   : > { %v3259_v58 = vcombine.high %v9122_v15, %v9121_v19  ;;  %v4676_v20 = vcombine.high %v9124_v9, %v9123_v31  ;;  %v8088_v28 = vrot.slane %v3633_v57, %v6180_v27  ;;  %v8091_v7 = vrot.slane %v3275_v45, %v6180_v27 }
 0x32f   : > { %v5743_v41 = vpack.i.bf16 %v4403_v33, %v9120_v46  ;;  %v4692_v33 = vcombine.high %v9073_v61, %v9072_v40  ;;  %v8094_v26 = vrot.slane %v3649_v47, %v6180_v27  ;;  %v8098_v0 = vrot.slane %v3617_v18, %v6180_v27 }
 0x330   : > { %5714 = vrot.lane.b32.xlu0 %v5713_v8, %s5851_s17  ;;  %v8101_v40 = vrot.slane %v4708_v14, %v6180_v27  ;;  %v4770_v37 = vrot.slane %v4756_v54, %v6481_v55  ;;  %v4788_v61 = vcombine.high %v7991_v11, %v7999_v49  ;;  %v8107_v34 = vrot.slane %v3259_v58, %v6180_v27  ;;  %v9129_v54 = vld [vmem:[#allocation50_spill] sm:$0xff] }
 0x331   : > { %5744 = vrot.lane.b32.xlu1 %v5743_v41, %s5851_s17  ;;  %v3728_v45 = vcombine.low %v8094_v26, %v8071_v5  ;;  %v9127_v57 = vcombine.low %v9074_v24, %v9075_v21  ;;  %v3615_v52 = vcombine.high %v9105_v30, %v7953_v63  ;;  %v8117_v8 = vrot.slane %v4676_v20, %v6180_v27  ;;  %v9128_v30 = vld [vmem:[#allocation39_spill] sm:$0xff] }
 0x332   : > { %v8120_v9 = vrot.slane %v4692_v33, %v6180_v27  ;;  %v4738_v18 = vrot.slane %v4724_v35, %v6481_v55  ;;  %v8125_v14 = vrot.slane %v3227_v43, %v6180_v27  ;;  %v3696_v24 = vcombine.low %v8098_v0, %v8088_v28 }
 0x333   : > { %v5718_v47 = vpack.i.bf16 %v4399_v44, %v9127_v57  ;;  %v3338_v21 = vcombine.low %v8107_v34, %v8091_v7  ;;  %v3225_v63 = vcombine.high %v9114_v56, %v7984_v17  ;;  %v9130_v46 = vcombine.high %v9128_v30, %v9129_v54  ;;  %v9131_v57 = vld [vmem:[#allocation61_spill] sm:$0xff]  ;;  %v9136_v30 = vld [vmem:[#allocation20_spill] sm:$0xff] }
 0x334   : > { %v4771_v43 = vcombine.low %v8120_v9, %v8101_v40  ;;  %v4789_v19 = vcombine.low %v4738_v18, %v4770_v37  ;;  %v3306_v15 = vcombine.low %v8125_v14, %v8085_v39  ;;  %v3736_v58 = vrot.slane %v3728_v45, %v6481_v55 }
 0x335   : > { %4932 = vrot.lane.b32.xlu1 %v4788_v61, %s5848_s14  ;;  %5719 = vrot.lane.b32.xlu0 %v5718_v47, %s5850_s16  ;;  %v8138_v41 = vrot.slane %v9130_v46, %v6180_v27  ;;  %v5723_v44 = vpack.i.bf16 %v3615_v52, %v3225_v63  ;;  %v4404_v31 = vcombine.high %v7880_v6, %v7958_v1  ;;  %v9132_v47 = vld [vmem:[#allocation63_spill] sm:$0xff]  ;;  %v9134_v63 = vld [vmem:[#allocation109_spill] sm:$0xff] }
 0x336   : > { %v3704_v56 = vrot.slane %v3696_v24, %v6481_v55  ;;  %v3346_v20 = vrot.slane %v3338_v21, %v6481_v55  ;;  %v4014_v35 = vcombine.high %v9118_v3, %v9119_v16  ;;  %v4779_v42 = vrot.slane %v4771_v43, %v6481_v55  ;;  %v9133_v16 = vld [vmem:[#allocation110_spill] sm:$0xff]  ;;  %v9137_v43 = vld [vmem:[#allocation104_spill] sm:$0xff] }
 0x337   : > { %v4739_v17 = vcombine.low %v8138_v41, %v8117_v8  ;;  %v4790_v22 = vcombine.high %v4738_v18, %v4770_v37  ;;  %v3314_v33 = vrot.slane %v3306_v15, %v6481_v55  ;;  %v3713_v52 = vcombine.high %v9132_v47, %v9131_v57  ;;  %v9135_v18 = vld [vmem:[#allocation108_spill] sm:$0xff] }
 0x338   : > { %v5748_v6 = vpack.i.bf16 %v4404_v31, %v4014_v35  ;;  %v3748_v1 = vcombine.low %v3704_v56, %v3736_v58  ;;  %v3749_v3 = vcombine.high %v3704_v56, %v3736_v58  ;;  %v3681_v37 = vcombine.high %v9134_v63, %v9133_v16  ;;  %v9140_v35 = vld [vmem:[#allocation64_spill] sm:$0xff] }
 0x339   : > { %4936 = vrot.lane.b32.xlu1 %v4789_v19, %s5850_s16  ;;  %5724 = vrot.lane.b32.xlu0 %v5723_v44, %s5853_s21  ;;  %v4747_v61 = vrot.slane %v4739_v17, %v6481_v55  ;;  %v3358_v45 = vcombine.low %v3314_v33, %v3346_v20  ;;  %v3323_v54 = vcombine.high %v9136_v30, %v9135_v18  ;;  %v9138_v19 = vld [vmem:[#allocation103_spill] sm:$0xff]  ;;  %v9139_v17 = vld [vmem:[#allocation44_spill] sm:$0xff]  ;;  %v8199_v18 = vpop.permute.xlu1 %5554 }
 0x33a   : > { %v3359_v46 = vcombine.high %v3314_v33, %v3346_v20  ;;  %v3291_v15 = vcombine.high %v9138_v19, %v9137_v43  ;;  %v3727_v44 = vrot.slane %v3713_v52, %v6481_v55  ;;  %v3745_v58 = vcombine.high %v9140_v35, %v9139_v17  ;;  %v9144_v43 = vld [vmem:[#allocation47_spill] sm:$0xff] }
 0x33b   : > { %v4791_v24 = vcombine.low %v4747_v61, %v4779_v42  ;;  %v5768_v21 = vpack.i.bf16 %v3748_v1, %v3358_v45  ;;  %v4792_v31 = vcombine.high %v4747_v61, %v4779_v42  ;;  %v9141_v1 = vld [vmem:[#allocation16_spill] sm:$0xff]  ;;  %v8180_v42 = vpop.permute.xlu0 %5544  ;;  %v3729_v52 = vcombine.high %v8094_v26, %v8071_v5 }
 0x33c   : > { %v5773_v56 = vpack.i.bf16 %v3749_v3, %v3359_v46  ;;  %v9142_v45 = vld [vmem:[#allocation36_spill] sm:$0xff]  ;;  %v3305_v20 = vrot.slane %v3291_v15, %v6481_v55  ;;  %v3697_v3 = vcombine.high %v8098_v0, %v8088_v28  ;;  %v3339_v16 = vcombine.high %v8107_v34, %v8091_v7 }
 0x33d   : > { %4940 = vrot.lane.b32.xlu1 %v4790_v22, %s5847_s13  ;;  %5749 = vrot.lane.b32.xlu0 %v5748_v6, %s5853_s21  ;;  %v3695_v22 = vrot.slane %v3681_v37, %v6481_v55  ;;  %v3337_v6 = vrot.slane %v3323_v54, %v6481_v55  ;;  %v3355_v57 = vcombine.high %v9142_v45, %v9141_v1 }
 0x33e   : > { %v3743_v5 = vrot.slane %v3729_v52, %v6481_v55  ;;  %v3711_v28 = vrot.slane %v3697_v3, %v6481_v55  ;;  %v3353_v7 = vrot.slane %v3339_v16, %v6481_v55  ;;  %v4812_v0 = vcombine.high %v9056_v59, %v9055_v60 }
 0x33f   : > { %v5753_v33 = vpack.i.bf16 %v3745_v58, %v3355_v57  ;;  %v3746_v47 = vcombine.low %v3695_v22, %v3727_v44  ;;  %v3356_v61 = vcombine.low %v3305_v20, %v3337_v6  ;;  %v3357_v63 = vcombine.high %v3305_v20, %v3337_v6  ;;  %v8192_v37 = vpop.permute.xlu0 %5549 }
 0x340   : > { %v3750_v34 = vcombine.low %v3711_v28, %v3743_v5  ;;  %v9143_v30 = vcombine.high %v7750_v2, %v7756_v36  ;;  %v4826_v59 = vrot.slane %v4812_v0, %v6180_v27  ;;  %v9145_v19 = vcombine.low %v7764_v51, %v9144_v43 }
 0x341   : > { %4944 = vrot.lane.b32.xlu1 %v4791_v24, %s5849_s15  ;;  %5769 = vrot.lane.b32.xlu0 %v5768_v21, %s5849_s15  ;;  %v5758_v24 = vpack.i.bf16 %v3746_v47, %v3356_v61  ;;  %v3747_v21 = vcombine.high %v3695_v22, %v3727_v44  ;;  %v9147_v61 = vcombine.high %v7764_v51, %v9144_v43 }
 0x342   : > { %v4906_v54 = vrot.slane %v9143_v30, %v6481_v55  ;;  %v4915_v15 = vrot.slane %v9145_v19, %v6481_v55  ;;  %v4740_v16 = vcombine.high %v8138_v41, %v8117_v8  ;;  %v9151_v41 = vld [vmem:[#allocation2_spill] sm:$0xff] }
 0x343   : > { %v5763_v26 = vpack.i.bf16 %v3747_v21, %v3357_v63  ;;  %v8217_v46 = vpop.permute.xlu0 %5564  ;;  %v4922_v52 = vrot.slane %v9147_v61, %v6481_v55  ;;  %v5002_v61 = vld [vmem:[%s8534_s4] sm:$0x7] }
 0x345   : > { %4948 = vrot.lane.b32.xlu1 %v4792_v31, %s5852_s20  ;;  %5774 = vrot.lane.b32.xlu0 %v5773_v56, %s5852_s20  ;;  %v9146_v31 = vld [vmem:[#allocation41_spill] sm:$0xff] }
 0x349   : > { %5754 = vrot.lane.b32.xlu1 %v5753_v33, %s5848_s14  ;;  %5804 = vrot.lane.b32.xlu0 %v7972_v25, %s5849_s15  ;;  %v3307_v25 = vcombine.high %v8125_v14, %v8085_v39  ;;  %v4796_v14 = vcombine.high %v9061_v12, %v9060_v50  ;;  %v4772_v33 = vcombine.high %v8120_v9, %v8101_v40 }
 0x34b   : > { %v3321_v39 = vrot.slane %v3307_v25, %v6481_v55  ;;  %v4786_v40 = vrot.slane %v4772_v33, %v6481_v55 }
 0x34d   : > { %5759 = vrot.lane.b32.xlu1 %v5758_v24, %s5850_s16  ;;  %5809 = vrot.lane.b32.xlu0 %v7977_v10, %s5852_s20  ;;  %v4860_v10 = vcombine.high %v7904_v23, %v7894_v32  ;;  %v3360_v60 = vcombine.low %v3321_v39, %v3353_v7  ;;  %v8222_v32 = vpop.permute.xlu1 %5559  ;;  %v4810_v23 = vrot.slane %v4796_v14, %v6180_v27 }
 0x34e   : > { %v3361_v27 = vcombine.high %v3321_v39, %v3353_v7 }
 0x34f   : > { %v4874_v50 = vrot.slane %v4860_v10, %v6481_v55  ;;  %v5783_v12 = vpack.i.bf16 %v3750_v34, %v3360_v60  ;;  %v4875_v36 = vcombine.low %v4810_v23, %v4826_v59  ;;  %v4876_v20 = vcombine.high %v4810_v23, %v4826_v59 }
 0x350   : > { %v5854_v34 = vmov 0  }
 0x351   : > { %5764 = vrot.lane.b32.xlu1 %v5763_v26, %s5847_s13  ;;  %5814 = vrot.lane.b32.xlu0 %v7996_v29, %s5851_s17  ;;  %v4925_v2 = vcombine.low %v4874_v50, %v4906_v54  ;;  %v8229_v29 = vpop.permute.xlu0 %5574  ;;  %v4926_v44 = vcombine.high %v4874_v50, %v4906_v54  ;;  %v4883_v58 = vrot.slane %v4875_v36, %v6481_v55  ;;  %v9148_v26 = vld [vmem:[#allocation28_spill] sm:$0xff] }
 0x352   : > { %v4890_v9 = vrot.slane %v4876_v20, %v6481_v55  ;;  %5823 = vset.pattern.permute.xlu0 %v5854_v34  ;;  %v4754_v54 = vrot.slane %v4740_v16, %v6481_v55 }
 0x353   : > { %v4927_v6 = vcombine.low %v4883_v58, %v4915_v15  ;;  %v4928_v24 = vcombine.high %v4883_v58, %v4915_v15 }
 0x354   : > { %v4929_v39 = vcombine.low %v4890_v9, %v4922_v52  ;;  %v4930_v23 = vcombine.high %v4890_v9, %v4922_v52  ;;  %v4794_v33 = vcombine.high %v4754_v54, %v4786_v40 }
 0x355   : > { %5779 = vrot.lane.b32.xlu1 %v8011_v13, %s5848_s14  ;;  %5819 = vrot.lane.b32.xlu0 %v8016_v4, %s5853_s21  ;;  %v3751_v13 = vcombine.high %v3711_v28, %v3743_v5  ;;  %v8236_v4 = vpop.permute.xlu1 %5569  ;;  %v4924_v5 = vcombine.high %v8029_v53, %v8005_v38  ;;  %v9149_v28 = vld [vmem:[#allocation25_spill] sm:$0xff] }
 0x356   : > { %v5580_v56 = vpop.permute.xlu0 %5579  ;;  %v9150_v7 = vcombine.low %v9148_v26, %v9149_v28  ;;  %v9154_v26 = vld [vmem:[#allocation21_spill] sm:$0xff]  ;;  %v9155_v28 = vld [vmem:[#allocation22_spill] sm:$0xff] }
 0x357   : > { %v5793_v22 = vpack.i.bf16 %v3751_v13, %v3361_v27  ;;  %v5582_v21 = vunpack.i.h.bf16 %v5580_v56  ;;  %v5581_v3 = vunpack.i.l.bf16 %v5580_v56 }
 0x359   : > { %5784 = vrot.lane.b32.xlu1 %v5783_v12, %s5851_s17  ;;  %4964 = vrot.lane.b32.xlu0 %v4925_v2, %s5850_s16  ;;  %v5585_v57 = vpop.permute.xlu1 %5584  ;;  %v3028_v8 = vsel %vm1818_vm5, %v9150_v7, %v5582_v21  ;;  %v4793_v12 = vcombine.low %v4754_v54, %v4786_v40  ;;  %v5546_v40 = vunpack.i.l.bf16 %v8180_v42  ;;  %v9156_v7 = vcombine.low %v9154_v26, %v9155_v28 }
 0x35a   : > { %v5587_v25 = vunpack.i.h.bf16 %v5585_v57  ;;  %v5586_v51 = vunpack.i.l.bf16 %v5585_v57  ;;  %v5556_v54 = vunpack.i.l.bf16 %v8199_v18 }
 0x35b   : > { %v5600_v47 = vpop.permute.xlu0 %5599 }
 0x35c   : > { %v3029_v59 = vsel %vm1820_vm6, %v3028_v8, %v5587_v25  ;;  %v5602_v36 = vunpack.i.h.bf16 %v5600_v47  ;;  %v5601_v13 = vunpack.i.l.bf16 %v5600_v47  ;;  %v5552_v25 = vunpack.i.h.bf16 %v8192_v37 }
 0x35d   : > { %5789 = vrot.lane.b32.xlu1 %v9146_v31, %s5850_s16  ;;  %4968 = vrot.lane.b32.xlu0 %v4926_v44, %s5847_s13  ;;  %v5590_v63 = vpop.permute.xlu1 %5589  ;;  %v1819_v8 = vsel %vm1818_vm5, %v9156_v7, %v5546_v40  ;;  %v5577_v7 = vunpack.i.h.bf16 %v8229_v29 }
 0x35e   : > { %v5592_v14 = vunpack.i.h.bf16 %v5590_v63  ;;  %v5591_v30 = vunpack.i.l.bf16 %v5590_v63  ;;  %v5547_v63 = vunpack.i.h.bf16 %v8180_v42 }
 0x360   : > { %v3030_v15 = vsel %vm1822_vm7, %v3029_v59, %v5592_v14 }
 0x361   : > { %5794 = vrot.lane.b32.xlu1 %v5793_v22, %s5853_s21  ;;  %4972 = vrot.lane.b32.xlu0 %v4927_v6, %s5849_s15 }
 0x362   : > { %v5605_v60 = vpop.permute.xlu0 %5604 }
 0x363   : > { %v5607_v44 = vunpack.i.h.bf16 %v5605_v60  ;;  %v5606_v31 = vunpack.i.l.bf16 %v5605_v60 }
 0x364   : > { %v5595_v2 = vpop.permute.xlu1 %5594 }
 0x365   : > { %5799 = vrot.lane.b32.xlu1 %v8053_v48, %s5847_s13  ;;  %4976 = vrot.lane.b32.xlu0 %v4928_v24, %s5852_s20  ;;  %v9152_v48 = vld [vmem:[#allocation5_spill] sm:$0xff]  ;;  %v5597_v43 = vunpack.i.h.bf16 %v5595_v2  ;;  %v5596_v19 = vunpack.i.l.bf16 %v5595_v2 }
 0x366   : > { %v9153_v0 = vcombine.low %v9151_v41, %v9152_v48  ;;  %v9157_v41 = vld [vmem:[#allocation23_spill] sm:$0xff]  ;;  %v9158_v48 = vld [vmem:[#allocation24_spill] sm:$0xff] }
 0x367   : > { %v5610_v27 = vpop.permute.xlu0 %5609  ;;  %v3031_v56 = vsel %vm1824_vm8, %v3030_v15, %v5597_v43  ;;  %v9161_v43 = vld [vmem:[#allocation45_spill] sm:$0xff] }
 0x368   : > { %v2621_v10 = vsel %vm1818_vm5, %v9153_v0, %v5581_v3  ;;  %v5612_v22 = vunpack.i.h.bf16 %v5610_v27  ;;  %v5611_v6 = vunpack.i.l.bf16 %v5610_v27  ;;  %v3032_v20 = vsel %vm1826_vm9, %v3031_v56, %v5602_v36  ;;  %v5615_v47 = vpop.permute.xlu1 %5614  ;;  %v9163_v15 = vld [vmem:[#allocation85_spill] sm:$0xff] }
 0x369   : > { %4960 = vrot.lane.b32.xlu1 %v4924_v5, %s5848_s14  ;;  %4980 = vrot.lane.b32.xlu0 %v4929_v39, %s5851_s17  ;;  %v2622_v50 = vsel %vm1820_vm6, %v2621_v10, %v5586_v51  ;;  %v3033_v24 = vsel %vm1828_vm10, %v3032_v20, %v5607_v44  ;;  %v5551_v51 = vunpack.i.l.bf16 %v8192_v37  ;;  %v9159_v0 = vcombine.low %v9157_v41, %v9158_v48  ;;  %v9164_v44 = vld [vmem:[#allocation60_spill] sm:$0xff] }
 0x36a   : > { %v2623_v55 = vsel %vm1822_vm7, %v2622_v50, %v5591_v30  ;;  %v8290_v3 = vsel %vm1830_vm11, %v3033_v24, %v5612_v22  ;;  %v5617_v34 = vunpack.i.h.bf16 %v5615_v47  ;;  %v5616_v14 = vunpack.i.l.bf16 %v5615_v47 }
 0x36b   : > { %v2624_v58 = vsel %vm1824_vm8, %v2623_v55, %v5596_v19  ;;  %v1832_v10 = vsel %vm1818_vm5, %v9159_v0, %v5547_v63  ;;  %v1821_v39 = vsel %vm1820_vm6, %v1819_v8, %v5551_v51  ;;  %v5557_v37 = vunpack.i.h.bf16 %v8199_v18 }
 0x36c   : > { %v2625_v57 = vsel %vm1826_vm9, %v2624_v58, %v5601_v13  ;;  %v5620_v9 = vpop.permute.xlu0 %5619  ;;  %v1833_v42 = vsel %vm1820_vm6, %v1832_v10, %v5552_v25  ;;  %v1823_v2 = vsel %vm1822_vm7, %v1821_v39, %v5556_v54  ;;  %v9160_v13 = vld [vmem:[#allocation42_spill] sm:$0xff]  ;;  %v5566_v20 = vunpack.i.l.bf16 %v8217_v46 }
 0x36d   : > { %4952 = vrot.lane.b32.xlu1 %v4793_v12, %s5851_s17  ;;  %4984 = vrot.lane.b32.xlu0 %v4930_v23, %s5853_s21  ;;  %v2626_v52 = vsel %vm1828_vm10, %v2625_v57, %v5606_v31  ;;  %v5625_v5 = vpop.permute.xlu1 %5624  ;;  %v5622_v60 = vunpack.i.h.bf16 %v5620_v9  ;;  %v5621_v59 = vunpack.i.l.bf16 %v5620_v9  ;;  %v5562_v12 = vunpack.i.h.bf16 %v8222_v32 }
 0x36e   : > { %v8287_v21 = vsel %vm1830_vm11, %v2626_v52, %v5611_v6  ;;  %v5561_v23 = vunpack.i.l.bf16 %v8222_v32  ;;  %v1834_v36 = vsel %vm1822_vm7, %v1833_v42, %v5557_v37  ;;  %v9162_v19 = vcombine.low %v9160_v13, %v9161_v43 }
 0x36f   : > { %v5508_v16 = vpack.c.bf16 %v8290_v3, %v8287_v21  ;;  %v9165_v31 = vcombine.low %v9163_v15, %v9164_v44  ;;  %v5627_v27 = vunpack.i.h.bf16 %v5625_v5  ;;  %v5626_v58 = vunpack.i.l.bf16 %v5625_v5 }
 0x370   : > { %v2231_v55 = vsel %vm1818_vm5, %v9162_v19, %v5617_v34  ;;  %v5567_v57 = vunpack.i.h.bf16 %v8217_v46  ;;  %v1835_v52 = vsel %vm1824_vm8, %v1834_v36, %v5562_v12  ;;  %v5576_v8 = vunpack.i.l.bf16 %v8229_v29 }
 0x371   : > { %4956 = vrot.lane.b32.xlu1 %v4794_v33, %s5853_s21  ;;  %5005 = vperm.xlu0 %5823, %v5002_v61   ;;  %v5630_v30 = vpop.permute.xlu0 %5629  ;;  %v2238_v18 = vsel %vm1818_vm5, %v9165_v31, %v5616_v14  ;;  %v2232_v56 = vsel %vm1820_vm6, %v2231_v55, %v5622_v60  ;;  %v1825_v61 = vsel %vm1824_vm8, %v1823_v2, %v5561_v23  ;;  %v5572_v41 = vunpack.i.h.bf16 %v8236_v4 }
 0x372   : > { %v2239_v32 = vsel %vm1820_vm6, %v2238_v18, %v5621_v59  ;;  %v5632_v22 = vunpack.i.h.bf16 %v5630_v30  ;;  %v5631_v6 = vunpack.i.l.bf16 %v5630_v30  ;;  %v2233_v24 = vsel %vm1822_vm7, %v2232_v56, %v5627_v27  ;;  %v9166_v56 = vld [vmem:[#allocation89_spill] sm:$0xff] }
 0x373   : > { %v5635_v50 = vpop.permute.xlu1 %5634  ;;  %v2240_v63 = vsel %vm1822_vm7, %v2239_v32, %v5626_v58  ;;  %v1827_v46 = vsel %vm1826_vm9, %v1825_v61, %v5566_v20  ;;  %v1836_v28 = vsel %vm1826_vm9, %v1835_v52, %v5567_v57  ;;  %v5571_v48 = vunpack.i.l.bf16 %v8236_v4  ;;  %v9167_v32 = vld [vmem:[#allocation48_spill] sm:$0xff]  ;;  %v9169_v57 = vld [vmem:[#allocation29_spill] sm:$0xff]  ;;  %v9170_v20 = vld [vmem:[#allocation26_spill] sm:$0xff] }
 0x374   : > { %v5637_v40 = vunpack.i.h.bf16 %v5635_v50  ;;  %v5636_v9 = vunpack.i.l.bf16 %v5635_v50  ;;  %v2234_v25 = vsel %vm1824_vm8, %v2233_v24, %v5632_v22  ;;  %v2241_v51 = vsel %vm1824_vm8, %v2240_v63, %v5631_v6 }
 0x375   : > { %v1829_v30 = vsel %vm1828_vm10, %v1827_v46, %v5571_v48  ;;  %v1837_v29 = vsel %vm1828_vm10, %v1836_v28, %v5572_v41  ;;  %v9168_v22 = vcombine.low %v9166_v56, %v9167_v32 }
 0x376   : > { %v2235_v39 = vsel %vm1826_vm9, %v2234_v25, %v5637_v40  ;;  %v2242_v42 = vsel %vm1826_vm9, %v2241_v51, %v5636_v9  ;;  %v1831_v60 = vsel %vm1830_vm11, %v1829_v30, %v5576_v8  ;;  %v1838_v59 = vsel %vm1830_vm11, %v1837_v29, %v5577_v7 }
 0x377   : > { %v5645_v33 = vpop.permute.xlu1 %5644 }
 0x378   : > { %v5640_v47 = vpop.permute.xlu0 %5639  ;;  %v5647_v5 = vunpack.i.h.bf16 %v5645_v33  ;;  %v5646_v26 = vunpack.i.l.bf16 %v5645_v33  ;;  %v9171_v33 = vcombine.low %v9169_v57, %v9170_v20 }
 0x379   : > { %v5642_v13 = vunpack.i.h.bf16 %v5640_v47  ;;  %v5641_v43 = vunpack.i.l.bf16 %v5640_v47 }
 0x37a   : > { %v2236_v37 = vsel %vm1828_vm10, %v2235_v39, %v5647_v5  ;;  %v2243_v54 = vsel %vm1828_vm10, %v2242_v42, %v5646_v26 }
 0x37b   : > { %v2628_v6 = vsel %vm1818_vm5, %v9168_v22, %v5641_v43  ;;  %v3035_v61 = vsel %vm1818_vm5, %v9171_v33, %v5642_v13  ;;  %v9175_v43 = vld [vmem:[#allocation37_spill] sm:$0xff] }
 0x37c   : > { %v5655_v10 = vpop.permute.xlu0 %5654 }
 0x37d   : > { %v5650_v0 = vpop.permute.xlu1 %5649  ;;  %v5657_v34 = vunpack.i.h.bf16 %v5655_v10  ;;  %v5656_v14 = vunpack.i.l.bf16 %v5655_v10 }
 0x37e   : > { %v5652_v55 = vunpack.i.h.bf16 %v5650_v0  ;;  %v5651_v15 = vunpack.i.l.bf16 %v5650_v0 }
 0x37f   : > { %v2237_v4 = vsel %vm1830_vm11, %v2236_v37, %v5657_v34  ;;  %v2244_v50 = vsel %vm1830_vm11, %v2243_v54, %v5656_v14 }
 0x380   : > { %v5504_v12 = vpack.c.bf16 %v2237_v4, %v1831_v60  ;;  %v5502_v2 = vpack.c.bf16 %v2244_v50, %v1838_v59  ;;  %v2629_v47 = vsel %vm1820_vm6, %v2628_v6, %v5651_v15  ;;  %v3036_v24 = vsel %vm1820_vm6, %v3035_v61, %v5652_v55 }
 0x381   : > { %v5675_v23 = vpop.permute.xlu1 %5674  ;;  %v5660_v36 = vpop.permute.xlu0 %5659 }
 0x382   : > { %5503 = vmatprep.subr.bf16.mxu0 %v5502_v2  ;;  %v5662_v31 = vunpack.i.h.bf16 %v5660_v36  ;;  %v5661_v18 = vunpack.i.l.bf16 %v5660_v36  ;;  %v5677_v5 = vunpack.i.h.bf16 %v5675_v23  ;;  %v5676_v26 = vunpack.i.l.bf16 %v5675_v23  ;;  %v9172_v23 = vld [vmem:[#allocation94_spill] sm:$0xff]  ;;  %v9173_v2 = vld [vmem:[#allocation101_spill] sm:$0xff] }
 0x383   : > { %5505 = vmatpush1.bf16.msra.mxu0 %v5504_v12  ;;  %v9174_v36 = vcombine.low %v9172_v23, %v9173_v2 }
 0x384   : > { %v2630_v40 = vsel %vm1822_vm7, %v2629_v47, %v5661_v18  ;;  %v3037_v9 = vsel %vm1822_vm7, %v3036_v24, %v5662_v31 }
 0x385   : > { %v5680_v19 = vpop.permute.xlu1 %5679 }
 0x386   : > { %v5665_v44 = vpop.permute.xlu0 %5664  ;;  %v5682_v7 = vunpack.i.h.bf16 %v5680_v19  ;;  %v5681_v8 = vunpack.i.l.bf16 %v5680_v19  ;;  %v9176_v19 = vld [vmem:[#allocation97_spill] sm:$0xff] }
 0x387   : > { %v5667_v27 = vunpack.i.h.bf16 %v5665_v44  ;;  %v5666_v58 = vunpack.i.l.bf16 %v5665_v44  ;;  %v9177_v55 = vcombine.low %v9175_v43, %v9176_v19 }
 0x389   : > { %v5695_v52 = vpop.permute.xlu1 %5694  ;;  %v2631_v46 = vsel %vm1824_vm8, %v2630_v40, %v5666_v58  ;;  %v3038_v28 = vsel %vm1824_vm8, %v3037_v9, %v5667_v27 }
 0x38a   : > { %v5697_v50 = vunpack.i.h.bf16 %v5695_v52  ;;  %v5696_v12 = vunpack.i.l.bf16 %v5695_v52 }
 0x38b   : > { %v5670_v63 = vpop.permute.xlu0 %5669 }
 0x38c   : > { %v5672_v25 = vunpack.i.h.bf16 %v5670_v63  ;;  %v5671_v51 = vunpack.i.l.bf16 %v5670_v63 }
 0x38d   : > { %v5700_v0 = vpop.permute.xlu1 %5699 }
 0x38e   : > { %v2632_v41 = vsel %vm1826_vm9, %v2631_v46, %v5671_v51  ;;  %v3039_v48 = vsel %vm1826_vm9, %v3038_v28, %v5672_v25  ;;  %v5702_v22 = vunpack.i.h.bf16 %v5700_v0  ;;  %v5701_v6 = vunpack.i.l.bf16 %v5700_v0  ;;  %v9178_v46 = vld [vmem:[#allocation102_spill] sm:$0xff] }
 0x38f   : > { %v5685_v10 = vpop.permute.xlu0 %5684  ;;  %v2633_v39 = vsel %vm1828_vm10, %v2632_v41, %v5676_v26  ;;  %v3040_v42 = vsel %vm1828_vm10, %v3039_v48, %v5677_v5  ;;  %v9179_v28 = vld [vmem:[#allocation106_spill] sm:$0xff]  ;;  %v9181_v41 = vld [vmem:[#allocation27_spill] sm:$0xff] }
 0x390   : > { %v2634_v34 = vsel %vm1830_vm11, %v2633_v39, %v5681_v8  ;;  %v3041_v14 = vsel %vm1830_vm11, %v3040_v42, %v5682_v7  ;;  %v5687_v30 = vunpack.i.h.bf16 %v5685_v10  ;;  %v5686_v37 = vunpack.i.l.bf16 %v5685_v10 }
 0x391   : > { %v5506_v54 = vpack.c.bf16 %v3041_v14, %v2634_v34  ;;  %v9180_v7 = vcombine.low %v9178_v46, %v9179_v28  ;;  %v9182_v48 = vcombine.low %v9102_v62, %v9181_v41 }
 0x392   : > { %v5730_v29 = vpop.permute.xlu1 %5729  ;;  %v3808_v13 = vsel %vm1818_vm5, %v9174_v36, %v5687_v30  ;;  %v3418_v15 = vsel %vm1818_vm5, %v9177_v55, %v5686_v37 }
 0x393   : > { %v5690_v60 = vpop.permute.xlu0 %5689  ;;  %5507 = vmatprep.subr.bf16.mxu0 %v5506_v54  ;;  %v5732_v47 = vunpack.i.h.bf16 %v5730_v29  ;;  %v5731_v24 = vunpack.i.l.bf16 %v5730_v29 }
 0x394   : > { %v5692_v4 = vunpack.i.h.bf16 %v5690_v60  ;;  %v5691_v59 = vunpack.i.l.bf16 %v5690_v60  ;;  %5509 = vmatpush1.bf16.msra.mxu0 %v5508_v16 }
 0x396   : > { %v3419_v44 = vsel %vm1820_vm6, %v3418_v15, %v5691_v59  ;;  %v3809_v31 = vsel %vm1820_vm6, %v3808_v13, %v5692_v4  ;;  %v5735_v18 = vpop.permute.xlu1 %5734 }
 0x397   : > { %v3420_v21 = vsel %vm1822_vm7, %v3419_v44, %v5696_v12  ;;  %v3810_v3 = vsel %vm1822_vm7, %v3809_v31, %v5697_v50  ;;  %v5705_v16 = vpop.permute.xlu0 %5704  ;;  %v5737_v25 = vunpack.i.h.bf16 %v5735_v18  ;;  %v5736_v51 = vunpack.i.l.bf16 %v5735_v18 }
 0x398   : > { %v5707_v33 = vunpack.i.h.bf16 %v5705_v16  ;;  %v5706_v61 = vunpack.i.l.bf16 %v5705_v16  ;;  %v3421_v63 = vsel %vm1824_vm8, %v3420_v21, %v5701_v6  ;;  %v3811_v40 = vsel %vm1824_vm8, %v3810_v3, %v5702_v22 }
 0x39a   : > { %v3422_v42 = vsel %vm1826_vm9, %v3421_v63, %v5706_v61  ;;  %v3812_v34 = vsel %vm1826_vm9, %v3811_v40, %v5707_v33 }
 0x39b   : > { %v5740_v27 = vpop.permute.xlu1 %5739 }
 0x39c   : > { %v5742_v54 = vunpack.i.h.bf16 %v5740_v27  ;;  %v5741_v29 = vunpack.i.l.bf16 %v5740_v27 }
 0x39e   : > { %v5710_v58 = vpop.permute.xlu0 %5709 }
 0x39f   : > { %v5712_v57 = vunpack.i.h.bf16 %v5710_v58  ;;  %v5711_v20 = vunpack.i.l.bf16 %v5710_v58 }
 0x3a1   : > { %v4597_v8 = vsel %vm1818_vm5, %v9180_v7, %v5712_v57  ;;  %v4207_v0 = vsel %vm1818_vm5, %v9182_v48, %v5711_v20  ;;  %v9183_v48 = vcombine.low %v9140_v35, %v9139_v17 }
 0x3a2   : > { %v5715_v32 = vpop.permute.xlu0 %5714 }
 0x3a3   : > { %v5745_v56 = vpop.permute.xlu1 %5744  ;;  %v5717_v10 = vunpack.i.h.bf16 %v5715_v32  ;;  %v5716_v39 = vunpack.i.l.bf16 %v5715_v32 }
 0x3a4   : > { %v5747_v44 = vunpack.i.h.bf16 %v5745_v56  ;;  %v5746_v31 = vunpack.i.l.bf16 %v5745_v56 }
 0x3a5   : > { %v3423_v2 = vsel %vm1828_vm10, %v3422_v42, %v5716_v39  ;;  %v3813_v36 = vsel %vm1828_vm10, %v3812_v34, %v5717_v10  ;;  %v9184_v10 = vcombine.low %v9142_v45, %v9141_v1 }
 0x3a7   : > { %v8383_v52 = vpop.permute.xlu1 %4932  ;;  %v5720_v9 = vpop.permute.xlu0 %5719 }
 0x3a8   : > { %v5722_v5 = vunpack.i.h.bf16 %v5720_v9  ;;  %v5721_v26 = vunpack.i.l.bf16 %v5720_v9 }
 0x3aa   : > { %v4208_v14 = vsel %vm1820_vm6, %v4207_v0, %v5721_v26  ;;  %v4598_v30 = vsel %vm1820_vm6, %v4597_v8, %v5722_v5 }
 0x3ab   : > { %v8399_v37 = vpop.permute.xlu1 %4936  ;;  %v4209_v60 = vsel %vm1822_vm7, %v4208_v14, %v5731_v24  ;;  %v4599_v62 = vsel %vm1822_vm7, %v4598_v30, %v5732_v47  ;;  %v5725_v4 = vpop.permute.xlu0 %5724 }
 0x3ac   : > { %v4210_v59 = vsel %vm1824_vm8, %v4209_v60, %v5736_v51  ;;  %v4600_v50 = vsel %vm1824_vm8, %v4599_v62, %v5737_v25  ;;  %v5727_v12 = vunpack.i.h.bf16 %v5725_v4  ;;  %v5726_v23 = vunpack.i.l.bf16 %v5725_v4 }
 0x3ad   : > { %v4211_v55 = vsel %vm1826_vm9, %v4210_v59, %v5741_v29  ;;  %v4601_v15 = vsel %vm1826_vm9, %v4600_v50, %v5742_v54 }
 0x3ae   : > { %v8408_v13 = vsel %vm1830_vm11, %v3423_v2, %v5726_v23  ;;  %v8411_v43 = vsel %vm1830_vm11, %v3813_v36, %v5727_v12  ;;  %v4212_v27 = vsel %vm1828_vm10, %v4211_v55, %v5746_v31  ;;  %v4602_v58 = vsel %vm1828_vm10, %v4601_v15, %v5747_v44 }
 0x3af   : > { %v8413_v19 = vpop.permute.xlu1 %4940  ;;  %v5512_v18 = vpack.c.bf16 %v8411_v43, %v8408_v13  ;;  %v5750_v21 = vpop.permute.xlu0 %5749 }
 0x3b0   : > { %v5752_v3 = vunpack.i.h.bf16 %v5750_v21  ;;  %v5751_v16 = vunpack.i.l.bf16 %v5750_v21 }
 0x3b2   : > { %v8422_v32 = vsel %vm1830_vm11, %v4212_v27, %v5751_v16  ;;  %v8425_v22 = vsel %vm1830_vm11, %v4602_v58, %v5752_v3 }
 0x3b3   : > { %v8427_v6 = vpop.permute.xlu1 %4944  ;;  %v5516_v56 = vpack.c.bf16 %v8425_v22, %v8422_v32  ;;  %v5770_v57 = vpop.permute.xlu0 %5769 }
 0x3b4   : > { %v5772_v29 = vunpack.i.h.bf16 %v5770_v57  ;;  %v5771_v60 = vunpack.i.l.bf16 %v5770_v57 }
 0x3b7   : > { %v8431_v20 = vpop.permute.xlu1 %4948  ;;  %v5775_v33 = vpop.permute.xlu0 %5774 }
 0x3b8   : > { %v5777_v59 = vunpack.i.h.bf16 %v5775_v33  ;;  %v5776_v50 = vunpack.i.l.bf16 %v5775_v33 }
 0x3bb   : > { %v5755_v61 = vpop.permute.xlu1 %5754  ;;  %v8433_v47 = vpop.permute.xlu0 %5804 }
 0x3bc   : > { %v5757_v51 = vunpack.i.h.bf16 %v5755_v61  ;;  %v5756_v5 = vunpack.i.l.bf16 %v5755_v61  ;;  %v5807_v33 = vunpack.i.h.bf16 %v8433_v47 }
 0x3be   : > { %v3815_v0 = vsel %vm1818_vm5, %v9183_v48, %v5757_v51  ;;  %v3425_v39 = vsel %vm1818_vm5, %v9184_v10, %v5756_v5  ;;  %v5806_v10 = vunpack.i.l.bf16 %v8433_v47 }
 0x3bf   : > { %v5760_v24 = vpop.permute.xlu1 %5759  ;;  %v8435_v63 = vpop.permute.xlu0 %5809 }
 0x3c0   : > { %v5762_v46 = vunpack.i.h.bf16 %v5760_v24  ;;  %v5761_v28 = vunpack.i.l.bf16 %v5760_v24 }
 0x3c2   : > { %v3426_v34 = vsel %vm1820_vm6, %v3425_v39, %v5761_v28  ;;  %v3816_v14 = vsel %vm1820_vm6, %v3815_v0, %v5762_v46  ;;  %v9188_v46 = vld [vmem:[#allocation13_spill] sm:$0xff]  ;;  %v9189_v28 = vld [vmem:[#allocation31_spill] sm:$0xff]  ;;  %v5812_v39 = vunpack.i.h.bf16 %v8435_v63 }
 0x3c3   : > { %v5765_v40 = vpop.permute.xlu1 %5764  ;;  %v8437_v9 = vpop.permute.xlu0 %5814 }
 0x3c4   : > { %v5767_v7 = vunpack.i.h.bf16 %v5765_v40  ;;  %v5766_v8 = vunpack.i.l.bf16 %v5765_v40  ;;  %v9185_v40 = vld [vmem:[#allocation87_spill] sm:$0xff]  ;;  %v5816_v47 = vunpack.i.l.bf16 %v8437_v9 }
 0x3c6   : > { %v3427_v30 = vsel %vm1822_vm7, %v3426_v34, %v5766_v8  ;;  %v3817_v54 = vsel %vm1822_vm7, %v3816_v14, %v5767_v7  ;;  %v9190_v7 = vcombine.low %v9188_v46, %v9189_v28 }
 0x3c7   : > { %v5780_v25 = vpop.permute.xlu1 %5779  ;;  %v8439_v26 = vpop.permute.xlu0 %5819  ;;  %v3428_v35 = vsel %vm1824_vm8, %v3427_v30, %v5771_v60  ;;  %v3818_v4 = vsel %vm1824_vm8, %v3817_v54, %v5772_v29  ;;  %v5811_v30 = vunpack.i.l.bf16 %v8435_v63  ;;  %v5817_v54 = vunpack.i.h.bf16 %v8437_v9 }
 0x3c8   : > { %v5782_v12 = vunpack.i.h.bf16 %v5780_v25  ;;  %v5781_v23 = vunpack.i.l.bf16 %v5780_v25  ;;  %v3429_v36 = vsel %vm1826_vm9, %v3428_v35, %v5776_v50  ;;  %v3819_v55 = vsel %vm1826_vm9, %v3818_v4, %v5777_v59  ;;  %v9186_v25 = vld [vmem:[#allocation84_spill] sm:$0xff] }
 0x3c9   : > { %v9187_v51 = vcombine.low %v9185_v40, %v9186_v25  ;;  %v5821_v63 = vunpack.i.l.bf16 %v8439_v26 }
 0x3ca   : > { %v4214_v8 = vsel %vm1818_vm5, %v9190_v7, %v5781_v23 }
 0x3cb   : > { %v5785_v41 = vpop.permute.xlu1 %5784  ;;  %v4965_v42 = vpop.permute.xlu0 %4964  ;;  %v4604_v5 = vsel %vm1818_vm5, %v9187_v51, %v5782_v12 }
 0x3cc   : > { %v5787_v1 = vunpack.i.h.bf16 %v5785_v41  ;;  %v5786_v45 = vunpack.i.l.bf16 %v5785_v41 }
 0x3ce   : > { %v3430_v21 = vsel %vm1828_vm10, %v3429_v36, %v5786_v45  ;;  %v3820_v3 = vsel %vm1828_vm10, %v3819_v55, %v5787_v1  ;;  %v9191_v45 = vcombine.low %v8029_v53, %v8005_v38 }
 0x3cf   : > { %v5790_v62 = vpop.permute.xlu1 %5789  ;;  %v4969_v17 = vpop.permute.xlu0 %4968 }
 0x3d0   : > { %v5792_v16 = vunpack.i.h.bf16 %v5790_v62  ;;  %v5791_v27 = vunpack.i.l.bf16 %v5790_v62  ;;  %v5822_v62 = vunpack.i.h.bf16 %v8439_v26  ;;  %v9192_v26 = vcombine.low %v7991_v11, %v7999_v49 }
 0x3d2   : > { %v4215_v34 = vsel %vm1820_vm6, %v4214_v8, %v5791_v27  ;;  %v4605_v14 = vsel %vm1820_vm6, %v4604_v5, %v5792_v16  ;;  %v4987_v23 = vsel %vm1818_vm5, %v9192_v26, %v8383_v52 }
 0x3d3   : > { %v5795_v2 = vpop.permute.xlu1 %5794  ;;  %v4973_v31 = vpop.permute.xlu0 %4972  ;;  %v4988_v36 = vsel %vm1820_vm6, %v4987_v23, %v8399_v37 }
 0x3d4   : > { %v5797_v15 = vunpack.i.h.bf16 %v5795_v2  ;;  %v5796_v44 = vunpack.i.l.bf16 %v5795_v2 }
 0x3d6   : > { %v3431_v58 = vsel %vm1830_vm11, %v3430_v21, %v5796_v44  ;;  %v3821_v57 = vsel %vm1830_vm11, %v3820_v3, %v5797_v15  ;;  %v4989_v44 = vsel %vm1822_vm7, %v4988_v36, %v8413_v19 }
 0x3d7   : > { %v5800_v61 = vpop.permute.xlu1 %5799  ;;  %v5510_v24 = vpack.c.bf16 %v3821_v57, %v3431_v58  ;;  %v4977_v0 = vpop.permute.xlu0 %4976  ;;  %v4990_v49 = vsel %vm1824_vm8, %v4989_v44, %v8427_v6  ;;  %v5001_v6 = vld [vmem:[%s8533_s3] sm:$0x7] }
 0x3d8   : > { %v5802_v41 = vunpack.i.h.bf16 %v5800_v61  ;;  %v5801_v48 = vunpack.i.l.bf16 %v5800_v61  ;;  %v4991_v21 = vsel %vm1826_vm9, %v4990_v49, %v8431_v20 }
 0x3d9   : > { %5511 = vmatprep.subr.bf16.mxu0 %v5510_v24 }
 0x3da   : > { %v4216_v29 = vsel %vm1822_vm7, %v4215_v34, %v5801_v48  ;;  %v4606_v60 = vsel %vm1822_vm7, %v4605_v14, %v5802_v41  ;;  %5513 = vmatpush1.bf16.msra.mxu0 %v5512_v18 }
 0x3db   : > { %v4217_v35 = vsel %vm1824_vm8, %v4216_v29, %v5806_v10  ;;  %v4607_v4 = vsel %vm1824_vm8, %v4606_v60, %v5807_v33  ;;  %v4961_v1 = vpop.permute.xlu1 %4960  ;;  %v4981_v50 = vpop.permute.xlu0 %4980 }
 0x3dc   : > { %v4994_v59 = vsel %vm1818_vm5, %v9191_v45, %v4961_v1  ;;  %v4218_v13 = vsel %vm1826_vm9, %v4217_v35, %v5811_v30  ;;  %v4608_v43 = vsel %vm1826_vm9, %v4607_v4, %v5812_v39 }
 0x3dd   : > { %v4995_v18 = vsel %vm1820_vm6, %v4994_v59, %v4965_v42  ;;  %v4219_v9 = vsel %vm1828_vm10, %v4218_v13, %v5816_v47  ;;  %v4609_v12 = vsel %vm1828_vm10, %v4608_v43, %v5817_v54 }
 0x3de   : > { %v4996_v38 = vsel %vm1822_vm7, %v4995_v18, %v4969_v17  ;;  %v4220_v53 = vsel %vm1830_vm11, %v4219_v9, %v5821_v63  ;;  %v4610_v2 = vsel %vm1830_vm11, %v4609_v12, %v5822_v62 }
 0x3df   : > { %v4997_v42 = vsel %vm1824_vm8, %v4996_v38, %v4973_v31  ;;  %v4953_v55 = vpop.permute.xlu1 %4952  ;;  %v5514_v15 = vpack.c.bf16 %v4610_v2, %v4220_v53  ;;  %v4985_v17 = vpop.permute.xlu0 %4984 }
 0x3e0   : > { %v4998_v11 = vsel %vm1826_vm9, %v4997_v42, %v4977_v0  ;;  %v4992_v19 = vsel %vm1828_vm10, %v4991_v21, %v4953_v55 }
 0x3e1   : > { %v4999_v52 = vsel %vm1828_vm10, %v4998_v11, %v4981_v50  ;;  %5515 = vmatprep.subr.bf16.mxu0 %v5514_v15 }
 0x3e2   : > { %5517 = vmatpush1.bf16.msra.mxu0 %v5516_v56  ;;  %v5000_v37 = vsel %vm1830_vm11, %v4999_v52, %v4985_v17 }
 0x3e3   : > { %v4957_v31 = vpop.permute.xlu1 %4956  ;;  %5028 = vmatprep.subr.mxu0 %v5000_v37 }
 0x3e4   : > { %v4993_v3 = vsel %vm1830_vm11, %v4992_v19, %v4957_v31 }
 0x3e6   : > { %5029 = vmatpush1.msra.mxu0 %v4993_v3 }
 0x3e7   : > { %5220 = vmatmul.mubr.msk.f32.vlgmr.msra.gmra.mrb[30].mxu0 %vm5008_vm12, %v5001_v6 }
 0x3f0   : > { %v5006_v20 = vpop.permute.xlu0 %5005 }
 0x4ba   : > { %v5078_v16 = vpop.f32.mrb[30].mxu0 }
 0x4bb   : > { %v5079_v32 = vadd.f32 %v5078_v16, %v5006_v20  ;;  %v5080_v22 = vpop.f32.mrb[31].mxu0 }
 0x4bc   : > { %v5081_v56 = vadd.f32 %v5080_v22, %v5006_v20 }
 0x4bd   : > { %v5221_v27 = vmul.f32 -1.442695, %v5079_v32 }
 0x4be   : > { %v5222_v58 = vmul.f32 -1.442695, %v5081_v56 }
 0x4bf   : > { %5824 = vpow2.f32 %v5221_v27 }
 0x4c0   : > { %5826 = vpow2.f32 %v5222_v58 }
 0x4c9   : > { %v5825_v57 = vpop.eup %5824 }
 0x4ca   : > { %v5827_v33 = vpop.eup %5826  ;;  %v5089_v61 = vadd.f32 1.0, %v5825_v57 }
 0x4cb   : > { %v5090_v24 = vadd.f32 1.0, %v5827_v33 }
 0x4cc   : > { %5828 = vrcp.f32 %v5089_v61 }
 0x4cd   : > { %5830 = vrcp.f32 %v5090_v24 }
 0x4d6   : > { %v5829_v40 = vpop.eup %5828 }
 0x4d7   : > { %v5831_v25 = vpop.eup %5830 }
 0x4d8   : > { %v5097_v51 = vcombine.low %v5829_v40, %v5831_v25 }
 0x4da   : > { %5099 = vst [vmem:[%s224_s29] sm:$0x77] %v5097_v51 }
 0x4db PF: > { %s15_s18 = sadd.s32 1, %s5838_s18  }
 0x4dc   : > { %p12_p4 = scmp.ge.s32.totalorder %s15_s18, 6  }
 0x4de   :  { %14 = sbr.rel (!%p12_p4) target bundleno = 1 (0x1), region = 70 }

</bundles_post_ra>
